<compile_context>
chip_gen: v7x
topology: tpu7x:2x2x1
jax: 0.10.0
libtpu: 0.0.40
codegen_flags: <defaults>
</compile_context>

<pallas_src>
import functools

import jax
import jax.numpy as jnp
from jax.experimental import pallas as pl
from jax.experimental.pallas import tpu as pltpu


# ----------------------------------------------------------------------------
# Fused Block kernel (one grid step == one image)
# ----------------------------------------------------------------------------
def _block_kernel(x_ref, w1_ref, b1_ref, w2_ref, b2_ref, mask_ref, o_ref,
                  pad_ref, *col_scratch, H, W, C, deep_k):
    Wp = W + 2                    # padded row width in the flat pad buffer
    M = (H - 1) * Wp + W          # rows computed per conv (flat layout);
                                  # max tap read = 2*Wp+2 + M-1 = (H+2)*Wp - 1
    col_ref = col_scratch[0] if deep_k else None

    # ---- zero ONLY the padding cells (not the whole buffer), every step.
    zb = jnp.zeros((Wp + 1, C), jnp.float32)
    z2 = jnp.zeros((2, C), jnp.float32)
    pad_ref[0:Wp + 1, :] = zb                               # top row + row-1 left pad
    for y in range(1, H):                                   # row-y right pad + row-(y+1) left pad
        pad_ref[y * Wp + W + 1:y * Wp + W + 3, :] = z2
    pad_ref[(H + 1) * Wp - 1:(H + 2) * Wp, :] = zb          # row-H right pad + bottom row

    # ---- write the image interior (flat row-major; one store per row).
    for y in range(H):
        pad_ref[(y + 1) * Wp + 1:(y + 1) * Wp + 1 + W, :] = x_ref[0, y]

    def conv3x3_bn(w_ref, b_ref):
        # Output flat row m = y*Wp + x reads pad rows m + dy*Wp + dx, so every
        # tap is a contiguous row-offset view of pad_ref (no im2col gather).
        if deep_k:
            # C >= 128: one deep-K (K=9C) MXU matmul from a bf16 col scratch;
            # lane offsets t*C are 128-aligned -> unmasked stores.
            for t in range(9):
                dy, dx = divmod(t, 3)
                off = dy * Wp + dx
                col_ref[:, t * C:(t + 1) * C] = (
                    pad_ref[off:off + M, :].astype(jnp.bfloat16))
            acc = jnp.dot(col_ref[...], w_ref[...],
                          preferred_element_type=jnp.float32)
        else:
            # small C: copy-free -- 9 offset-view matmuls (K=C), f32 accum.
            acc = None
            for t in range(9):
                dy, dx = divmod(t, 3)
                off = dy * Wp + dx
                part = jnp.dot(pad_ref[off:off + M, :].astype(jnp.bfloat16),
                               w_ref[t * C:(t + 1) * C, :],
                               preferred_element_type=jnp.float32)
                acc = part if acc is None else acc + part
        return acc + b_ref[...]          # BN: scale folded into w, bias here (f32)

    # ---- conv1 + bn1 + relu.  Masking the garbage columns to zero makes the
    #      slab store below also re-establish conv2's SAME zero padding
    #      (the seam cells it touches receive exactly 0).
    h = jnp.maximum(conv3x3_bn(w1_ref, b1_ref), 0.0) * mask_ref[...]
    pad_ref[Wp + 1:Wp + 1 + M, :] = h          # interior <- h, seams <- 0
                                               # (borders untouched, stay 0)

    # ---- conv2 + bn2 + identity shortcut + relu (epilogue in f32).
    acc2 = conv3x3_bn(w2_ref, b2_ref)
    for y in range(H):
        row = acc2[y * Wp:y * Wp + W, :] + x_ref[0, y]
        o_ref[0, y] = jnp.maximum(row, 0.0).astype(o_ref.dtype)


# ----------------------------------------------------------------------------
# Wrapper
# ----------------------------------------------------------------------------
def resnet_block_forward(x_nchw, params):
    """Block.forward with stride=1, reduce=None, nonlin=ReLU (identity shortcut)."""
    N, C, H, W = x_nchw.shape
    assert params["w1"].shape[-1] == C, "identity shortcut needs inch == ouch"

    Wp = W + 2
    M = (H - 1) * Wp + W
    deep_k = C >= 128              # per-layer choice: deep-K when MXU-bound

    # NCHW -> NHWC (layout glue for the PyTorch interface; see TODOs above).
    x = jnp.transpose(x_nchw, (0, 2, 3, 1))

    # Fold BN scale into the conv weights, flatten the 3x3 taps into the
    # contraction dim, ship weights as bf16 (MXU-native, halves weight DMA).
    def fold_w(w, scale):
        return (w * scale[None, None, None, :]).reshape(9 * C, C).astype(jnp.bfloat16)

    w1 = fold_w(params["w1"], params["scale1"])
    w2 = fold_w(params["w2"], params["scale2"])
    b1 = params["bias1"].reshape(1, C).astype(jnp.float32)
    b2 = params["bias2"].reshape(1, C).astype(jnp.float32)

    # 1.0 on valid output columns (x < W), 0.0 on the Wp-W garbage columns of
    # the flat layout (tiny constant, reused across grid steps).
    col_mask = ((jnp.arange(M, dtype=jnp.int32) % Wp) < W)
    col_mask = col_mask.astype(jnp.float32).reshape(M, 1)

    kernel = functools.partial(_block_kernel, H=H, W=W, C=C, deep_k=deep_k)

    scratch = [pltpu.VMEM(((H + 2) * Wp, C), jnp.float32)]      # flat pad buffer
    if deep_k:
        scratch.append(pltpu.VMEM((M, 9 * C), jnp.bfloat16))    # bf16 im2col

    # VMEM budget: scratch + double-buffered blocks/weights + live f32 accs,
    # with headroom (v5e default scoped VMEM is only 16 MiB).
    def rup(v, m):
        return -(-v // m) * m
    lane_c = rup(C, 128)
    demand = (
        rup((H + 2) * Wp, 8) * lane_c * 4
        + (rup(M, 16) * rup(9 * C, 128) * 2 if deep_k else 0)
        + 2 * 2 * rup(H * W, 8) * lane_c * 4          # x + o, double buffered
        + 2 * 2 * rup(9 * C, 16) * lane_c * 2         # w1 + w2, double buffered
        + 3 * rup(M, 8) * lane_c * 4                  # live f32 accumulators
    )
    vmem_limit = int(min(max(2 * demand + (4 << 20), 32 << 20), 100 << 20))

    y = pl.pallas_call(
        kernel,
        out_shape=jax.ShapeDtypeStruct((N, H, W, C), x.dtype),
        grid_spec=pltpu.PrefetchScalarGridSpec(
            num_scalar_prefetch=0,
            grid=(N,),
            in_specs=[
                pl.BlockSpec((1, H, W, C), lambda n: (n, 0, 0, 0)),   # x
                pl.BlockSpec((9 * C, C), lambda n: (0, 0)),           # w1 (bf16)
                pl.BlockSpec((1, C), lambda n: (0, 0)),               # b1
                pl.BlockSpec((9 * C, C), lambda n: (0, 0)),           # w2 (bf16)
                pl.BlockSpec((1, C), lambda n: (0, 0)),               # b2
                pl.BlockSpec((M, 1), lambda n: (0, 0)),               # col mask
            ],
            out_specs=pl.BlockSpec((1, H, W, C), lambda n: (n, 0, 0, 0)),
            scratch_shapes=scratch),
        compiler_params=pltpu.CompilerParams(
            dimension_semantics=("parallel",),
            vmem_limit_bytes=vmem_limit),
    )(x, w1, b1, w2, b2, col_mask)

    return jnp.transpose(y, (0, 3, 1, 2))                     # NHWC -> NCHW


# ----------------------------------------------------------------------------
# References (verification only)
# ----------------------------------------------------------------------------
def _ref_conv_bn(inp, w, scale, bias, *, bf16):
    """conv3x3 'SAME' + folded BN.  bf16=True mirrors the kernel's MXU precision."""
    w_eff = w * scale[None, None, None, :]
    if bf16:
        inp, w_eff = inp.astype(jnp.bfloat16), w_eff.astype(jnp.bfloat16)
    y = jax.lax.conv_general_dilated(
        inp, w_eff, (1, 1), "SAME",
        dimension_numbers=("NHWC", "HWIO", "NHWC"),
        preferred_element_type=jnp.float32)
    return y + bias[None, None, None, :]


def _ref_block(x_nchw, params, *, bf16):
    x = jnp.transpose(x_nchw, (0, 2, 3, 1)).astype(jnp.float32)
    h = jnp.maximum(_ref_conv_bn(x, params["w1"], params["scale1"],
                                 params["bias1"], bf16=bf16), 0.0)
    y = jnp.maximum(x + _ref_conv_bn(h, params["w2"], params["scale2"],
                                     params["bias2"], bf16=bf16), 0.0)
    return jnp.transpose(y, (0, 3, 1, 2))


# ----------------------------------------------------------------------------
# Deterministic parameter construction (inference-folded BN)
# ----------------------------------------------------------------------------
def make_params(key, inch, ouch):
    ks = jax.random.split(key, 10)
    eps = 1e-5

    def fold_bn(gamma, beta, mean, var):
        scale = gamma / jnp.sqrt(var + eps)
        bias = beta - mean * scale
        return scale, bias

    w1 = jax.random.normal(ks[0], (3, 3, inch, ouch), jnp.float32) * 0.1
    w2 = jax.random.normal(ks[1], (3, 3, ouch, ouch), jnp.float32) * 0.1

    g1 = 0.8 + 0.4 * jax.random.uniform(ks[2], (ouch,), jnp.float32)
    b1 = 0.1 * jax.random.normal(ks[3], (ouch,), jnp.float32)
    m1 = 0.1 * jax.random.normal(ks[4], (ouch,), jnp.float32)
    v1 = 0.8 + 0.4 * jax.random.uniform(ks[5], (ouch,), jnp.float32)

    g2 = 0.8 + 0.4 * jax.random.uniform(ks[6], (ouch,), jnp.float32)
    b2 = 0.1 * jax.random.normal(ks[7], (ouch,), jnp.float32)
    m2 = 0.1 * jax.random.normal(ks[8], (ouch,), jnp.float32)
    v2 = 0.8 + 0.4 * jax.random.uniform(ks[9], (ouch,), jnp.float32)

    s1, bi1 = fold_bn(g1, b1, m1, v1)
    s2, bi2 = fold_bn(g2, b2, m2, v2)
    return {"w1": w1, "scale1": s1, "bias1": bi1,
            "w2": w2, "scale2": s2, "bias2": bi2}


# ----------------------------------------------------------------------------
if __name__ == "__main__":
    def run_case(N, C, H, W, key):
        kx, kp = jax.random.split(key)
        x = jax.random.normal(kx, (N, C, H, W), jnp.float32)      # PyTorch NCHW
        params = make_params(kp, C, C)

        out = jax.block_until_ready(jax.jit(resnet_block_forward)(x, params))
        assert out.shape == (N, C, H, W), out.shape

        # 1) Precision-matched reference (same bf16 operand rounding, f32 accum).
        ref_bf16 = jax.block_until_ready(_ref_block(x, params, bf16=True))
        assert jnp.allclose(out, ref_bf16, atol=5e-2, rtol=5e-2), (
            float(jnp.max(jnp.abs(out - ref_bf16))))

        # 2) Exact-f32 reference: coarse bound on the intentional bf16 rounding.
        ref_f32 = jax.block_until_ready(_ref_block(x, params, bf16=False))
        assert jnp.allclose(out, ref_f32, atol=0.5, rtol=0.05), (
            float(jnp.max(jnp.abs(out - ref_f32))))

    key = jax.random.PRNGKey(0)
    k1, k2 = jax.random.split(key)
    run_case(2, 32, 16, 16, k1)    # small-C path: copy-free offset-view convs
    run_case(2, 128, 8, 8, k2)     # C >= 128 path: deep-K (K=9C) bf16 im2col
    print("KERNEL_OK")
</pallas_src>

<mosaic_0001>
module attributes {stable_mosaic.version = 11 : i64} {
  func.func @_block_kernel(%arg0: i32, %arg1: memref<1x16x16x32xf32, #tpu.memory_space<vmem>>, %arg2: memref<288x32xbf16, #tpu.memory_space<vmem>>, %arg3: memref<1x32xf32, #tpu.memory_space<vmem>>, %arg4: memref<288x32xbf16, #tpu.memory_space<vmem>>, %arg5: memref<1x32xf32, #tpu.memory_space<vmem>>, %arg6: memref<286x1xf32, #tpu.memory_space<vmem>>, %arg7: memref<1x16x16x32xf32, #tpu.memory_space<vmem>>, %arg8: memref<324x32xf32, #tpu.memory_space<vmem>>) attributes {dimension_semantics = [#tpu.dimension_semantics<parallel>], iteration_bounds = array<i64: 2>, scalar_prefetch = 0 : i64, scratch_operands = 1 : i64, tpu.core_type = #tpu.core_type<tc>, window_params = [{transform_indices = @transform_0, window_bounds = array<i64: 1, 16, 16, 32>}, {pipeline_mode = #tpu.pipeline_mode<synchronous>, transform_indices = @transform_1, window_bounds = array<i64: 288, 32>}, {pipeline_mode = #tpu.pipeline_mode<synchronous>, transform_indices = @transform_2, window_bounds = array<i64: 1, 32>}, {pipeline_mode = #tpu.pipeline_mode<synchronous>, transform_indices = @transform_3, window_bounds = array<i64: 288, 32>}, {pipeline_mode = #tpu.pipeline_mode<synchronous>, transform_indices = @transform_4, window_bounds = array<i64: 1, 32>}, {pipeline_mode = #tpu.pipeline_mode<synchronous>, transform_indices = @transform_5, window_bounds = array<i64: 286, 1>}, {transform_indices = @transform_6, window_bounds = array<i64: 1, 16, 16, 32>}]} {
    %cst = arith.constant 0.000000e+00 : f32
    %0 = vector.broadcast %cst : f32 to vector<19x32xf32>
    %cst_0 = arith.constant 0.000000e+00 : f32
    %1 = vector.broadcast %cst_0 : f32 to vector<2x32xf32>
    %c0 = arith.constant 0 : index
    %c0_1 = arith.constant 0 : index
    %2 = vector.load %arg8[%c0, %c0_1] : memref<324x32xf32, #tpu.memory_space<vmem>>, vector<19x32xf32>
    tpu.vector_store %arg8[%c0, %c0_1], %0 {strides = array<i32>} : memref<324x32xf32, #tpu.memory_space<vmem>>, vector<19x32xf32>,
    %c35 = arith.constant 35 : index
    %c0_2 = arith.constant 0 : index
    %3 = vector.load %arg8[%c35, %c0_2] : memref<324x32xf32, #tpu.memory_space<vmem>>, vector<2x32xf32>
    tpu.vector_store %arg8[%c35, %c0_2], %1 {strides = array<i32>} : memref<324x32xf32, #tpu.memory_space<vmem>>, vector<2x32xf32>,
    %c53 = arith.constant 53 : index
    %c0_3 = arith.constant 0 : index
    %4 = vector.load %arg8[%c53, %c0_3] : memref<324x32xf32, #tpu.memory_space<vmem>>, vector<2x32xf32>
    tpu.vector_store %arg8[%c53, %c0_3], %1 {strides = array<i32>} : memref<324x32xf32, #tpu.memory_space<vmem>>, vector<2x32xf32>,
    %c71 = arith.constant 71 : index
    %c0_4 = arith.constant 0 : index
    %5 = vector.load %arg8[%c71, %c0_4] : memref<324x32xf32, #tpu.memory_space<vmem>>, vector<2x32xf32>
    tpu.vector_store %arg8[%c71, %c0_4], %1 {strides = array<i32>} : memref<324x32xf32, #tpu.memory_space<vmem>>, vector<2x32xf32>,
    %c89 = arith.constant 89 : index
    %c0_5 = arith.constant 0 : index
    %6 = vector.load %arg8[%c89, %c0_5] : memref<324x32xf32, #tpu.memory_space<vmem>>, vector<2x32xf32>
    tpu.vector_store %arg8[%c89, %c0_5], %1 {strides = array<i32>} : memref<324x32xf32, #tpu.memory_space<vmem>>, vector<2x32xf32>,
    %c107 = arith.constant 107 : index
    %c0_6 = arith.constant 0 : index
    %7 = vector.load %arg8[%c107, %c0_6] : memref<324x32xf32, #tpu.memory_space<vmem>>, vector<2x32xf32>
    tpu.vector_store %arg8[%c107, %c0_6], %1 {strides = array<i32>} : memref<324x32xf32, #tpu.memory_space<vmem>>, vector<2x32xf32>,
    %c125 = arith.constant 125 : index
    %c0_7 = arith.constant 0 : index
    %8 = vector.load %arg8[%c125, %c0_7] : memref<324x32xf32, #tpu.memory_space<vmem>>, vector<2x32xf32>
    tpu.vector_store %arg8[%c125, %c0_7], %1 {strides = array<i32>} : memref<324x32xf32, #tpu.memory_space<vmem>>, vector<2x32xf32>,
    %c143 = arith.constant 143 : index
    %c0_8 = arith.constant 0 : index
    %9 = vector.load %arg8[%c143, %c0_8] : memref<324x32xf32, #tpu.memory_space<vmem>>, vector<2x32xf32>
    tpu.vector_store %arg8[%c143, %c0_8], %1 {strides = array<i32>} : memref<324x32xf32, #tpu.memory_space<vmem>>, vector<2x32xf32>,
    %c161 = arith.constant 161 : index
    %c0_9 = arith.constant 0 : index
    %10 = vector.load %arg8[%c161, %c0_9] : memref<324x32xf32, #tpu.memory_space<vmem>>, vector<2x32xf32>
    tpu.vector_store %arg8[%c161, %c0_9], %1 {strides = array<i32>} : memref<324x32xf32, #tpu.memory_space<vmem>>, vector<2x32xf32>,
    %c179 = arith.constant 179 : index
    %c0_10 = arith.constant 0 : index
    %11 = vector.load %arg8[%c179, %c0_10] : memref<324x32xf32, #tpu.memory_space<vmem>>, vector<2x32xf32>
    tpu.vector_store %arg8[%c179, %c0_10], %1 {strides = array<i32>} : memref<324x32xf32, #tpu.memory_space<vmem>>, vector<2x32xf32>,
    %c197 = arith.constant 197 : index
    %c0_11 = arith.constant 0 : index
    %12 = vector.load %arg8[%c197, %c0_11] : memref<324x32xf32, #tpu.memory_space<vmem>>, vector<2x32xf32>
    tpu.vector_store %arg8[%c197, %c0_11], %1 {strides = array<i32>} : memref<324x32xf32, #tpu.memory_space<vmem>>, vector<2x32xf32>,
    %c215 = arith.constant 215 : index
    %c0_12 = arith.constant 0 : index
    %13 = vector.load %arg8[%c215, %c0_12] : memref<324x32xf32, #tpu.memory_space<vmem>>, vector<2x32xf32>
    tpu.vector_store %arg8[%c215, %c0_12], %1 {strides = array<i32>} : memref<324x32xf32, #tpu.memory_space<vmem>>, vector<2x32xf32>,
    %c233 = arith.constant 233 : index
    %c0_13 = arith.constant 0 : index
    %14 = vector.load %arg8[%c233, %c0_13] : memref<324x32xf32, #tpu.memory_space<vmem>>, vector<2x32xf32>
    tpu.vector_store %arg8[%c233, %c0_13], %1 {strides = array<i32>} : memref<324x32xf32, #tpu.memory_space<vmem>>, vector<2x32xf32>,
    %c251 = arith.constant 251 : index
    %c0_14 = arith.constant 0 : index
    %15 = vector.load %arg8[%c251, %c0_14] : memref<324x32xf32, #tpu.memory_space<vmem>>, vector<2x32xf32>
    tpu.vector_store %arg8[%c251, %c0_14], %1 {strides = array<i32>} : memref<324x32xf32, #tpu.memory_space<vmem>>, vector<2x32xf32>,
    %c269 = arith.constant 269 : index
    %c0_15 = arith.constant 0 : index
    %16 = vector.load %arg8[%c269, %c0_15] : memref<324x32xf32, #tpu.memory_space<vmem>>, vector<2x32xf32>
    tpu.vector_store %arg8[%c269, %c0_15], %1 {strides = array<i32>} : memref<324x32xf32, #tpu.memory_space<vmem>>, vector<2x32xf32>,
    %c287 = arith.constant 287 : index
    %c0_16 = arith.constant 0 : index
    %17 = vector.load %arg8[%c287, %c0_16] : memref<324x32xf32, #tpu.memory_space<vmem>>, vector<2x32xf32>
    tpu.vector_store %arg8[%c287, %c0_16], %1 {strides = array<i32>} : memref<324x32xf32, #tpu.memory_space<vmem>>, vector<2x32xf32>,
    %c305 = arith.constant 305 : index
    %c0_17 = arith.constant 0 : index
    %18 = vector.load %arg8[%c305, %c0_17] : memref<324x32xf32, #tpu.memory_space<vmem>>, vector<19x32xf32>
    tpu.vector_store %arg8[%c305, %c0_17], %0 {strides = array<i32>} : memref<324x32xf32, #tpu.memory_space<vmem>>, vector<19x32xf32>,
    %c0_18 = arith.constant 0 : index
    %c0_19 = arith.constant 0 : index
    %c0_20 = arith.constant 0 : index
    %c0_21 = arith.constant 0 : index
    %19 = vector.load %arg1[%c0_18, %c0_19, %c0_20, %c0_21] : memref<1x16x16x32xf32, #tpu.memory_space<vmem>>, vector<1x1x16x32xf32>
    %20 = vector.shape_cast %19 : vector<1x1x16x32xf32> to vector<16x32xf32>
    %c19 = arith.constant 19 : index
    %c0_22 = arith.constant 0 : index
    %21 = vector.load %arg8[%c19, %c0_22] : memref<324x32xf32, #tpu.memory_space<vmem>>, vector<16x32xf32>
    tpu.vector_store %arg8[%c19, %c0_22], %20 {strides = array<i32>} : memref<324x32xf32, #tpu.memory_space<vmem>>, vector<16x32xf32>,
    %c0_23 = arith.constant 0 : index
    %c1 = arith.constant 1 : index
    %c0_24 = arith.constant 0 : index
    %c0_25 = arith.constant 0 : index
    %22 = vector.load %arg1[%c0_23, %c1, %c0_24, %c0_25] : memref<1x16x16x32xf32, #tpu.memory_space<vmem>>, vector<1x1x16x32xf32>
    %23 = vector.shape_cast %22 : vector<1x1x16x32xf32> to vector<16x32xf32>
    %c37 = arith.constant 37 : index
    %c0_26 = arith.constant 0 : index
    %24 = vector.load %arg8[%c37, %c0_26] : memref<324x32xf32, #tpu.memory_space<vmem>>, vector<16x32xf32>
    tpu.vector_store %arg8[%c37, %c0_26], %23 {strides = array<i32>} : memref<324x32xf32, #tpu.memory_space<vmem>>, vector<16x32xf32>,
    %c0_27 = arith.constant 0 : index
    %c2 = arith.constant 2 : index
    %c0_28 = arith.constant 0 : index
    %c0_29 = arith.constant 0 : index
    %25 = vector.load %arg1[%c0_27, %c2, %c0_28, %c0_29] : memref<1x16x16x32xf32, #tpu.memory_space<vmem>>, vector<1x1x16x32xf32>
    %26 = vector.shape_cast %25 : vector<1x1x16x32xf32> to vector<16x32xf32>
    %c55 = arith.constant 55 : index
    %c0_30 = arith.constant 0 : index
    %27 = vector.load %arg8[%c55, %c0_30] : memref<324x32xf32, #tpu.memory_space<vmem>>, vector<16x32xf32>
    tpu.vector_store %arg8[%c55, %c0_30], %26 {strides = array<i32>} : memref<324x32xf32, #tpu.memory_space<vmem>>, vector<16x32xf32>,
    %c0_31 = arith.constant 0 : index
    %c3 = arith.constant 3 : index
    %c0_32 = arith.constant 0 : index
    %c0_33 = arith.constant 0 : index
    %28 = vector.load %arg1[%c0_31, %c3, %c0_32, %c0_33] : memref<1x16x16x32xf32, #tpu.memory_space<vmem>>, vector<1x1x16x32xf32>
    %29 = vector.shape_cast %28 : vector<1x1x16x32xf32> to vector<16x32xf32>
    %c73 = arith.constant 73 : index
    %c0_34 = arith.constant 0 : index
    %30 = vector.load %arg8[%c73, %c0_34] : memref<324x32xf32, #tpu.memory_space<vmem>>, vector<16x32xf32>
    tpu.vector_store %arg8[%c73, %c0_34], %29 {strides = array<i32>} : memref<324x32xf32, #tpu.memory_space<vmem>>, vector<16x32xf32>,
    %c0_35 = arith.constant 0 : index
    %c4 = arith.constant 4 : index
    %c0_36 = arith.constant 0 : index
    %c0_37 = arith.constant 0 : index
    %31 = vector.load %arg1[%c0_35, %c4, %c0_36, %c0_37] : memref<1x16x16x32xf32, #tpu.memory_space<vmem>>, vector<1x1x16x32xf32>
    %32 = vector.shape_cast %31 : vector<1x1x16x32xf32> to vector<16x32xf32>
    %c91 = arith.constant 91 : index
    %c0_38 = arith.constant 0 : index
    %33 = vector.load %arg8[%c91, %c0_38] : memref<324x32xf32, #tpu.memory_space<vmem>>, vector<16x32xf32>
    tpu.vector_store %arg8[%c91, %c0_38], %32 {strides = array<i32>} : memref<324x32xf32, #tpu.memory_space<vmem>>, vector<16x32xf32>,
    %c0_39 = arith.constant 0 : index
    %c5 = arith.constant 5 : index
    %c0_40 = arith.constant 0 : index
    %c0_41 = arith.constant 0 : index
    %34 = vector.load %arg1[%c0_39, %c5, %c0_40, %c0_41] : memref<1x16x16x32xf32, #tpu.memory_space<vmem>>, vector<1x1x16x32xf32>
    %35 = vector.shape_cast %34 : vector<1x1x16x32xf32> to vector<16x32xf32>
    %c109 = arith.constant 109 : index
    %c0_42 = arith.constant 0 : index
    %36 = vector.load %arg8[%c109, %c0_42] : memref<324x32xf32, #tpu.memory_space<vmem>>, vector<16x32xf32>
    tpu.vector_store %arg8[%c109, %c0_42], %35 {strides = array<i32>} : memref<324x32xf32, #tpu.memory_space<vmem>>, vector<16x32xf32>,
    %c0_43 = arith.constant 0 : index
    %c6 = arith.constant 6 : index
    %c0_44 = arith.constant 0 : index
    %c0_45 = arith.constant 0 : index
    %37 = vector.load %arg1[%c0_43, %c6, %c0_44, %c0_45] : memref<1x16x16x32xf32, #tpu.memory_space<vmem>>, vector<1x1x16x32xf32>
    %38 = vector.shape_cast %37 : vector<1x1x16x32xf32> to vector<16x32xf32>
    %c127 = arith.constant 127 : index
    %c0_46 = arith.constant 0 : index
    %39 = vector.load %arg8[%c127, %c0_46] : memref<324x32xf32, #tpu.memory_space<vmem>>, vector<16x32xf32>
    tpu.vector_store %arg8[%c127, %c0_46], %38 {strides = array<i32>} : memref<324x32xf32, #tpu.memory_space<vmem>>, vector<16x32xf32>,
    %c0_47 = arith.constant 0 : index
    %c7 = arith.constant 7 : index
    %c0_48 = arith.constant 0 : index
    %c0_49 = arith.constant 0 : index
    %40 = vector.load %arg1[%c0_47, %c7, %c0_48, %c0_49] : memref<1x16x16x32xf32, #tpu.memory_space<vmem>>, vector<1x1x16x32xf32>
    %41 = vector.shape_cast %40 : vector<1x1x16x32xf32> to vector<16x32xf32>
    %c145 = arith.constant 145 : index
    %c0_50 = arith.constant 0 : index
    %42 = vector.load %arg8[%c145, %c0_50] : memref<324x32xf32, #tpu.memory_space<vmem>>, vector<16x32xf32>
    tpu.vector_store %arg8[%c145, %c0_50], %41 {strides = array<i32>} : memref<324x32xf32, #tpu.memory_space<vmem>>, vector<16x32xf32>,
    %c0_51 = arith.constant 0 : index
    %c8 = arith.constant 8 : index
    %c0_52 = arith.constant 0 : index
    %c0_53 = arith.constant 0 : index
    %43 = vector.load %arg1[%c0_51, %c8, %c0_52, %c0_53] : memref<1x16x16x32xf32, #tpu.memory_space<vmem>>, vector<1x1x16x32xf32>
    %44 = vector.shape_cast %43 : vector<1x1x16x32xf32> to vector<16x32xf32>
    %c163 = arith.constant 163 : index
    %c0_54 = arith.constant 0 : index
    %45 = vector.load %arg8[%c163, %c0_54] : memref<324x32xf32, #tpu.memory_space<vmem>>, vector<16x32xf32>
    tpu.vector_store %arg8[%c163, %c0_54], %44 {strides = array<i32>} : memref<324x32xf32, #tpu.memory_space<vmem>>, vector<16x32xf32>,
    %c0_55 = arith.constant 0 : index
    %c9 = arith.constant 9 : index
    %c0_56 = arith.constant 0 : index
    %c0_57 = arith.constant 0 : index
    %46 = vector.load %arg1[%c0_55, %c9, %c0_56, %c0_57] : memref<1x16x16x32xf32, #tpu.memory_space<vmem>>, vector<1x1x16x32xf32>
    %47 = vector.shape_cast %46 : vector<1x1x16x32xf32> to vector<16x32xf32>
    %c181 = arith.constant 181 : index
    %c0_58 = arith.constant 0 : index
    %48 = vector.load %arg8[%c181, %c0_58] : memref<324x32xf32, #tpu.memory_space<vmem>>, vector<16x32xf32>
    tpu.vector_store %arg8[%c181, %c0_58], %47 {strides = array<i32>} : memref<324x32xf32, #tpu.memory_space<vmem>>, vector<16x32xf32>,
    %c0_59 = arith.constant 0 : index
    %c10 = arith.constant 10 : index
    %c0_60 = arith.constant 0 : index
    %c0_61 = arith.constant 0 : index
    %49 = vector.load %arg1[%c0_59, %c10, %c0_60, %c0_61] : memref<1x16x16x32xf32, #tpu.memory_space<vmem>>, vector<1x1x16x32xf32>
    %50 = vector.shape_cast %49 : vector<1x1x16x32xf32> to vector<16x32xf32>
    %c199 = arith.constant 199 : index
    %c0_62 = arith.constant 0 : index
    %51 = vector.load %arg8[%c199, %c0_62] : memref<324x32xf32, #tpu.memory_space<vmem>>, vector<16x32xf32>
    tpu.vector_store %arg8[%c199, %c0_62], %50 {strides = array<i32>} : memref<324x32xf32, #tpu.memory_space<vmem>>, vector<16x32xf32>,
    %c0_63 = arith.constant 0 : index
    %c11 = arith.constant 11 : index
    %c0_64 = arith.constant 0 : index
    %c0_65 = arith.constant 0 : index
    %52 = vector.load %arg1[%c0_63, %c11, %c0_64, %c0_65] : memref<1x16x16x32xf32, #tpu.memory_space<vmem>>, vector<1x1x16x32xf32>
    %53 = vector.shape_cast %52 : vector<1x1x16x32xf32> to vector<16x32xf32>
    %c217 = arith.constant 217 : index
    %c0_66 = arith.constant 0 : index
    %54 = vector.load %arg8[%c217, %c0_66] : memref<324x32xf32, #tpu.memory_space<vmem>>, vector<16x32xf32>
    tpu.vector_store %arg8[%c217, %c0_66], %53 {strides = array<i32>} : memref<324x32xf32, #tpu.memory_space<vmem>>, vector<16x32xf32>,
    %c0_67 = arith.constant 0 : index
    %c12 = arith.constant 12 : index
    %c0_68 = arith.constant 0 : index
    %c0_69 = arith.constant 0 : index
    %55 = vector.load %arg1[%c0_67, %c12, %c0_68, %c0_69] : memref<1x16x16x32xf32, #tpu.memory_space<vmem>>, vector<1x1x16x32xf32>
    %56 = vector.shape_cast %55 : vector<1x1x16x32xf32> to vector<16x32xf32>
    %c235 = arith.constant 235 : index
    %c0_70 = arith.constant 0 : index
    %57 = vector.load %arg8[%c235, %c0_70] : memref<324x32xf32, #tpu.memory_space<vmem>>, vector<16x32xf32>
    tpu.vector_store %arg8[%c235, %c0_70], %56 {strides = array<i32>} : memref<324x32xf32, #tpu.memory_space<vmem>>, vector<16x32xf32>,
    %c0_71 = arith.constant 0 : index
    %c13 = arith.constant 13 : index
    %c0_72 = arith.constant 0 : index
    %c0_73 = arith.constant 0 : index
    %58 = vector.load %arg1[%c0_71, %c13, %c0_72, %c0_73] : memref<1x16x16x32xf32, #tpu.memory_space<vmem>>, vector<1x1x16x32xf32>
    %59 = vector.shape_cast %58 : vector<1x1x16x32xf32> to vector<16x32xf32>
    %c253 = arith.constant 253 : index
    %c0_74 = arith.constant 0 : index
    %60 = vector.load %arg8[%c253, %c0_74] : memref<324x32xf32, #tpu.memory_space<vmem>>, vector<16x32xf32>
    tpu.vector_store %arg8[%c253, %c0_74], %59 {strides = array<i32>} : memref<324x32xf32, #tpu.memory_space<vmem>>, vector<16x32xf32>,
    %c0_75 = arith.constant 0 : index
    %c14 = arith.constant 14 : index
    %c0_76 = arith.constant 0 : index
    %c0_77 = arith.constant 0 : index
    %61 = vector.load %arg1[%c0_75, %c14, %c0_76, %c0_77] : memref<1x16x16x32xf32, #tpu.memory_space<vmem>>, vector<1x1x16x32xf32>
    %62 = vector.shape_cast %61 : vector<1x1x16x32xf32> to vector<16x32xf32>
    %c271 = arith.constant 271 : index
    %c0_78 = arith.constant 0 : index
    %63 = vector.load %arg8[%c271, %c0_78] : memref<324x32xf32, #tpu.memory_space<vmem>>, vector<16x32xf32>
    tpu.vector_store %arg8[%c271, %c0_78], %62 {strides = array<i32>} : memref<324x32xf32, #tpu.memory_space<vmem>>, vector<16x32xf32>,
    %c0_79 = arith.constant 0 : index
    %c15 = arith.constant 15 : index
    %c0_80 = arith.constant 0 : index
    %c0_81 = arith.constant 0 : index
    %64 = vector.load %arg1[%c0_79, %c15, %c0_80, %c0_81] : memref<1x16x16x32xf32, #tpu.memory_space<vmem>>, vector<1x1x16x32xf32>
    %65 = vector.shape_cast %64 : vector<1x1x16x32xf32> to vector<16x32xf32>
    %c289 = arith.constant 289 : index
    %c0_82 = arith.constant 0 : index
    %66 = vector.load %arg8[%c289, %c0_82] : memref<324x32xf32, #tpu.memory_space<vmem>>, vector<16x32xf32>
    tpu.vector_store %arg8[%c289, %c0_82], %65 {strides = array<i32>} : memref<324x32xf32, #tpu.memory_space<vmem>>, vector<16x32xf32>,
    %c0_83 = arith.constant 0 : index
    %c0_84 = arith.constant 0 : index
    %67 = vector.load %arg8[%c0_83, %c0_84] : memref<324x32xf32, #tpu.memory_space<vmem>>, vector<286x32xf32>
    %68 = arith.truncf %67 : vector<286x32xf32> to vector<286x32xbf16>
    %c0_85 = arith.constant 0 : index
    %c0_86 = arith.constant 0 : index
    %69 = vector.load %arg2[%c0_85, %c0_86] : memref<288x32xbf16, #tpu.memory_space<vmem>>, vector<32x32xbf16>
    %cst_87 = arith.constant dense<0.000000e+00> : vector<286x32xf32>
    %70 = tpu.matmul %68, %69, %cst_87 {dimension_numbers = #tpu.dot_dimension_numbers<[1], [0], [0], [1], [0, 0, 1, 1], [], []>} : vector<286x32xbf16>, vector<32x32xbf16>, vector<286x32xf32> -> vector<286x32xf32>
    %c1_88 = arith.constant 1 : index
    %c0_89 = arith.constant 0 : index
    %71 = vector.load %arg8[%c1_88, %c0_89] : memref<324x32xf32, #tpu.memory_space<vmem>>, vector<286x32xf32>
    %72 = arith.truncf %71 : vector<286x32xf32> to vector<286x32xbf16>
    %c32 = arith.constant 32 : index
    %c0_90 = arith.constant 0 : index
    %73 = vector.load %arg2[%c32, %c0_90] : memref<288x32xbf16, #tpu.memory_space<vmem>>, vector<32x32xbf16>
    %cst_91 = arith.constant dense<0.000000e+00> : vector<286x32xf32>
    %74 = tpu.matmul %72, %73, %cst_91 {dimension_numbers = #tpu.dot_dimension_numbers<[1], [0], [0], [1], [0, 0, 1, 1], [], []>} : vector<286x32xbf16>, vector<32x32xbf16>, vector<286x32xf32> -> vector<286x32xf32>
    %75 = arith.addf %70, %74 : vector<286x32xf32>
    %c2_92 = arith.constant 2 : index
    %c0_93 = arith.constant 0 : index
    %76 = vector.load %arg8[%c2_92, %c0_93] : memref<324x32xf32, #tpu.memory_space<vmem>>, vector<286x32xf32>
    %77 = arith.truncf %76 : vector<286x32xf32> to vector<286x32xbf16>
    %c64 = arith.constant 64 : index
    %c0_94 = arith.constant 0 : index
    %78 = vector.load %arg2[%c64, %c0_94] : memref<288x32xbf16, #tpu.memory_space<vmem>>, vector<32x32xbf16>
    %cst_95 = arith.constant dense<0.000000e+00> : vector<286x32xf32>
    %79 = tpu.matmul %77, %78, %cst_95 {dimension_numbers = #tpu.dot_dimension_numbers<[1], [0], [0], [1], [0, 0, 1, 1], [], []>} : vector<286x32xbf16>, vector<32x32xbf16>, vector<286x32xf32> -> vector<286x32xf32>
    %80 = arith.addf %75, %79 : vector<286x32xf32>
    %c18 = arith.constant 18 : index
    %c0_96 = arith.constant 0 : index
    %81 = vector.load %arg8[%c18, %c0_96] : memref<324x32xf32, #tpu.memory_space<vmem>>, vector<286x32xf32>
    %82 = arith.truncf %81 : vector<286x32xf32> to vector<286x32xbf16>
    %c96 = arith.constant 96 : index
    %c0_97 = arith.constant 0 : index
    %83 = vector.load %arg2[%c96, %c0_97] : memref<288x32xbf16, #tpu.memory_space<vmem>>, vector<32x32xbf16>
    %cst_98 = arith.constant dense<0.000000e+00> : vector<286x32xf32>
    %84 = tpu.matmul %82, %83, %cst_98 {dimension_numbers = #tpu.dot_dimension_numbers<[1], [0], [0], [1], [0, 0, 1, 1], [], []>} : vector<286x32xbf16>, vector<32x32xbf16>, vector<286x32xf32> -> vector<286x32xf32>
    %85 = arith.addf %80, %84 : vector<286x32xf32>
    %c19_99 = arith.constant 19 : index
    %c0_100 = arith.constant 0 : index
    %86 = vector.load %arg8[%c19_99, %c0_100] : memref<324x32xf32, #tpu.memory_space<vmem>>, vector<286x32xf32>
    %87 = arith.truncf %86 : vector<286x32xf32> to vector<286x32xbf16>
    %c128 = arith.constant 128 : index
    %c0_101 = arith.constant 0 : index
    %88 = vector.load %arg2[%c128, %c0_101] : memref<288x32xbf16, #tpu.memory_space<vmem>>, vector<32x32xbf16>
    %cst_102 = arith.constant dense<0.000000e+00> : vector<286x32xf32>
    %89 = tpu.matmul %87, %88, %cst_102 {dimension_numbers = #tpu.dot_dimension_numbers<[1], [0], [0], [1], [0, 0, 1, 1], [], []>} : vector<286x32xbf16>, vector<32x32xbf16>, vector<286x32xf32> -> vector<286x32xf32>
    %90 = arith.addf %85, %89 : vector<286x32xf32>
    %c20 = arith.constant 20 : index
    %c0_103 = arith.constant 0 : index
    %91 = vector.load %arg8[%c20, %c0_103] : memref<324x32xf32, #tpu.memory_space<vmem>>, vector<286x32xf32>
    %92 = arith.truncf %91 : vector<286x32xf32> to vector<286x32xbf16>
    %c160 = arith.constant 160 : index
    %c0_104 = arith.constant 0 : index
    %93 = vector.load %arg2[%c160, %c0_104] : memref<288x32xbf16, #tpu.memory_space<vmem>>, vector<32x32xbf16>
    %cst_105 = arith.constant dense<0.000000e+00> : vector<286x32xf32>
    %94 = tpu.matmul %92, %93, %cst_105 {dimension_numbers = #tpu.dot_dimension_numbers<[1], [0], [0], [1], [0, 0, 1, 1], [], []>} : vector<286x32xbf16>, vector<32x32xbf16>, vector<286x32xf32> -> vector<286x32xf32>
    %95 = arith.addf %90, %94 : vector<286x32xf32>
    %c36 = arith.constant 36 : index
    %c0_106 = arith.constant 0 : index
    %96 = vector.load %arg8[%c36, %c0_106] : memref<324x32xf32, #tpu.memory_space<vmem>>, vector<286x32xf32>
    %97 = arith.truncf %96 : vector<286x32xf32> to vector<286x32xbf16>
    %c192 = arith.constant 192 : index
    %c0_107 = arith.constant 0 : index
    %98 = vector.load %arg2[%c192, %c0_107] : memref<288x32xbf16, #tpu.memory_space<vmem>>, vector<32x32xbf16>
    %cst_108 = arith.constant dense<0.000000e+00> : vector<286x32xf32>
    %99 = tpu.matmul %97, %98, %cst_108 {dimension_numbers = #tpu.dot_dimension_numbers<[1], [0], [0], [1], [0, 0, 1, 1], [], []>} : vector<286x32xbf16>, vector<32x32xbf16>, vector<286x32xf32> -> vector<286x32xf32>
    %100 = arith.addf %95, %99 : vector<286x32xf32>
    %c37_109 = arith.constant 37 : index
    %c0_110 = arith.constant 0 : index
    %101 = vector.load %arg8[%c37_109, %c0_110] : memref<324x32xf32, #tpu.memory_space<vmem>>, vector<286x32xf32>
    %102 = arith.truncf %101 : vector<286x32xf32> to vector<286x32xbf16>
    %c224 = arith.constant 224 : index
    %c0_111 = arith.constant 0 : index
    %103 = vector.load %arg2[%c224, %c0_111] : memref<288x32xbf16, #tpu.memory_space<vmem>>, vector<32x32xbf16>
    %cst_112 = arith.constant dense<0.000000e+00> : vector<286x32xf32>
    %104 = tpu.matmul %102, %103, %cst_112 {dimension_numbers = #tpu.dot_dimension_numbers<[1], [0], [0], [1], [0, 0, 1, 1], [], []>} : vector<286x32xbf16>, vector<32x32xbf16>, vector<286x32xf32> -> vector<286x32xf32>
    %105 = arith.addf %100, %104 : vector<286x32xf32>
    %c38 = arith.constant 38 : index
    %c0_113 = arith.constant 0 : index
    %106 = vector.load %arg8[%c38, %c0_113] : memref<324x32xf32, #tpu.memory_space<vmem>>, vector<286x32xf32>
    %107 = arith.truncf %106 : vector<286x32xf32> to vector<286x32xbf16>
    %c256 = arith.constant 256 : index
    %c0_114 = arith.constant 0 : index
    %108 = vector.load %arg2[%c256, %c0_114] : memref<288x32xbf16, #tpu.memory_space<vmem>>, vector<32x32xbf16>
    %cst_115 = arith.constant dense<0.000000e+00> : vector<286x32xf32>
    %109 = tpu.matmul %107, %108, %cst_115 {dimension_numbers = #tpu.dot_dimension_numbers<[1], [0], [0], [1], [0, 0, 1, 1], [], []>} : vector<286x32xbf16>, vector<32x32xbf16>, vector<286x32xf32> -> vector<286x32xf32>
    %110 = arith.addf %105, %109 : vector<286x32xf32>
    %c0_116 = arith.constant 0 : index
    %c0_117 = arith.constant 0 : index
    %111 = vector.load %arg3[%c0_116, %c0_117] : memref<1x32xf32, #tpu.memory_space<vmem>>, vector<1x32xf32>
    %112 = vector.broadcast %111 : vector<1x32xf32> to vector<286x32xf32>
    %113 = arith.addf %110, %112 : vector<286x32xf32>
    %cst_118 = arith.constant 0.000000e+00 : f32
    %114 = vector.broadcast %cst_118 : f32 to vector<286x32xf32>
    %115 = arith.maximumf %113, %114 : vector<286x32xf32>
    %c0_119 = arith.constant 0 : index
    %c0_120 = arith.constant 0 : index
    %116 = vector.load %arg6[%c0_119, %c0_120] : memref<286x1xf32, #tpu.memory_space<vmem>>, vector<286x1xf32>
    %117 = vector.broadcast %116 : vector<286x1xf32> to vector<286x32xf32>
    %118 = arith.mulf %115, %117 : vector<286x32xf32>
    %c19_121 = arith.constant 19 : index
    %c0_122 = arith.constant 0 : index
    %119 = vector.load %arg8[%c19_121, %c0_122] : memref<324x32xf32, #tpu.memory_space<vmem>>, vector<286x32xf32>
    tpu.vector_store %arg8[%c19_121, %c0_122], %118 {strides = array<i32>} : memref<324x32xf32, #tpu.memory_space<vmem>>, vector<286x32xf32>,
    %c0_123 = arith.constant 0 : index
    %c0_124 = arith.constant 0 : index
    %120 = vector.load %arg8[%c0_123, %c0_124] : memref<324x32xf32, #tpu.memory_space<vmem>>, vector<286x32xf32>
    %121 = arith.truncf %120 : vector<286x32xf32> to vector<286x32xbf16>
    %c0_125 = arith.constant 0 : index
    %c0_126 = arith.constant 0 : index
    %122 = vector.load %arg4[%c0_125, %c0_126] : memref<288x32xbf16, #tpu.memory_space<vmem>>, vector<32x32xbf16>
    %cst_127 = arith.constant dense<0.000000e+00> : vector<286x32xf32>
    %123 = tpu.matmul %121, %122, %cst_127 {dimension_numbers = #tpu.dot_dimension_numbers<[1], [0], [0], [1], [0, 0, 1, 1], [], []>} : vector<286x32xbf16>, vector<32x32xbf16>, vector<286x32xf32> -> vector<286x32xf32>
    %c1_128 = arith.constant 1 : index
    %c0_129 = arith.constant 0 : index
    %124 = vector.load %arg8[%c1_128, %c0_129] : memref<324x32xf32, #tpu.memory_space<vmem>>, vector<286x32xf32>
    %125 = arith.truncf %124 : vector<286x32xf32> to vector<286x32xbf16>
    %c32_130 = arith.constant 32 : index
    %c0_131 = arith.constant 0 : index
    %126 = vector.load %arg4[%c32_130, %c0_131] : memref<288x32xbf16, #tpu.memory_space<vmem>>, vector<32x32xbf16>
    %cst_132 = arith.constant dense<0.000000e+00> : vector<286x32xf32>
    %127 = tpu.matmul %125, %126, %cst_132 {dimension_numbers = #tpu.dot_dimension_numbers<[1], [0], [0], [1], [0, 0, 1, 1], [], []>} : vector<286x32xbf16>, vector<32x32xbf16>, vector<286x32xf32> -> vector<286x32xf32>
    %128 = arith.addf %123, %127 : vector<286x32xf32>
    %c2_133 = arith.constant 2 : index
    %c0_134 = arith.constant 0 : index
    %129 = vector.load %arg8[%c2_133, %c0_134] : memref<324x32xf32, #tpu.memory_space<vmem>>, vector<286x32xf32>
    %130 = arith.truncf %129 : vector<286x32xf32> to vector<286x32xbf16>
    %c64_135 = arith.constant 64 : index
    %c0_136 = arith.constant 0 : index
    %131 = vector.load %arg4[%c64_135, %c0_136] : memref<288x32xbf16, #tpu.memory_space<vmem>>, vector<32x32xbf16>
    %cst_137 = arith.constant dense<0.000000e+00> : vector<286x32xf32>
    %132 = tpu.matmul %130, %131, %cst_137 {dimension_numbers = #tpu.dot_dimension_numbers<[1], [0], [0], [1], [0, 0, 1, 1], [], []>} : vector<286x32xbf16>, vector<32x32xbf16>, vector<286x32xf32> -> vector<286x32xf32>
    %133 = arith.addf %128, %132 : vector<286x32xf32>
    %c18_138 = arith.constant 18 : index
    %c0_139 = arith.constant 0 : index
    %134 = vector.load %arg8[%c18_138, %c0_139] : memref<324x32xf32, #tpu.memory_space<vmem>>, vector<286x32xf32>
    %135 = arith.truncf %134 : vector<286x32xf32> to vector<286x32xbf16>
    %c96_140 = arith.constant 96 : index
    %c0_141 = arith.constant 0 : index
    %136 = vector.load %arg4[%c96_140, %c0_141] : memref<288x32xbf16, #tpu.memory_space<vmem>>, vector<32x32xbf16>
    %cst_142 = arith.constant dense<0.000000e+00> : vector<286x32xf32>
    %137 = tpu.matmul %135, %136, %cst_142 {dimension_numbers = #tpu.dot_dimension_numbers<[1], [0], [0], [1], [0, 0, 1, 1], [], []>} : vector<286x32xbf16>, vector<32x32xbf16>, vector<286x32xf32> -> vector<286x32xf32>
    %138 = arith.addf %133, %137 : vector<286x32xf32>
    %c19_143 = arith.constant 19 : index
    %c0_144 = arith.constant 0 : index
    %139 = vector.load %arg8[%c19_143, %c0_144] : memref<324x32xf32, #tpu.memory_space<vmem>>, vector<286x32xf32>
    %140 = arith.truncf %139 : vector<286x32xf32> to vector<286x32xbf16>
    %c128_145 = arith.constant 128 : index
    %c0_146 = arith.constant 0 : index
    %141 = vector.load %arg4[%c128_145, %c0_146] : memref<288x32xbf16, #tpu.memory_space<vmem>>, vector<32x32xbf16>
    %cst_147 = arith.constant dense<0.000000e+00> : vector<286x32xf32>
    %142 = tpu.matmul %140, %141, %cst_147 {dimension_numbers = #tpu.dot_dimension_numbers<[1], [0], [0], [1], [0, 0, 1, 1], [], []>} : vector<286x32xbf16>, vector<32x32xbf16>, vector<286x32xf32> -> vector<286x32xf32>
    %143 = arith.addf %138, %142 : vector<286x32xf32>
    %c20_148 = arith.constant 20 : index
    %c0_149 = arith.constant 0 : index
    %144 = vector.load %arg8[%c20_148, %c0_149] : memref<324x32xf32, #tpu.memory_space<vmem>>, vector<286x32xf32>
    %145 = arith.truncf %144 : vector<286x32xf32> to vector<286x32xbf16>
    %c160_150 = arith.constant 160 : index
    %c0_151 = arith.constant 0 : index
    %146 = vector.load %arg4[%c160_150, %c0_151] : memref<288x32xbf16, #tpu.memory_space<vmem>>, vector<32x32xbf16>
    %cst_152 = arith.constant dense<0.000000e+00> : vector<286x32xf32>
    %147 = tpu.matmul %145, %146, %cst_152 {dimension_numbers = #tpu.dot_dimension_numbers<[1], [0], [0], [1], [0, 0, 1, 1], [], []>} : vector<286x32xbf16>, vector<32x32xbf16>, vector<286x32xf32> -> vector<286x32xf32>
    %148 = arith.addf %143, %147 : vector<286x32xf32>
    %c36_153 = arith.constant 36 : index
    %c0_154 = arith.constant 0 : index
    %149 = vector.load %arg8[%c36_153, %c0_154] : memref<324x32xf32, #tpu.memory_space<vmem>>, vector<286x32xf32>
    %150 = arith.truncf %149 : vector<286x32xf32> to vector<286x32xbf16>
    %c192_155 = arith.constant 192 : index
    %c0_156 = arith.constant 0 : index
    %151 = vector.load %arg4[%c192_155, %c0_156] : memref<288x32xbf16, #tpu.memory_space<vmem>>, vector<32x32xbf16>
    %cst_157 = arith.constant dense<0.000000e+00> : vector<286x32xf32>
    %152 = tpu.matmul %150, %151, %cst_157 {dimension_numbers = #tpu.dot_dimension_numbers<[1], [0], [0], [1], [0, 0, 1, 1], [], []>} : vector<286x32xbf16>, vector<32x32xbf16>, vector<286x32xf32> -> vector<286x32xf32>
    %153 = arith.addf %148, %152 : vector<286x32xf32>
    %c37_158 = arith.constant 37 : index
    %c0_159 = arith.constant 0 : index
    %154 = vector.load %arg8[%c37_158, %c0_159] : memref<324x32xf32, #tpu.memory_space<vmem>>, vector<286x32xf32>
    %155 = arith.truncf %154 : vector<286x32xf32> to vector<286x32xbf16>
    %c224_160 = arith.constant 224 : index
    %c0_161 = arith.constant 0 : index
    %156 = vector.load %arg4[%c224_160, %c0_161] : memref<288x32xbf16, #tpu.memory_space<vmem>>, vector<32x32xbf16>
    %cst_162 = arith.constant dense<0.000000e+00> : vector<286x32xf32>
    %157 = tpu.matmul %155, %156, %cst_162 {dimension_numbers = #tpu.dot_dimension_numbers<[1], [0], [0], [1], [0, 0, 1, 1], [], []>} : vector<286x32xbf16>, vector<32x32xbf16>, vector<286x32xf32> -> vector<286x32xf32>
    %158 = arith.addf %153, %157 : vector<286x32xf32>
    %c38_163 = arith.constant 38 : index
    %c0_164 = arith.constant 0 : index
    %159 = vector.load %arg8[%c38_163, %c0_164] : memref<324x32xf32, #tpu.memory_space<vmem>>, vector<286x32xf32>
    %160 = arith.truncf %159 : vector<286x32xf32> to vector<286x32xbf16>
    %c256_165 = arith.constant 256 : index
    %c0_166 = arith.constant 0 : index
    %161 = vector.load %arg4[%c256_165, %c0_166] : memref<288x32xbf16, #tpu.memory_space<vmem>>, vector<32x32xbf16>
    %cst_167 = arith.constant dense<0.000000e+00> : vector<286x32xf32>
    %162 = tpu.matmul %160, %161, %cst_167 {dimension_numbers = #tpu.dot_dimension_numbers<[1], [0], [0], [1], [0, 0, 1, 1], [], []>} : vector<286x32xbf16>, vector<32x32xbf16>, vector<286x32xf32> -> vector<286x32xf32>
    %163 = arith.addf %158, %162 : vector<286x32xf32>
    %c0_168 = arith.constant 0 : index
    %c0_169 = arith.constant 0 : index
    %164 = vector.load %arg5[%c0_168, %c0_169] : memref<1x32xf32, #tpu.memory_space<vmem>>, vector<1x32xf32>
    %165 = vector.broadcast %164 : vector<1x32xf32> to vector<286x32xf32>
    %166 = arith.addf %163, %165 : vector<286x32xf32>
    %167 = vector.extract_strided_slice %166 {offsets = [0, 0], sizes = [16, 32], strides = [1, 1]} : vector<286x32xf32> to vector<16x32xf32>
    %c0_170 = arith.constant 0 : index
    %c0_171 = arith.constant 0 : index
    %c0_172 = arith.constant 0 : index
    %c0_173 = arith.constant 0 : index
    %168 = vector.load %arg1[%c0_170, %c0_171, %c0_172, %c0_173] : memref<1x16x16x32xf32, #tpu.memory_space<vmem>>, vector<1x1x16x32xf32>
    %169 = vector.shape_cast %168 : vector<1x1x16x32xf32> to vector<16x32xf32>
    %170 = arith.addf %167, %169 : vector<16x32xf32>
    %cst_174 = arith.constant 0.000000e+00 : f32
    %171 = vector.broadcast %cst_174 : f32 to vector<16x32xf32>
    %172 = arith.maximumf %170, %171 : vector<16x32xf32>
    %c0_175 = arith.constant 0 : index
    %c0_176 = arith.constant 0 : index
    %c0_177 = arith.constant 0 : index
    %c0_178 = arith.constant 0 : index
    %173 = vector.load %arg7[%c0_175, %c0_176, %c0_177, %c0_178] : memref<1x16x16x32xf32, #tpu.memory_space<vmem>>, vector<1x1x16x32xf32>
    %174 = vector.shape_cast %173 : vector<1x1x16x32xf32> to vector<16x32xf32>
    %175 = vector.shape_cast %172 : vector<16x32xf32> to vector<1x1x16x32xf32>
    tpu.vector_store %arg7[%c0_175, %c0_176, %c0_177, %c0_178], %175 {strides = array<i32>} : memref<1x16x16x32xf32, #tpu.memory_space<vmem>>, vector<1x1x16x32xf32>,
    %176 = vector.extract_strided_slice %166 {offsets = [18, 0], sizes = [16, 32], strides = [1, 1]} : vector<286x32xf32> to vector<16x32xf32>
    %c0_179 = arith.constant 0 : index
    %c1_180 = arith.constant 1 : index
    %c0_181 = arith.constant 0 : index
    %c0_182 = arith.constant 0 : index
    %177 = vector.load %arg1[%c0_179, %c1_180, %c0_181, %c0_182] : memref<1x16x16x32xf32, #tpu.memory_space<vmem>>, vector<1x1x16x32xf32>
    %178 = vector.shape_cast %177 : vector<1x1x16x32xf32> to vector<16x32xf32>
    %179 = arith.addf %176, %178 : vector<16x32xf32>
    %cst_183 = arith.constant 0.000000e+00 : f32
    %180 = vector.broadcast %cst_183 : f32 to vector<16x32xf32>
    %181 = arith.maximumf %179, %180 : vector<16x32xf32>
    %c0_184 = arith.constant 0 : index
    %c1_185 = arith.constant 1 : index
    %c0_186 = arith.constant 0 : index
    %c0_187 = arith.constant 0 : index
    %182 = vector.load %arg7[%c0_184, %c1_185, %c0_186, %c0_187] : memref<1x16x16x32xf32, #tpu.memory_space<vmem>>, vector<1x1x16x32xf32>
    %183 = vector.shape_cast %182 : vector<1x1x16x32xf32> to vector<16x32xf32>
    %184 = vector.shape_cast %181 : vector<16x32xf32> to vector<1x1x16x32xf32>
    tpu.vector_store %arg7[%c0_184, %c1_185, %c0_186, %c0_187], %184 {strides = array<i32>} : memref<1x16x16x32xf32, #tpu.memory_space<vmem>>, vector<1x1x16x32xf32>,
    %185 = vector.extract_strided_slice %166 {offsets = [36, 0], sizes = [16, 32], strides = [1, 1]} : vector<286x32xf32> to vector<16x32xf32>
    %c0_188 = arith.constant 0 : index
    %c2_189 = arith.constant 2 : index
    %c0_190 = arith.constant 0 : index
    %c0_191 = arith.constant 0 : index
    %186 = vector.load %arg1[%c0_188, %c2_189, %c0_190, %c0_191] : memref<1x16x16x32xf32, #tpu.memory_space<vmem>>, vector<1x1x16x32xf32>
    %187 = vector.shape_cast %186 : vector<1x1x16x32xf32> to vector<16x32xf32>
    %188 = arith.addf %185, %187 : vector<16x32xf32>
    %cst_192 = arith.constant 0.000000e+00 : f32
    %189 = vector.broadcast %cst_192 : f32 to vector<16x32xf32>
    %190 = arith.maximumf %188, %189 : vector<16x32xf32>
    %c0_193 = arith.constant 0 : index
    %c2_194 = arith.constant 2 : index
    %c0_195 = arith.constant 0 : index
    %c0_196 = arith.constant 0 : index
    %191 = vector.load %arg7[%c0_193, %c2_194, %c0_195, %c0_196] : memref<1x16x16x32xf32, #tpu.memory_space<vmem>>, vector<1x1x16x32xf32>
    %192 = vector.shape_cast %191 : vector<1x1x16x32xf32> to vector<16x32xf32>
    %193 = vector.shape_cast %190 : vector<16x32xf32> to vector<1x1x16x32xf32>
    tpu.vector_store %arg7[%c0_193, %c2_194, %c0_195, %c0_196], %193 {strides = array<i32>} : memref<1x16x16x32xf32, #tpu.memory_space<vmem>>, vector<1x1x16x32xf32>,
    %194 = vector.extract_strided_slice %166 {offsets = [54, 0], sizes = [16, 32], strides = [1, 1]} : vector<286x32xf32> to vector<16x32xf32>
    %c0_197 = arith.constant 0 : index
    %c3_198 = arith.constant 3 : index
    %c0_199 = arith.constant 0 : index
    %c0_200 = arith.constant 0 : index
    %195 = vector.load %arg1[%c0_197, %c3_198, %c0_199, %c0_200] : memref<1x16x16x32xf32, #tpu.memory_space<vmem>>, vector<1x1x16x32xf32>
    %196 = vector.shape_cast %195 : vector<1x1x16x32xf32> to vector<16x32xf32>
    %197 = arith.addf %194, %196 : vector<16x32xf32>
    %cst_201 = arith.constant 0.000000e+00 : f32
    %198 = vector.broadcast %cst_201 : f32 to vector<16x32xf32>
    %199 = arith.maximumf %197, %198 : vector<16x32xf32>
    %c0_202 = arith.constant 0 : index
    %c3_203 = arith.constant 3 : index
    %c0_204 = arith.constant 0 : index
    %c0_205 = arith.constant 0 : index
    %200 = vector.load %arg7[%c0_202, %c3_203, %c0_204, %c0_205] : memref<1x16x16x32xf32, #tpu.memory_space<vmem>>, vector<1x1x16x32xf32>
    %201 = vector.shape_cast %200 : vector<1x1x16x32xf32> to vector<16x32xf32>
    %202 = vector.shape_cast %199 : vector<16x32xf32> to vector<1x1x16x32xf32>
    tpu.vector_store %arg7[%c0_202, %c3_203, %c0_204, %c0_205], %202 {strides = array<i32>} : memref<1x16x16x32xf32, #tpu.memory_space<vmem>>, vector<1x1x16x32xf32>,
    %203 = vector.extract_strided_slice %166 {offsets = [72, 0], sizes = [16, 32], strides = [1, 1]} : vector<286x32xf32> to vector<16x32xf32>
    %c0_206 = arith.constant 0 : index
    %c4_207 = arith.constant 4 : index
    %c0_208 = arith.constant 0 : index
    %c0_209 = arith.constant 0 : index
    %204 = vector.load %arg1[%c0_206, %c4_207, %c0_208, %c0_209] : memref<1x16x16x32xf32, #tpu.memory_space<vmem>>, vector<1x1x16x32xf32>
    %205 = vector.shape_cast %204 : vector<1x1x16x32xf32> to vector<16x32xf32>
    %206 = arith.addf %203, %205 : vector<16x32xf32>
    %cst_210 = arith.constant 0.000000e+00 : f32
    %207 = vector.broadcast %cst_210 : f32 to vector<16x32xf32>
    %208 = arith.maximumf %206, %207 : vector<16x32xf32>
    %c0_211 = arith.constant 0 : index
    %c4_212 = arith.constant 4 : index
    %c0_213 = arith.constant 0 : index
    %c0_214 = arith.constant 0 : index
    %209 = vector.load %arg7[%c0_211, %c4_212, %c0_213, %c0_214] : memref<1x16x16x32xf32, #tpu.memory_space<vmem>>, vector<1x1x16x32xf32>
    %210 = vector.shape_cast %209 : vector<1x1x16x32xf32> to vector<16x32xf32>
    %211 = vector.shape_cast %208 : vector<16x32xf32> to vector<1x1x16x32xf32>
    tpu.vector_store %arg7[%c0_211, %c4_212, %c0_213, %c0_214], %211 {strides = array<i32>} : memref<1x16x16x32xf32, #tpu.memory_space<vmem>>, vector<1x1x16x32xf32>,
    %212 = vector.extract_strided_slice %166 {offsets = [90, 0], sizes = [16, 32], strides = [1, 1]} : vector<286x32xf32> to vector<16x32xf32>
    %c0_215 = arith.constant 0 : index
    %c5_216 = arith.constant 5 : index
    %c0_217 = arith.constant 0 : index
    %c0_218 = arith.constant 0 : index
    %213 = vector.load %arg1[%c0_215, %c5_216, %c0_217, %c0_218] : memref<1x16x16x32xf32, #tpu.memory_space<vmem>>, vector<1x1x16x32xf32>
    %214 = vector.shape_cast %213 : vector<1x1x16x32xf32> to vector<16x32xf32>
    %215 = arith.addf %212, %214 : vector<16x32xf32>
    %cst_219 = arith.constant 0.000000e+00 : f32
    %216 = vector.broadcast %cst_219 : f32 to vector<16x32xf32>
    %217 = arith.maximumf %215, %216 : vector<16x32xf32>
    %c0_220 = arith.constant 0 : index
    %c5_221 = arith.constant 5 : index
    %c0_222 = arith.constant 0 : index
    %c0_223 = arith.constant 0 : index
    %218 = vector.load %arg7[%c0_220, %c5_221, %c0_222, %c0_223] : memref<1x16x16x32xf32, #tpu.memory_space<vmem>>, vector<1x1x16x32xf32>
    %219 = vector.shape_cast %218 : vector<1x1x16x32xf32> to vector<16x32xf32>
    %220 = vector.shape_cast %217 : vector<16x32xf32> to vector<1x1x16x32xf32>
    tpu.vector_store %arg7[%c0_220, %c5_221, %c0_222, %c0_223], %220 {strides = array<i32>} : memref<1x16x16x32xf32, #tpu.memory_space<vmem>>, vector<1x1x16x32xf32>,
    %221 = vector.extract_strided_slice %166 {offsets = [108, 0], sizes = [16, 32], strides = [1, 1]} : vector<286x32xf32> to vector<16x32xf32>
    %c0_224 = arith.constant 0 : index
    %c6_225 = arith.constant 6 : index
    %c0_226 = arith.constant 0 : index
    %c0_227 = arith.constant 0 : index
    %222 = vector.load %arg1[%c0_224, %c6_225, %c0_226, %c0_227] : memref<1x16x16x32xf32, #tpu.memory_space<vmem>>, vector<1x1x16x32xf32>
    %223 = vector.shape_cast %222 : vector<1x1x16x32xf32> to vector<16x32xf32>
    %224 = arith.addf %221, %223 : vector<16x32xf32>
    %cst_228 = arith.constant 0.000000e+00 : f32
    %225 = vector.broadcast %cst_228 : f32 to vector<16x32xf32>
    %226 = arith.maximumf %224, %225 : vector<16x32xf32>
    %c0_229 = arith.constant 0 : index
    %c6_230 = arith.constant 6 : index
    %c0_231 = arith.constant 0 : index
    %c0_232 = arith.constant 0 : index
    %227 = vector.load %arg7[%c0_229, %c6_230, %c0_231, %c0_232] : memref<1x16x16x32xf32, #tpu.memory_space<vmem>>, vector<1x1x16x32xf32>
    %228 = vector.shape_cast %227 : vector<1x1x16x32xf32> to vector<16x32xf32>
    %229 = vector.shape_cast %226 : vector<16x32xf32> to vector<1x1x16x32xf32>
    tpu.vector_store %arg7[%c0_229, %c6_230, %c0_231, %c0_232], %229 {strides = array<i32>} : memref<1x16x16x32xf32, #tpu.memory_space<vmem>>, vector<1x1x16x32xf32>,
    %230 = vector.extract_strided_slice %166 {offsets = [126, 0], sizes = [16, 32], strides = [1, 1]} : vector<286x32xf32> to vector<16x32xf32>
    %c0_233 = arith.constant 0 : index
    %c7_234 = arith.constant 7 : index
    %c0_235 = arith.constant 0 : index
    %c0_236 = arith.constant 0 : index
    %231 = vector.load %arg1[%c0_233, %c7_234, %c0_235, %c0_236] : memref<1x16x16x32xf32, #tpu.memory_space<vmem>>, vector<1x1x16x32xf32>
    %232 = vector.shape_cast %231 : vector<1x1x16x32xf32> to vector<16x32xf32>
    %233 = arith.addf %230, %232 : vector<16x32xf32>
    %cst_237 = arith.constant 0.000000e+00 : f32
    %234 = vector.broadcast %cst_237 : f32 to vector<16x32xf32>
    %235 = arith.maximumf %233, %234 : vector<16x32xf32>
    %c0_238 = arith.constant 0 : index
    %c7_239 = arith.constant 7 : index
    %c0_240 = arith.constant 0 : index
    %c0_241 = arith.constant 0 : index
    %236 = vector.load %arg7[%c0_238, %c7_239, %c0_240, %c0_241] : memref<1x16x16x32xf32, #tpu.memory_space<vmem>>, vector<1x1x16x32xf32>
    %237 = vector.shape_cast %236 : vector<1x1x16x32xf32> to vector<16x32xf32>
    %238 = vector.shape_cast %235 : vector<16x32xf32> to vector<1x1x16x32xf32>
    tpu.vector_store %arg7[%c0_238, %c7_239, %c0_240, %c0_241], %238 {strides = array<i32>} : memref<1x16x16x32xf32, #tpu.memory_space<vmem>>, vector<1x1x16x32xf32>,
    %239 = vector.extract_strided_slice %166 {offsets = [144, 0], sizes = [16, 32], strides = [1, 1]} : vector<286x32xf32> to vector<16x32xf32>
    %c0_242 = arith.constant 0 : index
    %c8_243 = arith.constant 8 : index
    %c0_244 = arith.constant 0 : index
    %c0_245 = arith.constant 0 : index
    %240 = vector.load %arg1[%c0_242, %c8_243, %c0_244, %c0_245] : memref<1x16x16x32xf32, #tpu.memory_space<vmem>>, vector<1x1x16x32xf32>
    %241 = vector.shape_cast %240 : vector<1x1x16x32xf32> to vector<16x32xf32>
    %242 = arith.addf %239, %241 : vector<16x32xf32>
    %cst_246 = arith.constant 0.000000e+00 : f32
    %243 = vector.broadcast %cst_246 : f32 to vector<16x32xf32>
    %244 = arith.maximumf %242, %243 : vector<16x32xf32>
    %c0_247 = arith.constant 0 : index
    %c8_248 = arith.constant 8 : index
    %c0_249 = arith.constant 0 : index
    %c0_250 = arith.constant 0 : index
    %245 = vector.load %arg7[%c0_247, %c8_248, %c0_249, %c0_250] : memref<1x16x16x32xf32, #tpu.memory_space<vmem>>, vector<1x1x16x32xf32>
    %246 = vector.shape_cast %245 : vector<1x1x16x32xf32> to vector<16x32xf32>
    %247 = vector.shape_cast %244 : vector<16x32xf32> to vector<1x1x16x32xf32>
    tpu.vector_store %arg7[%c0_247, %c8_248, %c0_249, %c0_250], %247 {strides = array<i32>} : memref<1x16x16x32xf32, #tpu.memory_space<vmem>>, vector<1x1x16x32xf32>,
    %248 = vector.extract_strided_slice %166 {offsets = [162, 0], sizes = [16, 32], strides = [1, 1]} : vector<286x32xf32> to vector<16x32xf32>
    %c0_251 = arith.constant 0 : index
    %c9_252 = arith.constant 9 : index
    %c0_253 = arith.constant 0 : index
    %c0_254 = arith.constant 0 : index
    %249 = vector.load %arg1[%c0_251, %c9_252, %c0_253, %c0_254] : memref<1x16x16x32xf32, #tpu.memory_space<vmem>>, vector<1x1x16x32xf32>
    %250 = vector.shape_cast %249 : vector<1x1x16x32xf32> to vector<16x32xf32>
    %251 = arith.addf %248, %250 : vector<16x32xf32>
    %cst_255 = arith.constant 0.000000e+00 : f32
    %252 = vector.broadcast %cst_255 : f32 to vector<16x32xf32>
    %253 = arith.maximumf %251, %252 : vector<16x32xf32>
    %c0_256 = arith.constant 0 : index
    %c9_257 = arith.constant 9 : index
    %c0_258 = arith.constant 0 : index
    %c0_259 = arith.constant 0 : index
    %254 = vector.load %arg7[%c0_256, %c9_257, %c0_258, %c0_259] : memref<1x16x16x32xf32, #tpu.memory_space<vmem>>, vector<1x1x16x32xf32>
    %255 = vector.shape_cast %254 : vector<1x1x16x32xf32> to vector<16x32xf32>
    %256 = vector.shape_cast %253 : vector<16x32xf32> to vector<1x1x16x32xf32>
    tpu.vector_store %arg7[%c0_256, %c9_257, %c0_258, %c0_259], %256 {strides = array<i32>} : memref<1x16x16x32xf32, #tpu.memory_space<vmem>>, vector<1x1x16x32xf32>,
    %257 = vector.extract_strided_slice %166 {offsets = [180, 0], sizes = [16, 32], strides = [1, 1]} : vector<286x32xf32> to vector<16x32xf32>
    %c0_260 = arith.constant 0 : index
    %c10_261 = arith.constant 10 : index
    %c0_262 = arith.constant 0 : index
    %c0_263 = arith.constant 0 : index
    %258 = vector.load %arg1[%c0_260, %c10_261, %c0_262, %c0_263] : memref<1x16x16x32xf32, #tpu.memory_space<vmem>>, vector<1x1x16x32xf32>
    %259 = vector.shape_cast %258 : vector<1x1x16x32xf32> to vector<16x32xf32>
    %260 = arith.addf %257, %259 : vector<16x32xf32>
    %cst_264 = arith.constant 0.000000e+00 : f32
    %261 = vector.broadcast %cst_264 : f32 to vector<16x32xf32>
    %262 = arith.maximumf %260, %261 : vector<16x32xf32>
    %c0_265 = arith.constant 0 : index
    %c10_266 = arith.constant 10 : index
    %c0_267 = arith.constant 0 : index
    %c0_268 = arith.constant 0 : index
    %263 = vector.load %arg7[%c0_265, %c10_266, %c0_267, %c0_268] : memref<1x16x16x32xf32, #tpu.memory_space<vmem>>, vector<1x1x16x32xf32>
    %264 = vector.shape_cast %263 : vector<1x1x16x32xf32> to vector<16x32xf32>
    %265 = vector.shape_cast %262 : vector<16x32xf32> to vector<1x1x16x32xf32>
    tpu.vector_store %arg7[%c0_265, %c10_266, %c0_267, %c0_268], %265 {strides = array<i32>} : memref<1x16x16x32xf32, #tpu.memory_space<vmem>>, vector<1x1x16x32xf32>,
    %266 = vector.extract_strided_slice %166 {offsets = [198, 0], sizes = [16, 32], strides = [1, 1]} : vector<286x32xf32> to vector<16x32xf32>
    %c0_269 = arith.constant 0 : index
    %c11_270 = arith.constant 11 : index
    %c0_271 = arith.constant 0 : index
    %c0_272 = arith.constant 0 : index
    %267 = vector.load %arg1[%c0_269, %c11_270, %c0_271, %c0_272] : memref<1x16x16x32xf32, #tpu.memory_space<vmem>>, vector<1x1x16x32xf32>
    %268 = vector.shape_cast %267 : vector<1x1x16x32xf32> to vector<16x32xf32>
    %269 = arith.addf %266, %268 : vector<16x32xf32>
    %cst_273 = arith.constant 0.000000e+00 : f32
    %270 = vector.broadcast %cst_273 : f32 to vector<16x32xf32>
    %271 = arith.maximumf %269, %270 : vector<16x32xf32>
    %c0_274 = arith.constant 0 : index
    %c11_275 = arith.constant 11 : index
    %c0_276 = arith.constant 0 : index
    %c0_277 = arith.constant 0 : index
    %272 = vector.load %arg7[%c0_274, %c11_275, %c0_276, %c0_277] : memref<1x16x16x32xf32, #tpu.memory_space<vmem>>, vector<1x1x16x32xf32>
    %273 = vector.shape_cast %272 : vector<1x1x16x32xf32> to vector<16x32xf32>
    %274 = vector.shape_cast %271 : vector<16x32xf32> to vector<1x1x16x32xf32>
    tpu.vector_store %arg7[%c0_274, %c11_275, %c0_276, %c0_277], %274 {strides = array<i32>} : memref<1x16x16x32xf32, #tpu.memory_space<vmem>>, vector<1x1x16x32xf32>,
    %275 = vector.extract_strided_slice %166 {offsets = [216, 0], sizes = [16, 32], strides = [1, 1]} : vector<286x32xf32> to vector<16x32xf32>
    %c0_278 = arith.constant 0 : index
    %c12_279 = arith.constant 12 : index
    %c0_280 = arith.constant 0 : index
    %c0_281 = arith.constant 0 : index
    %276 = vector.load %arg1[%c0_278, %c12_279, %c0_280, %c0_281] : memref<1x16x16x32xf32, #tpu.memory_space<vmem>>, vector<1x1x16x32xf32>
    %277 = vector.shape_cast %276 : vector<1x1x16x32xf32> to vector<16x32xf32>
    %278 = arith.addf %275, %277 : vector<16x32xf32>
    %cst_282 = arith.constant 0.000000e+00 : f32
    %279 = vector.broadcast %cst_282 : f32 to vector<16x32xf32>
    %280 = arith.maximumf %278, %279 : vector<16x32xf32>
    %c0_283 = arith.constant 0 : index
    %c12_284 = arith.constant 12 : index
    %c0_285 = arith.constant 0 : index
    %c0_286 = arith.constant 0 : index
    %281 = vector.load %arg7[%c0_283, %c12_284, %c0_285, %c0_286] : memref<1x16x16x32xf32, #tpu.memory_space<vmem>>, vector<1x1x16x32xf32>
    %282 = vector.shape_cast %281 : vector<1x1x16x32xf32> to vector<16x32xf32>
    %283 = vector.shape_cast %280 : vector<16x32xf32> to vector<1x1x16x32xf32>
    tpu.vector_store %arg7[%c0_283, %c12_284, %c0_285, %c0_286], %283 {strides = array<i32>} : memref<1x16x16x32xf32, #tpu.memory_space<vmem>>, vector<1x1x16x32xf32>,
    %284 = vector.extract_strided_slice %166 {offsets = [234, 0], sizes = [16, 32], strides = [1, 1]} : vector<286x32xf32> to vector<16x32xf32>
    %c0_287 = arith.constant 0 : index
    %c13_288 = arith.constant 13 : index
    %c0_289 = arith.constant 0 : index
    %c0_290 = arith.constant 0 : index
    %285 = vector.load %arg1[%c0_287, %c13_288, %c0_289, %c0_290] : memref<1x16x16x32xf32, #tpu.memory_space<vmem>>, vector<1x1x16x32xf32>
    %286 = vector.shape_cast %285 : vector<1x1x16x32xf32> to vector<16x32xf32>
    %287 = arith.addf %284, %286 : vector<16x32xf32>
    %cst_291 = arith.constant 0.000000e+00 : f32
    %288 = vector.broadcast %cst_291 : f32 to vector<16x32xf32>
    %289 = arith.maximumf %287, %288 : vector<16x32xf32>
    %c0_292 = arith.constant 0 : index
    %c13_293 = arith.constant 13 : index
    %c0_294 = arith.constant 0 : index
    %c0_295 = arith.constant 0 : index
    %290 = vector.load %arg7[%c0_292, %c13_293, %c0_294, %c0_295] : memref<1x16x16x32xf32, #tpu.memory_space<vmem>>, vector<1x1x16x32xf32>
    %291 = vector.shape_cast %290 : vector<1x1x16x32xf32> to vector<16x32xf32>
    %292 = vector.shape_cast %289 : vector<16x32xf32> to vector<1x1x16x32xf32>
    tpu.vector_store %arg7[%c0_292, %c13_293, %c0_294, %c0_295], %292 {strides = array<i32>} : memref<1x16x16x32xf32, #tpu.memory_space<vmem>>, vector<1x1x16x32xf32>,
    %293 = vector.extract_strided_slice %166 {offsets = [252, 0], sizes = [16, 32], strides = [1, 1]} : vector<286x32xf32> to vector<16x32xf32>
    %c0_296 = arith.constant 0 : index
    %c14_297 = arith.constant 14 : index
    %c0_298 = arith.constant 0 : index
    %c0_299 = arith.constant 0 : index
    %294 = vector.load %arg1[%c0_296, %c14_297, %c0_298, %c0_299] : memref<1x16x16x32xf32, #tpu.memory_space<vmem>>, vector<1x1x16x32xf32>
    %295 = vector.shape_cast %294 : vector<1x1x16x32xf32> to vector<16x32xf32>
    %296 = arith.addf %293, %295 : vector<16x32xf32>
    %cst_300 = arith.constant 0.000000e+00 : f32
    %297 = vector.broadcast %cst_300 : f32 to vector<16x32xf32>
    %298 = arith.maximumf %296, %297 : vector<16x32xf32>
    %c0_301 = arith.constant 0 : index
    %c14_302 = arith.constant 14 : index
    %c0_303 = arith.constant 0 : index
    %c0_304 = arith.constant 0 : index
    %299 = vector.load %arg7[%c0_301, %c14_302, %c0_303, %c0_304] : memref<1x16x16x32xf32, #tpu.memory_space<vmem>>, vector<1x1x16x32xf32>
    %300 = vector.shape_cast %299 : vector<1x1x16x32xf32> to vector<16x32xf32>
    %301 = vector.shape_cast %298 : vector<16x32xf32> to vector<1x1x16x32xf32>
    tpu.vector_store %arg7[%c0_301, %c14_302, %c0_303, %c0_304], %301 {strides = array<i32>} : memref<1x16x16x32xf32, #tpu.memory_space<vmem>>, vector<1x1x16x32xf32>,
    %302 = vector.extract_strided_slice %166 {offsets = [270, 0], sizes = [16, 32], strides = [1, 1]} : vector<286x32xf32> to vector<16x32xf32>
    %c0_305 = arith.constant 0 : index
    %c15_306 = arith.constant 15 : index
    %c0_307 = arith.constant 0 : index
    %c0_308 = arith.constant 0 : index
    %303 = vector.load %arg1[%c0_305, %c15_306, %c0_307, %c0_308] : memref<1x16x16x32xf32, #tpu.memory_space<vmem>>, vector<1x1x16x32xf32>
    %304 = vector.shape_cast %303 : vector<1x1x16x32xf32> to vector<16x32xf32>
    %305 = arith.addf %302, %304 : vector<16x32xf32>
    %cst_309 = arith.constant 0.000000e+00 : f32
    %306 = vector.broadcast %cst_309 : f32 to vector<16x32xf32>
    %307 = arith.maximumf %305, %306 : vector<16x32xf32>
    %c0_310 = arith.constant 0 : index
    %c15_311 = arith.constant 15 : index
    %c0_312 = arith.constant 0 : index
    %c0_313 = arith.constant 0 : index
    %308 = vector.load %arg7[%c0_310, %c15_311, %c0_312, %c0_313] : memref<1x16x16x32xf32, #tpu.memory_space<vmem>>, vector<1x1x16x32xf32>
    %309 = vector.shape_cast %308 : vector<1x1x16x32xf32> to vector<16x32xf32>
    %310 = vector.shape_cast %307 : vector<16x32xf32> to vector<1x1x16x32xf32>
    tpu.vector_store %arg7[%c0_310, %c15_311, %c0_312, %c0_313], %310 {strides = array<i32>} : memref<1x16x16x32xf32, #tpu.memory_space<vmem>>, vector<1x1x16x32xf32>,
    return
  }
  func.func @transform_0(%arg0: i32) -> (i32, i32, i32, i32) {
    %c0_i32 = arith.constant 0 : i32
    %c0_i32_0 = arith.constant 0 : i32
    %c0_i32_1 = arith.constant 0 : i32
    %c0_i32_2 = arith.constant 0 : i32
    return %arg0, %c0_i32, %c0_i32_0, %c0_i32_1 : i32, i32, i32, i32
  }
  func.func @transform_1(%arg0: i32) -> (i32, i32) {
    %c0_i32 = arith.constant 0 : i32
    %c0_i32_0 = arith.constant 0 : i32
    %c0_i32_1 = arith.constant 0 : i32
    return %c0_i32, %c0_i32_0 : i32, i32
  }
  func.func @transform_2(%arg0: i32) -> (i32, i32) {
    %c0_i32 = arith.constant 0 : i32
    %c0_i32_0 = arith.constant 0 : i32
    %c0_i32_1 = arith.constant 0 : i32
    return %c0_i32, %c0_i32_0 : i32, i32
  }
  func.func @transform_3(%arg0: i32) -> (i32, i32) {
    %c0_i32 = arith.constant 0 : i32
    %c0_i32_0 = arith.constant 0 : i32
    %c0_i32_1 = arith.constant 0 : i32
    return %c0_i32, %c0_i32_0 : i32, i32
  }
  func.func @transform_4(%arg0: i32) -> (i32, i32) {
    %c0_i32 = arith.constant 0 : i32
    %c0_i32_0 = arith.constant 0 : i32
    %c0_i32_1 = arith.constant 0 : i32
    return %c0_i32, %c0_i32_0 : i32, i32
  }
  func.func @transform_5(%arg0: i32) -> (i32, i32) {
    %c0_i32 = arith.constant 0 : i32
    %c0_i32_0 = arith.constant 0 : i32
    %c0_i32_1 = arith.constant 0 : i32
    return %c0_i32, %c0_i32_0 : i32, i32
  }
  func.func @transform_6(%arg0: i32) -> (i32, i32, i32, i32) {
    %c0_i32 = arith.constant 0 : i32
    %c0_i32_0 = arith.constant 0 : i32
    %c0_i32_1 = arith.constant 0 : i32
    %c0_i32_2 = arith.constant 0 : i32
    return %arg0, %c0_i32, %c0_i32_0, %c0_i32_1 : i32, i32, i32, i32
  }
}

</mosaic_0001>

<bundles_post_ra>
// kernel: resnet_block_forward.1
= control target key start
LH: loop header
LB: loop body
LE: loop exit
PB: predicated region body
PF: predicated region fallthrough
CT: control target
= control target key end

     0   :  { %11 = vsyncpa [#allocation4], 0  ;;  %s10491_s0 = inlined_call_operand.vmem [shape: f32[2,16,16,32], index: 0, kind: input, shape index: {}]   ;;  %s10492_s1 = inlined_call_operand.vmem [shape: bf16[288,32], index: 1, kind: input, shape index: {}]   ;;  %s10493_s2 = inlined_call_operand.vmem [shape: f32[1,32], index: 2, kind: input, shape index: {}]   ;;  %s10494_s3 = inlined_call_operand.vmem [shape: bf16[288,32], index: 3, kind: input, shape index: {}]   ;;  %s10495_s4 = inlined_call_operand.vmem [shape: f32[1,32], index: 4, kind: input, shape index: {}]   ;;  %s10496_s5 = inlined_call_operand.vmem [shape: f32[286,1], index: 5, kind: input, shape index: {}]   ;;  %s10497_s6 = inlined_call_operand.hbm [shape: f32[2,16,16,32], index: 6, kind: output, shape index: {}]  }
   0x1   :  { %13 = vsyncpa [#allocation4 + $0x1], 0  ;;  %s9364_s21 = smov 0   ;;  %s9366_s22 = smov 0  }
   0x2   :  { %s9368_s23 = smov 0   ;;  %s9370_s24 = smov 0  }
   0x3 LB: > { %s9385_s25 = sadd.s32 4294967295, %s9322_s24   ;;  %s7045_s26 = sadd.s32 4294967294, %s9322_s24   ;;  %s9322_s24 = sphi %s9370_s24, %s10503_s24   ;;  %s9318_s23 = sphi %s9368_s23, %s10502_s23   ;;  %s9314_s22 = sphi %s9366_s22, %s10501_s22   ;;  %s9310_s21 = sphi %s9364_s21, %s10500_s21  }
   0x4   : > { %s9389_s27 = sadd.s32 1, %s9322_s24   ;;  %s157_s28 = sadd.s32 1, %s9318_s23 }
   0x5   : > { %s154_s29 = ssub.s32 %s9322_s24, %s9389_s27  ;;  %p167_p0 = scmp.ne.s32.totalorder %s9318_s23, %s9314_s22 }
   0x6   : > { %p155_p1 = scmp.eq.s32.totalorder %s154_s29, 0  ;;  %p168_p2 = scmp.eq.s32.totalorder %s9385_s25, 1 }
   0x7   : > { %p173_p3 = scmp.ne.s32.totalorder %s9314_s22, %s9310_s21  ;;  %p174_p4 = scmp.eq.s32.totalorder %s7045_s26, 1 }
   0x8   : > { %s9400_s30 = scalar_select %p155_p1, %s9318_s23, %s157_s28  }
   0x9   : > { %p9402_p5 = por %p168_p2, %p167_p0  ;;  %p9406_p6 = por %p174_p4, %p173_p3 }
   0xa   : > { %p7048_p7 = scmp.ge.s32.totalorder %s9322_s24, 1  ;;  %p215_p8 = scmp.lt.s32.totalorder %s9322_s24, 3 }
   0xc   : > { %p216_p9 = pnand %p7048_p7, %p215_p8 }
   0xd   : > { %v9224_v0 = vld [vmem:[%s10492_s1 + $0x10] sm:$0xff] (!%p216_p9)   ;;  %vm251_vm0 = vcmask (!%p216_p9), 261120   ;;  %v9225_v1 = vld [vmem:[%s10492_s1 + $0x18] sm:$0xff] (!%p216_p9)   ;;  %v9324_v2 = vmov (!%p216_p9), 0.0   ;;  %vm254_vm1 = vcmask (!%p216_p9), 256000   ;;  %p245_p10 = scmp.lt.s32.totalorder (!%p216_p9), %s9385_s25, 1 }
   0xe   : > { %219 = sbr.rel (%p216_p9) target bundleno = 1722 (0x6ba), region = 44  ;;  %7883 = vmatprep.subr.bf16.mxu0 (!%p216_p9), %v9224_v0  ;;  %252 = vst.msk [vmem:[#allocation2] sm:$0xff] (!%p216_p9), %vm251_vm0, %v9324_v2  ;;  %253 = vst.msk [vmem:[#allocation2 + $0x8] sm:$0xff] (!%p216_p9), %vm251_vm0, %v9324_v2  ;;  %vm256_vm2 = vcmask (!%p216_p9), 254976   ;;  %v9426_v3 = vld [vmem:[%s10492_s1] sm:$0xff] (!%p216_p9)   ;;  %v9227_v26 = vld [vmem:[%s10492_s1 + $0x8] sm:$0xff] (!%p216_p9)  }
   0xf   : > { %272 = vst.msk [vmem:[#allocation2 + $0x131] sm:$0xff] (!%p216_p9), %vm251_vm0, %v9324_v2  ;;  %273 = vst.msk [vmem:[#allocation2 + $0x139] sm:$0xff] (!%p216_p9), %vm251_vm0, %v9324_v2  ;;  %7884 = vmatpush3.bf16.msra.mxu0 (!%p216_p9), %v9224_v0  ;;  %v9510_v42 = vld [vmem:[%s10492_s1 + $0x20] sm:$0xff] (!%p216_p9)   ;;  %vm3681_vm3 = vcmask (!%p216_p9), 259072   ;;  %s242_s20 = sand.u32 (!%p216_p9), 1, %s9314_s22   ;;  %vm6699_vm4 = vcmask (!%p216_p9), 1041408  }
  0x10   : > { %255 = vst.msk [vmem:[#allocation2 + $0x10] sm:$0x7] (!%p216_p9), %vm254_vm1, %v9324_v2  ;;  %274 = vst.msk [vmem:[#allocation2 + $0x141] sm:$0x7] (!%p216_p9), %vm254_vm1, %v9324_v2  ;;  %7885 = vmatprep.subr.bf16.mxu0 (!%p216_p9), %v9225_v1  ;;  %s7049_s29 = sshll.u32 (!%p216_p9), %s242_s20, 8  ;;  %vm6713_vm5 = vcmask (!%p216_p9), 261122  }
  0x11   : > { %257 = vst.msk [vmem:[#allocation2 + $0x23] sm:$0x3] (!%p216_p9), %vm256_vm2, %v9324_v2  ;;  %258 = vst.msk [vmem:[#allocation2 + $0x35] sm:$0x3] (!%p216_p9), %vm256_vm2, %v9324_v2  ;;  %s10282_s9 = scalar_lea.vmem (!%p216_p9), [#allocation3], %s7049_s29  ;;  %vm6744_vm6 = vcmask (!%p216_p9), 1045504  }
  0x12   : > { %259 = vst.msk [vmem:[#allocation2 + $0x47] sm:$0x3] (!%p216_p9), %vm256_vm2, %v9324_v2  ;;  %260 = vst.msk [vmem:[#allocation2 + $0x59] sm:$0x3] (!%p216_p9), %vm256_vm2, %v9324_v2  ;;  %vm6721_vm7 = vcmask (!%p216_p9), 1043456   ;;  %vm6738_vm8 = vcmask (!%p216_p9), 257024  }
  0x13   : > { %261 = vst.msk [vmem:[#allocation2 + $0x6b] sm:$0x3] (!%p216_p9), %vm256_vm2, %v9324_v2  ;;  %262 = vst.msk [vmem:[#allocation2 + $0x7d] sm:$0x3] (!%p216_p9), %vm256_vm2, %v9324_v2  ;;  %7886 = vmatpush3.bf16.msra.mxu0 (!%p216_p9), %v9225_v1  ;;  %vm6758_vm9 = vcmask (!%p216_p9), 261126   ;;  %vm6735_vm10 = vcmask (!%p216_p9), 261124  }
  0x14   : > { %263 = vst.msk [vmem:[#allocation2 + $0x8f] sm:$0x3] (!%p216_p9), %vm256_vm2, %v9324_v2  ;;  %264 = vst.msk [vmem:[#allocation2 + $0xa1] sm:$0x3] (!%p216_p9), %vm256_vm2, %v9324_v2  ;;  %7923 = vmatprep.subr.bf16.mxu0 (!%p216_p9), %v9426_v3  ;;  %s6983_s10 = sshll.u32 (!%p216_p9), %s10282_s9, 4  ;;  %s10438_s10 = int_to_ptr.vmem [resolvable:$true] %s6983_s10 }
  0x15   : > { %265 = vst.msk [vmem:[#allocation2 + $0xb3] sm:$0x3] %vm256_vm2, %v9324_v2  ;;  %266 = vst.msk [vmem:[#allocation2 + $0xc5] sm:$0x3] %vm256_vm2, %v9324_v2  ;;  %s246_s15 = scalar_select %p245_p10, %s9385_s25, 1  ;;  %v412_v4 = vld [vmem:[#allocation2 + $0x1] sm:$0xff] }
  0x16   : > { %267 = vst.msk [vmem:[#allocation2 + $0xd7] sm:$0x3] %vm256_vm2, %v9324_v2  ;;  %268 = vst.msk [vmem:[#allocation2 + $0xe9] sm:$0x3] %vm256_vm2, %v9324_v2  ;;  %s9260_s14 = scalar_lea.vmem %s10438_s10, 4096 }
  0x17   : > { %269 = vst.msk [vmem:[#allocation2 + $0xfb] sm:$0x3] %vm256_vm2, %v9324_v2  ;;  %270 = vst.msk [vmem:[#allocation2 + $0x10d] sm:$0x3] %vm256_vm2, %v9324_v2  ;;  %s7521_s16 = sshll.u32 %s246_s15, 8  ;;  %v413_v7 = vld [vmem:[#allocation2 + $0x9] sm:$0xff]  ;;  %p9261_p11 = scmp.ne.s32.totalorder %s10438_s10, %s9260_s14 }
  0x18   : > { %271 = vst.msk [vmem:[#allocation2 + $0x11f] sm:$0x3] %vm256_vm2, %v9324_v2  ;;  %s9450_s19 = scalar_lea.vmem %s10491_s0, %s7521_s16  ;;  %v448_v10 = vpack.c.bf16 %v413_v7, %v412_v4  ;;  %s9326_s15 = smov [#allocation3]  }
  0x19   : > { %v275_v5 = vld [vmem:[%s9450_s19] sm:$0xff]  ;;  %v276_v6 = vld [vmem:[%s9450_s19 + $0x8] sm:$0xff]  ;;  %v7052_v8 = vld [vmem:[%s9450_s19 + $0x10] sm:$0xff]  ;;  %p9262_p12 = pnand %p9261_p11, %p9402_p5  ;;  %s9264_s16 = sshll.u32 %s9326_s15, 4  ;;  %s9265_s16 = int_to_ptr.vmem [resolvable:$false] %s9264_s16 }
  0x1a   : > { %277 = vst.msk [vmem:[#allocation2 + $0x13] sm:$0xff] %vm251_vm0, %v275_v5  ;;  %278 = vst.msk [vmem:[#allocation2 + $0x1b] sm:$0xff] %vm251_vm0, %v276_v6  ;;  %v7053_v9 = vld [vmem:[%s9450_s19 + $0x18] sm:$0xff]  ;;  %v7054_v11 = vld [vmem:[%s9450_s19 + $0x20] sm:$0xff]  ;;  %7887 = vmatprep.mubr.msk.bf16.mxu0 %vm251_vm0, %v448_v10  ;;  %s9266_s17 = scalar_lea.vmem %s9265_s16, 8192  ;;  %p9267_p0 = scmp.lt.s32.totalorder %s10438_s10, %s9265_s16 }
  0x1b   : > { %282 = vst.msk [vmem:[#allocation2 + $0x25] sm:$0xff] %vm251_vm0, %v7052_v8  ;;  %283 = vst.msk [vmem:[#allocation2 + $0x2d] sm:$0xff] %vm251_vm0, %v7053_v9  ;;  %v7055_v12 = vld [vmem:[%s9450_s19 + $0x28] sm:$0xff]  ;;  %v7056_v13 = vld [vmem:[%s9450_s19 + $0x30] sm:$0xff]  ;;  %p9263_p13 = pneg %p9262_p12  ;;  %p9268_p1 = scmp.lt.s32.totalorder %s9266_s17, %s9260_s14 }
  0x1c   : > { %287 = vst.msk [vmem:[#allocation2 + $0x37] sm:$0xff] %vm251_vm0, %v7054_v11  ;;  %288 = vst.msk [vmem:[#allocation2 + $0x3f] sm:$0xff] %vm251_vm0, %v7055_v12  ;;  %v7057_v14 = vld [vmem:[%s9450_s19 + $0x38] sm:$0xff]  ;;  %v7058_v15 = vld [vmem:[%s9450_s19 + $0x40] sm:$0xff] }
  0x1d   : > { %292 = vst.msk [vmem:[#allocation2 + $0x49] sm:$0xff] %vm251_vm0, %v7056_v13  ;;  %v7059_v16 = vld [vmem:[%s9450_s19 + $0x48] sm:$0xff]  ;;  %293 = vst.msk [vmem:[#allocation2 + $0x51] sm:$0xff] %vm251_vm0, %v7057_v14  ;;  %v7060_v17 = vld [vmem:[%s9450_s19 + $0x50] sm:$0xff]  ;;  %p9269_p2 = por %p9268_p1, %p9267_p0 }
  0x1e   : > { %297 = vst.msk [vmem:[#allocation2 + $0x5b] sm:$0xff] %vm251_vm0, %v7058_v15  ;;  %298 = vst.msk [vmem:[#allocation2 + $0x63] sm:$0xff] %vm251_vm0, %v7059_v16  ;;  %v7061_v18 = vld [vmem:[%s9450_s19 + $0x58] sm:$0xff]  ;;  %v7062_v19 = vld [vmem:[%s9450_s19 + $0x60] sm:$0xff] }
  0x1f   : > { %302 = vst.msk [vmem:[#allocation2 + $0x6d] sm:$0xff] %vm251_vm0, %v7060_v17  ;;  %303 = vst.msk [vmem:[#allocation2 + $0x75] sm:$0xff] %vm251_vm0, %v7061_v18  ;;  %v7063_v20 = vld [vmem:[%s9450_s19 + $0x68] sm:$0xff]  ;;  %v7064_v21 = vld [vmem:[%s9450_s19 + $0x70] sm:$0xff]  ;;  %p9270_p3 = pnand %p9269_p2, %p9263_p13 }
  0x20   : > { %307 = vst.msk [vmem:[#allocation2 + $0x7f] sm:$0xff] %vm251_vm0, %v7062_v19  ;;  %v7065_v22 = vld [vmem:[%s9450_s19 + $0x78] sm:$0xff]  ;;  %308 = vst.msk [vmem:[#allocation2 + $0x87] sm:$0xff] %vm251_vm0, %v7063_v20  ;;  %v7066_v23 = vld [vmem:[%s9450_s19 + $0x80] sm:$0xff] }
  0x21   : > { %312 = vst.msk [vmem:[#allocation2 + $0x91] sm:$0xff] %vm251_vm0, %v7064_v21  ;;  %313 = vst.msk [vmem:[#allocation2 + $0x99] sm:$0xff] %vm251_vm0, %v7065_v22  ;;  %v7067_v24 = vld [vmem:[%s9450_s19 + $0x88] sm:$0xff]  ;;  %v7068_v25 = vld [vmem:[%s9450_s19 + $0x90] sm:$0xff] }
  0x22   : > { %317 = vst.msk [vmem:[#allocation2 + $0xa3] sm:$0xff] %vm251_vm0, %v7066_v23  ;;  %318 = vst.msk [vmem:[#allocation2 + $0xab] sm:$0xff] %vm251_vm0, %v7067_v24  ;;  %v7069_v27 = vld [vmem:[%s9450_s19 + $0x98] sm:$0xff]  ;;  %v7070_v28 = vld [vmem:[%s9450_s19 + $0xa0] sm:$0xff] }
  0x23   : > { %322 = vst.msk [vmem:[#allocation2 + $0xb5] sm:$0xff] %vm251_vm0, %v7068_v25  ;;  %v7071_v29 = vld [vmem:[%s9450_s19 + $0xa8] sm:$0xff]  ;;  %v414_v30 = vld [vmem:[#allocation2 + $0x11] sm:$0xff]  ;;  %v415_v31 = vld [vmem:[#allocation2 + $0x19] sm:$0xff] }
  0x24   : > { %323 = vst.msk [vmem:[#allocation2 + $0xbd] sm:$0xff] %vm251_vm0, %v7069_v27  ;;  %327 = vst.msk [vmem:[#allocation2 + $0xc7] sm:$0xff] %vm251_vm0, %v7070_v28  ;;  %v7072_v32 = vld [vmem:[%s9450_s19 + $0xb0] sm:$0xff]  ;;  %v449_v33 = vpack.c.bf16 %v415_v31, %v414_v30  ;;  %v416_v34 = vld [vmem:[#allocation2 + $0x21] sm:$0xff] }
  0x25   : > { %328 = vst.msk [vmem:[#allocation2 + $0xcf] sm:$0xff] %vm251_vm0, %v7071_v29  ;;  %v417_v35 = vld [vmem:[#allocation2 + $0x29] sm:$0xff]  ;;  %332 = vst.msk [vmem:[#allocation2 + $0xd9] sm:$0xff] %vm251_vm0, %v7072_v32  ;;  %v7073_v36 = vld [vmem:[%s9450_s19 + $0xb8] sm:$0xff] }
  0x26   : > { %v450_v37 = vpack.c.bf16 %v417_v35, %v416_v34  ;;  %333 = vst.msk [vmem:[#allocation2 + $0xe1] sm:$0xff] %vm251_vm0, %v7073_v36  ;;  %7888 = vmatmul.mubr.msk.bf16.vlgmr.msra.gmra.mrb[0].mxu0 %vm251_vm0, %v449_v33  ;;  %v418_v38 = vld [vmem:[#allocation2 + $0x31] sm:$0xff]  ;;  %v419_v39 = vld [vmem:[#allocation2 + $0x39] sm:$0xff]  ;;  %v420_v40 = vld [vmem:[#allocation2 + $0x41] sm:$0xff] }
  0x27   : > { %7924 = vmatpush3.bf16.msra.mxu0 %v9426_v3  ;;  %v421_v41 = vld [vmem:[#allocation2 + $0x49] sm:$0xff]  ;;  %v451_v43 = vpack.c.bf16 %v419_v39, %v418_v38  ;;  %v7074_v45 = vld [vmem:[%s9450_s19 + $0xc0] sm:$0xff]  ;;  %v7077_v48 = vld [vmem:[%s9450_s19 + $0xd8] sm:$0xff] }
  0x28   : > { %7891 = vmatprep.mubr.msk.bf16.mxu0 %vm251_vm0, %v450_v37  ;;  %7925 = vmatprep.subr.bf16.mxu0 %v9227_v26  ;;  %v452_v44 = vpack.c.bf16 %v421_v41, %v420_v40  ;;  %337 = vst.msk [vmem:[#allocation2 + $0xeb] sm:$0xff] %vm251_vm0, %v7074_v45  ;;  %v7075_v46 = vld [vmem:[%s9450_s19 + $0xc8] sm:$0xff]  ;;  %v7076_v47 = vld [vmem:[%s9450_s19 + $0xd0] sm:$0xff]  ;;  %343 = vst.msk [vmem:[#allocation2 + $0x105] sm:$0xff] %vm251_vm0, %v7077_v48 }
  0x29   : > { %338 = vst.msk [vmem:[#allocation2 + $0xf3] sm:$0xff] %vm251_vm0, %v7075_v46  ;;  %342 = vst.msk [vmem:[#allocation2 + $0xfd] sm:$0xff] %vm251_vm0, %v7076_v47  ;;  %v7078_v49 = vld [vmem:[%s9450_s19 + $0xe0] sm:$0xff]  ;;  %v7079_v50 = vld [vmem:[%s9450_s19 + $0xe8] sm:$0xff] }
  0x2a   : > { %v422_v51 = vld [vmem:[#allocation2 + $0x51] sm:$0xff]  ;;  %v423_v52 = vld [vmem:[#allocation2 + $0x59] sm:$0xff]  ;;  %347 = vst.msk [vmem:[#allocation2 + $0x10f] sm:$0xff] %vm251_vm0, %v7078_v49  ;;  %348 = vst.msk [vmem:[#allocation2 + $0x117] sm:$0xff] %vm251_vm0, %v7079_v50 }
  0x2b   : > { %7926 = vmatpush3.bf16.msra.mxu0 %v9227_v26  ;;  %v424_v53 = vld [vmem:[#allocation2 + $0x61] sm:$0xff]  ;;  %v425_v54 = vld [vmem:[#allocation2 + $0x69] sm:$0xff]  ;;  %v453_v55 = vpack.c.bf16 %v423_v52, %v422_v51  ;;  %v426_v57 = vld [vmem:[#allocation2 + $0x71] sm:$0xff] }
  0x2c   : > { %7963 = vmatprep.subr.bf16.mxu0 %v9510_v42  ;;  %v454_v56 = vpack.c.bf16 %v425_v54, %v424_v53  ;;  %v427_v58 = vld [vmem:[#allocation2 + $0x79] sm:$0xff]  ;;  %v428_v59 = vld [vmem:[#allocation2 + $0x81] sm:$0xff]  ;;  %v429_v60 = vld [vmem:[#allocation2 + $0x89] sm:$0xff] }
  0x2d   : > { %v455_v61 = vpack.c.bf16 %v427_v58, %v426_v57  ;;  %v456_v62 = vpack.c.bf16 %v429_v60, %v428_v59  ;;  %v430_v63 = vld [vmem:[#allocation2 + $0x91] sm:$0xff]  ;;  %v431_v0 = vld [vmem:[#allocation2 + $0x99] sm:$0xff]  ;;  %v432_v1 = vld [vmem:[#allocation2 + $0xa1] sm:$0xff] }
  0x2e   : > { %7892 = vmatmul.mubr.msk.bf16.gmra.mrb[4].mxu0 %vm251_vm0, %v451_v43  ;;  %v433_v2 = vld [vmem:[#allocation2 + $0xa9] sm:$0xff]  ;;  %v457_v3 = vpack.c.bf16 %v431_v0, %v430_v63  ;;  %v434_v5 = vld [vmem:[#allocation2 + $0xb1] sm:$0xff]  ;;  %v435_v6 = vld [vmem:[#allocation2 + $0xb9] sm:$0xff] }
  0x2f   : > { %7895 = vmatprep.mubr.msk.bf16.mxu0 %vm251_vm0, %v452_v44  ;;  %v458_v4 = vpack.c.bf16 %v433_v2, %v432_v1  ;;  %v436_v7 = vld [vmem:[#allocation2 + $0xc1] sm:$0xff]  ;;  %v437_v8 = vld [vmem:[#allocation2 + $0xc9] sm:$0xff]  ;;  %v459_v9 = vpack.c.bf16 %v435_v6, %v434_v5  ;;  %v438_v11 = vld [vmem:[#allocation2 + $0xd1] sm:$0xff] }
  0x30   : > { %v460_v10 = vpack.c.bf16 %v437_v8, %v436_v7  ;;  %v439_v12 = vld [vmem:[#allocation2 + $0xd9] sm:$0xff]  ;;  %v440_v13 = vld [vmem:[#allocation2 + $0xe1] sm:$0xff]  ;;  %v441_v14 = vld [vmem:[#allocation2 + $0xe9] sm:$0xff] }
  0x31   : > { %v461_v15 = vpack.c.bf16 %v439_v12, %v438_v11  ;;  %v462_v16 = vpack.c.bf16 %v441_v14, %v440_v13  ;;  %v442_v17 = vld [vmem:[#allocation2 + $0xf1] sm:$0xff]  ;;  %v443_v18 = vld [vmem:[#allocation2 + $0xf9] sm:$0xff]  ;;  %v444_v19 = vld [vmem:[#allocation2 + $0x101] sm:$0xff] }
  0x32   : > { %v445_v20 = vld [vmem:[#allocation2 + $0x109] sm:$0xff]  ;;  %v463_v21 = vpack.c.bf16 %v443_v18, %v442_v17  ;;  %v446_v23 = vld [vmem:[#allocation2 + $0x111] sm:$0xff]  ;;  %v447_v24 = vld [vmem:[#allocation2 + $0x119] sm:$0x3f] }
  0x33   : > { %v464_v22 = vpack.c.bf16 %v445_v20, %v444_v19  ;;  %v354_v25 = vld [vmem:[#allocation2] sm:$0xff]  ;;  %v355_v26 = vld [vmem:[#allocation2 + $0x8] sm:$0xff]  ;;  %v465_v27 = vpack.c.bf16 %v447_v24, %v446_v23  ;;  %v356_v29 = vld [vmem:[#allocation2 + $0x10] sm:$0xff] }
  0x34   : > { %v390_v28 = vpack.c.bf16 %v355_v26, %v354_v25  ;;  %v357_v30 = vld [vmem:[#allocation2 + $0x18] sm:$0xff]  ;;  %v358_v31 = vld [vmem:[#allocation2 + $0x20] sm:$0xff]  ;;  %v359_v32 = vld [vmem:[#allocation2 + $0x28] sm:$0xff] }
  0x35   : > { %v391_v33 = vpack.c.bf16 %v357_v30, %v356_v29  ;;  %v392_v34 = vpack.c.bf16 %v359_v32, %v358_v31  ;;  %v9229_v35 = vld [vmem:[%s10492_s1 + $0x28] sm:$0xff]   ;;  %v360_v36 = vld [vmem:[#allocation2 + $0x30] sm:$0xff]  ;;  %v361_v37 = vld [vmem:[#allocation2 + $0x38] sm:$0xff] }
  0x36   : > { %7896 = vmatmul.mubr.msk.bf16.gmra.mrb[8].mxu0 %vm251_vm0, %v453_v55  ;;  %v362_v38 = vld [vmem:[#allocation2 + $0x40] sm:$0xff]  ;;  %v363_v39 = vld [vmem:[#allocation2 + $0x48] sm:$0xff]  ;;  %v9550_v40 = vld [vmem:[%s10492_s1 + $0x30] sm:$0xff]   ;;  %v393_v41 = vpack.c.bf16 %v361_v37, %v360_v36 }
  0x37   : > { %7899 = vmatprep.mubr.msk.bf16.mxu0 %vm251_vm0, %v454_v56  ;;  %v394_v43 = vpack.c.bf16 %v363_v39, %v362_v38  ;;  %v365_v44 = vld [vmem:[#allocation2 + $0x58] sm:$0xff]  ;;  %v366_v45 = vld [vmem:[#allocation2 + $0x60] sm:$0xff]  ;;  %v367_v46 = vld [vmem:[#allocation2 + $0x68] sm:$0xff] }
  0x38   : > { %v396_v48 = vpack.c.bf16 %v367_v46, %v366_v45  ;;  %v368_v49 = vld [vmem:[#allocation2 + $0x70] sm:$0xff]  ;;  %v369_v50 = vld [vmem:[#allocation2 + $0x78] sm:$0xff]  ;;  %v370_v51 = vld [vmem:[#allocation2 + $0x80] sm:$0xff] }
  0x39   : > { %v371_v52 = vld [vmem:[#allocation2 + $0x88] sm:$0xff]  ;;  %v397_v53 = vpack.c.bf16 %v369_v50, %v368_v49  ;;  %v372_v55 = vld [vmem:[#allocation2 + $0x90] sm:$0xff]  ;;  %v373_v56 = vld [vmem:[#allocation2 + $0x98] sm:$0xff] }
  0x3a   : > { %v398_v54 = vpack.c.bf16 %v371_v52, %v370_v51  ;;  %v374_v57 = vld [vmem:[#allocation2 + $0xa0] sm:$0xff]  ;;  %v375_v58 = vld [vmem:[#allocation2 + $0xa8] sm:$0xff]  ;;  %v399_v59 = vpack.c.bf16 %v373_v56, %v372_v55  ;;  %v7080_v26 = vld [vmem:[%s9450_s19 + $0xf0] sm:$0xff] }
  0x3b   : > { %v400_v60 = vpack.c.bf16 %v375_v58, %v374_v57  ;;  %v378_v63 = vld [vmem:[#allocation2 + $0xc0] sm:$0xff]  ;;  %v379_v0 = vld [vmem:[#allocation2 + $0xc8] sm:$0xff]  ;;  %352 = vst.msk [vmem:[#allocation2 + $0x121] sm:$0xff] %vm251_vm0, %v7080_v26  ;;  %v9231_v29 = vld [vmem:[%s10492_s1 + $0x38] sm:$0xff]  }
  0x3c   : > { %v402_v2 = vpack.c.bf16 %v379_v0, %v378_v63  ;;  %v382_v5 = vld [vmem:[#allocation2 + $0xe0] sm:$0xff]  ;;  %v383_v6 = vld [vmem:[#allocation2 + $0xe8] sm:$0xff]  ;;  %v962_v30 = vld [vmem:[#allocation2 + $0x32] sm:$0xff] }
  0x3d   : > { %v404_v8 = vpack.c.bf16 %v383_v6, %v382_v5  ;;  %v386_v11 = vld [vmem:[#allocation2 + $0x100] sm:$0xff]  ;;  %v387_v12 = vld [vmem:[#allocation2 + $0x108] sm:$0xff]  ;;  %v966_v37 = vld [vmem:[#allocation2 + $0x52] sm:$0xff] }
  0x3e   : > { %7900 = vmatmul.mubr.msk.bf16.gmra.mrb[12].mxu0 %vm251_vm0, %v455_v61  ;;  %v376_v61 = vld [vmem:[#allocation2 + $0xb0] sm:$0xff]  ;;  %v406_v14 = vpack.c.bf16 %v387_v12, %v386_v11  ;;  %v956_v17 = vld [vmem:[#allocation2 + $0x2] sm:$0xff]  ;;  %v963_v31 = vld [vmem:[#allocation2 + $0x3a] sm:$0xff] }
  0x3f   : > { %7903 = vmatprep.mubr.msk.bf16.mxu0 %vm251_vm0, %v456_v62  ;;  %v377_v62 = vld [vmem:[#allocation2 + $0xb8] sm:$0xff]  ;;  %v957_v18 = vld [vmem:[#allocation2 + $0xa] sm:$0xff]  ;;  %v960_v23 = vld [vmem:[#allocation2 + $0x22] sm:$0xff] }
  0x40   : > { %v401_v1 = vpack.c.bf16 %v377_v62, %v376_v61  ;;  %v992_v20 = vpack.c.bf16 %v957_v18, %v956_v17  ;;  %v961_v24 = vld [vmem:[#allocation2 + $0x2a] sm:$0xff]  ;;  %v964_v32 = vld [vmem:[#allocation2 + $0x42] sm:$0xff]  ;;  %v967_v38 = vld [vmem:[#allocation2 + $0x5a] sm:$0xff] }
  0x41   : > { %v968_v39 = vld [vmem:[#allocation2 + $0x62] sm:$0xff]  ;;  %v973_v46 = vld [vmem:[#allocation2 + $0x8a] sm:$0xff]  ;;  %v974_v49 = vld [vmem:[#allocation2 + $0x92] sm:$0xff] }
  0x42   : > { %v972_v45 = vld [vmem:[#allocation2 + $0x82] sm:$0xff]  ;;  %v975_v50 = vld [vmem:[#allocation2 + $0x9a] sm:$0xff]  ;;  %v977_v52 = vld [vmem:[#allocation2 + $0xaa] sm:$0xff] }
  0x43   : > { %v976_v51 = vld [vmem:[#allocation2 + $0xa2] sm:$0xff]  ;;  %v978_v55 = vld [vmem:[#allocation2 + $0xb2] sm:$0xff]  ;;  %v979_v56 = vld [vmem:[#allocation2 + $0xba] sm:$0xff] }
  0x44   : > { %v980_v57 = vld [vmem:[#allocation2 + $0xc2] sm:$0xff]  ;;  %v981_v58 = vld [vmem:[#allocation2 + $0xca] sm:$0xff]  ;;  %v982_v61 = vld [vmem:[#allocation2 + $0xd2] sm:$0xff] }
  0x45   : > { %v983_v62 = vld [vmem:[#allocation2 + $0xda] sm:$0xff]  ;;  %v984_v63 = vld [vmem:[#allocation2 + $0xe2] sm:$0xff]  ;;  %v985_v0 = vld [vmem:[#allocation2 + $0xea] sm:$0xff] }
  0x46   : > { %7904 = vmatmul.mubr.msk.bf16.gmra.mrb[16].mxu0 %vm251_vm0, %v457_v3  ;;  %v380_v3 = vld [vmem:[#allocation2 + $0xd0] sm:$0xff]  ;;  %v988_v5 = vld [vmem:[#allocation2 + $0x102] sm:$0xff] }
  0x47   : > { %7907 = vmatprep.mubr.msk.bf16.mxu0 %vm251_vm0, %v458_v4  ;;  %v381_v4 = vld [vmem:[#allocation2 + $0xd8] sm:$0xff]  ;;  %v989_v6 = vld [vmem:[#allocation2 + $0x10a] sm:$0xff] }
  0x48   : > { %v403_v7 = vpack.c.bf16 %v381_v4, %v380_v3  ;;  %v986_v3 = vld [vmem:[#allocation2 + $0xf2] sm:$0xff]  ;;  %v987_v4 = vld [vmem:[#allocation2 + $0xfa] sm:$0xff]  ;;  %v9233_v12 = vld [vmem:[%s10492_s1 + $0x48] sm:$0xff]  }
  0x49   : > { %v1630_v18 = vld [vmem:[#allocation2 + $0x13] sm:$0xff] }
  0x4e   : > { %7908 = vmatmul.mubr.msk.bf16.gmra.mrb[20].mxu0 %vm251_vm0, %v459_v9  ;;  %v384_v9 = vld [vmem:[#allocation2 + $0xf0] sm:$0xff] }
  0x4f   : > { %7911 = vmatprep.mubr.msk.bf16.mxu0 %vm251_vm0, %v460_v10  ;;  %v385_v10 = vld [vmem:[#allocation2 + $0xf8] sm:$0xff] }
  0x50   : > { %v405_v13 = vpack.c.bf16 %v385_v10, %v384_v9  ;;  %v990_v9 = vld [vmem:[#allocation2 + $0x112] sm:$0xff]  ;;  %v991_v10 = vld [vmem:[#allocation2 + $0x11a] sm:$0x3f] }
  0x51   : > { %v1009_v11 = vpack.c.bf16 %v991_v10, %v990_v9  ;;  %v1967_v10 = vld [vmem:[#allocation2 + $0x14] sm:$0xff] }
  0x56   : > { %7912 = vmatmul.mubr.msk.bf16.gmra.mrb[24].mxu0 %vm251_vm0, %v461_v15  ;;  %v388_v15 = vld [vmem:[#allocation2 + $0x110] sm:$0xff] }
  0x57   : > { %7915 = vmatprep.mubr.msk.bf16.mxu0 %vm251_vm0, %v462_v16  ;;  %v389_v16 = vld [vmem:[#allocation2 + $0x118] sm:$0x3f] }
  0x58   : > { %v407_v19 = vpack.c.bf16 %v389_v16, %v388_v15 }
  0x5e   : > { %7916 = vmatmul.mubr.msk.bf16.gmra.mrb[28].mxu0 %vm251_vm0, %v463_v21  ;;  %v958_v21 = vld [vmem:[#allocation2 + $0x12] sm:$0xff] }
  0x5f   : > { %7919 = vmatprep.mubr.msk.bf16.mxu0 %vm251_vm0, %v464_v22  ;;  %v959_v22 = vld [vmem:[#allocation2 + $0x1a] sm:$0xff] }
  0x60   : > { %v9569_v25 = vpack.c.bf16 %v959_v22, %v958_v21  ;;  %v1632_v22 = vld [vmem:[#allocation2 + $0x23] sm:$0xff] }
  0x66   : > { %7920 = vmatmul.mubr.msk.bf16.gmra.mrb[32].mxu0 %vm251_vm0, %v465_v27  ;;  %v9572_v27 = vpack.c.bf16 %v961_v24, %v960_v23  ;;  %v1633_v23 = vld [vmem:[#allocation2 + $0x2b] sm:$0xff]  ;;  %v1634_v24 = vld [vmem:[#allocation2 + $0x33] sm:$0xff] }
  0x67   : > { %7927 = vmatprep.mubr.msk.bf16.mxu0 %vm251_vm0, %v390_v28  ;;  %v7081_v28 = vld [vmem:[%s9450_s19 + $0xf8] sm:$0xff]  ;;  %v1667_v26 = vpack.c.bf16 %v1633_v23, %v1632_v22  ;;  %v1974_v22 = vld [vmem:[#allocation2 + $0x4c] sm:$0xff] }
  0x68   : > { %353 = vst.msk [vmem:[#allocation2 + $0x129] sm:$0xff] %vm251_vm0, %v7081_v28  ;;  %v9235_v28 = vld [vmem:[%s10492_s1 + $0x58] sm:$0xff]  }
  0x69   : > { %v1975_v23 = vld [vmem:[#allocation2 + $0x54] sm:$0xff] }
  0x6e   : > { %7928 = vmatmul.mubr.msk.bf16.vlgmr.msra.gmra.mrb[0].mxu0 %vm251_vm0, %v391_v33  ;;  %v965_v33 = vld [vmem:[#allocation2 + $0x4a] sm:$0xff] }
  0x6f   : > { %7964 = vmatpush3.bf16.msra.mxu0 %v9510_v42  ;;  %7931 = vmatprep.mubr.msk.bf16.mxu0 %vm251_vm0, %v392_v34  ;;  %v364_v42 = vld [vmem:[#allocation2 + $0x50] sm:$0xff]  ;;  %v9232_v34 = vld [vmem:[%s10492_s1 + $0x40] sm:$0xff]   ;;  %v9588_v36 = vpack.c.bf16 %v965_v33, %v964_v32  ;;  %v1328_v17 = vld [vmem:[#allocation2 + $0x12a] sm:$0x3f] }
  0x70   : > { %7965 = vmatprep.subr.bf16.mxu0 %v9229_v35  ;;  %v395_v47 = vpack.c.bf16 %v365_v44, %v364_v42  ;;  %v970_v42 = vld [vmem:[#allocation2 + $0x72] sm:$0xff]  ;;  %v971_v44 = vld [vmem:[#allocation2 + $0x7a] sm:$0xff]  ;;  %v1327_v16 = vld [vmem:[#allocation2 + $0x122] sm:$0xff] }
  0x71   : > { %v1639_v32 = vld [vmem:[#allocation2 + $0x5b] sm:$0xff] }
  0x72   : > { %v9642_v33 = vld [vmem:[%s10492_s1 + $0x60] sm:$0xff]  }
  0x73   : > { %7966 = vmatpush3.bf16.msra.mxu0 %v9229_v35  ;;  %v995_v35 = vpack.c.bf16 %v963_v31, %v962_v30  ;;  %v1637_v30 = vld [vmem:[#allocation2 + $0x4b] sm:$0xff]  ;;  %v1638_v31 = vld [vmem:[#allocation2 + $0x53] sm:$0xff] }
  0x74   : > { %8003 = vmatprep.subr.bf16.mxu0 %v9550_v40 }
  0x76   : > { %7932 = vmatmul.mubr.msk.bf16.gmra.mrb[4].mxu0 %vm251_vm0, %v393_v41  ;;  %v997_v41 = vpack.c.bf16 %v967_v38, %v966_v37  ;;  %v1641_v37 = vld [vmem:[#allocation2 + $0x6b] sm:$0xff]  ;;  %v1642_v38 = vld [vmem:[#allocation2 + $0x73] sm:$0xff] }
  0x77   : > { %7935 = vmatprep.mubr.msk.bf16.mxu0 %vm251_vm0, %v394_v43 }
  0x7e   : > { %7936 = vmatmul.mubr.msk.bf16.gmra.mrb[8].mxu0 %vm251_vm0, %v395_v47  ;;  %v999_v47 = vpack.c.bf16 %v971_v44, %v970_v42  ;;  %v1645_v42 = vld [vmem:[#allocation2 + $0x8b] sm:$0xff]  ;;  %v1646_v44 = vld [vmem:[#allocation2 + $0x93] sm:$0xff] }
  0x7f   : > { %7939 = vmatprep.mubr.msk.bf16.mxu0 %vm251_vm0, %v396_v48  ;;  %v1000_v48 = vpack.c.bf16 %v973_v46, %v972_v45  ;;  %v1647_v45 = vld [vmem:[#allocation2 + $0x9b] sm:$0xff] }
  0x86   : > { %7940 = vmatmul.mubr.msk.bf16.gmra.mrb[12].mxu0 %vm251_vm0, %v397_v53  ;;  %v1001_v53 = vpack.c.bf16 %v975_v50, %v974_v49  ;;  %v1649_v49 = vld [vmem:[#allocation2 + $0xab] sm:$0xff]  ;;  %v1650_v50 = vld [vmem:[#allocation2 + $0xb3] sm:$0xff] }
  0x87   : > { %7943 = vmatprep.mubr.msk.bf16.mxu0 %vm251_vm0, %v398_v54  ;;  %v1002_v54 = vpack.c.bf16 %v977_v52, %v976_v51  ;;  %v1651_v51 = vld [vmem:[#allocation2 + $0xbb] sm:$0xff] }
  0x8e   : > { %7944 = vmatmul.mubr.msk.bf16.gmra.mrb[16].mxu0 %vm251_vm0, %v399_v59  ;;  %v1003_v59 = vpack.c.bf16 %v979_v56, %v978_v55  ;;  %v1653_v55 = vld [vmem:[#allocation2 + $0xcb] sm:$0xff]  ;;  %v1654_v56 = vld [vmem:[#allocation2 + $0xd3] sm:$0xff] }
  0x8f   : > { %7947 = vmatprep.mubr.msk.bf16.mxu0 %vm251_vm0, %v400_v60  ;;  %v1004_v60 = vpack.c.bf16 %v981_v58, %v980_v57  ;;  %v1655_v57 = vld [vmem:[#allocation2 + $0xdb] sm:$0xff] }
  0x96   : > { %7948 = vmatmul.mubr.msk.bf16.gmra.mrb[20].mxu0 %vm251_vm0, %v401_v1  ;;  %v1005_v1 = vpack.c.bf16 %v983_v62, %v982_v61  ;;  %v1657_v61 = vld [vmem:[#allocation2 + $0xeb] sm:$0xff]  ;;  %v1658_v62 = vld [vmem:[#allocation2 + $0xf3] sm:$0xff] }
  0x97   : > { %7951 = vmatprep.mubr.msk.bf16.mxu0 %vm251_vm0, %v402_v2  ;;  %v1006_v2 = vpack.c.bf16 %v985_v0, %v984_v63  ;;  %v1659_v63 = vld [vmem:[#allocation2 + $0xfb] sm:$0xff] }
  0x9e   : > { %7952 = vmatmul.mubr.msk.bf16.gmra.mrb[24].mxu0 %vm251_vm0, %v403_v7  ;;  %v1007_v7 = vpack.c.bf16 %v987_v4, %v986_v3  ;;  %v1661_v3 = vld [vmem:[#allocation2 + $0x10b] sm:$0xff]  ;;  %v1662_v4 = vld [vmem:[#allocation2 + $0x113] sm:$0xff] }
  0x9f   : > { %7955 = vmatprep.mubr.msk.bf16.mxu0 %vm251_vm0, %v404_v8  ;;  %v1008_v8 = vpack.c.bf16 %v989_v6, %v988_v5  ;;  %v1663_v5 = vld [vmem:[#allocation2 + $0x11b] sm:$0xff] }
  0xa6   : > { %7956 = vmatmul.mubr.msk.bf16.gmra.mrb[28].mxu0 %vm251_vm0, %v405_v13  ;;  %v9234_v13 = vld [vmem:[%s10492_s1 + $0x50] sm:$0xff]  }
  0xa7   : > { %7959 = vmatprep.mubr.msk.bf16.mxu0 %vm251_vm0, %v406_v14  ;;  %v1326_v14 = vld [vmem:[#allocation2 + $0x11a] sm:$0xff] }
  0xa8   : > { %v1345_v15 = vpack.c.bf16 %v1326_v14, %v990_v9  ;;  %v1665_v9 = vld [vmem:[#allocation2 + $0x12b] sm:$0x3f] }
  0xa9   : > { %v1969_v14 = vld [vmem:[#allocation2 + $0x24] sm:$0xff] }
  0xae   : > { %7960 = vmatmul.mubr.msk.bf16.gmra.mrb[32].mxu0 %vm251_vm0, %v407_v19  ;;  %v1631_v19 = vld [vmem:[#allocation2 + $0x1b] sm:$0xff] }
  0xaf   : > { %7967 = vmatprep.mubr.msk.bf16.mxu0 %vm251_vm0, %v992_v20  ;;  %v1346_v20 = vpack.c.bf16 %v1328_v17, %v1327_v16  ;;  %v1666_v21 = vpack.c.bf16 %v1631_v19, %v1630_v18  ;;  %v1971_v16 = vld [vmem:[#allocation2 + $0x34] sm:$0xff]  ;;  %v1972_v17 = vld [vmem:[#allocation2 + $0x3c] sm:$0xff] }
  0xb0   : > { %v9663_v19 = vpack.c.bf16 %v1972_v17, %v1971_v16  ;;  %v3403_v16 = vld [vmem:[%s10496_s5 + $0x48] sm:$0xff]  ;;  %v3404_v17 = vld [vmem:[%s10496_s5 + $0x50] sm:$0xff] }
  0xb6   : > { %7968 = vmatmul.mubr.msk.bf16.vlgmr.msra.gmra.mrb[0].mxu0 %vm251_vm0, %v9569_v25 }
  0xb7   : > { %8004 = vmatpush3.bf16.msra.mxu0 %v9550_v40  ;;  %7971 = vmatprep.mubr.msk.bf16.mxu0 %vm251_vm0, %v9572_v27  ;;  %v969_v40 = vld [vmem:[#allocation2 + $0x6a] sm:$0xff] }
  0xb8   : > { %8005 = vmatprep.subr.bf16.mxu0 %v9231_v29  ;;  %v998_v43 = vpack.c.bf16 %v969_v40, %v968_v39  ;;  %v1643_v39 = vld [vmem:[#allocation2 + $0x7b] sm:$0xff] }
  0xbb   : > { %8006 = vmatpush3.bf16.msra.mxu0 %v9231_v29  ;;  %v1636_v29 = vld [vmem:[#allocation2 + $0x43] sm:$0xff] }
  0xbc   : > { %8043 = vmatprep.subr.bf16.mxu0 %v9232_v34 }
  0xbe   : > { %7972 = vmatmul.mubr.msk.bf16.gmra.mrb[4].mxu0 %vm251_vm0, %v995_v35 }
  0xbf   : > { %7975 = vmatprep.mubr.msk.bf16.mxu0 %vm251_vm0, %v9588_v36 }
  0xc6   : > { %7976 = vmatmul.mubr.msk.bf16.gmra.mrb[8].mxu0 %vm251_vm0, %v997_v41 }
  0xc7   : > { %7979 = vmatprep.mubr.msk.bf16.mxu0 %vm251_vm0, %v998_v43 }
  0xce   : > { %7980 = vmatmul.mubr.msk.bf16.gmra.mrb[12].mxu0 %vm251_vm0, %v999_v47 }
  0xcf   : > { %7983 = vmatprep.mubr.msk.bf16.mxu0 %vm251_vm0, %v1000_v48 }
  0xd6   : > { %7984 = vmatmul.mubr.msk.bf16.gmra.mrb[16].mxu0 %vm251_vm0, %v1001_v53 }
  0xd7   : > { %7987 = vmatprep.mubr.msk.bf16.mxu0 %vm251_vm0, %v1002_v54 }
  0xde   : > { %7988 = vmatmul.mubr.msk.bf16.gmra.mrb[20].mxu0 %vm251_vm0, %v1003_v59 }
  0xdf   : > { %7991 = vmatprep.mubr.msk.bf16.mxu0 %vm251_vm0, %v1004_v60 }
  0xe6   : > { %7992 = vmatmul.mubr.msk.bf16.gmra.mrb[24].mxu0 %vm251_vm0, %v1005_v1 }
  0xe7   : > { %7995 = vmatprep.mubr.msk.bf16.mxu0 %vm251_vm0, %v1006_v2 }
  0xee   : > { %7996 = vmatmul.mubr.msk.bf16.gmra.mrb[28].mxu0 %vm251_vm0, %v1007_v7 }
  0xef   : > { %7999 = vmatprep.mubr.msk.bf16.mxu0 %vm251_vm0, %v1008_v8 }
  0xf6   : > { %8000 = vmatmul.mubr.msk.bf16.gmra.mrb[32].mxu0 %vm251_vm0, %v1009_v11  ;;  %v1968_v11 = vld [vmem:[#allocation2 + $0x1c] sm:$0xff] }
  0xf7   : > { %8007 = vmatprep.mubr.msk.bf16.mxu0 %vm251_vm0, %v9569_v25  ;;  %v1635_v25 = vld [vmem:[#allocation2 + $0x3b] sm:$0xff] }
  0xfe   : > { %8008 = vmatmul.mubr.msk.bf16.vlgmr.msra.gmra.mrb[0].mxu0 %vm251_vm0, %v9572_v27  ;;  %v1668_v27 = vpack.c.bf16 %v1635_v25, %v1634_v24  ;;  %v1976_v24 = vld [vmem:[#allocation2 + $0x5c] sm:$0xff]  ;;  %v9238_v25 = vld [vmem:[%s10492_s1 + $0x70] sm:$0xff]  }
  0xff   : > { %8044 = vmatpush3.bf16.msra.mxu0 %v9232_v34  ;;  %8011 = vmatprep.mubr.msk.bf16.mxu0 %vm251_vm0, %v995_v35  ;;  %v1669_v34 = vpack.c.bf16 %v1637_v30, %v1636_v29  ;;  %v1670_v35 = vpack.c.bf16 %v1639_v32, %v1638_v31  ;;  %v1978_v29 = vld [vmem:[#allocation2 + $0x6c] sm:$0xff]  ;;  %v1979_v30 = vld [vmem:[#allocation2 + $0x74] sm:$0xff]  ;;  %v1980_v31 = vld [vmem:[#allocation2 + $0x7c] sm:$0xff] }
 0x100   : > { %8045 = vmatprep.subr.bf16.mxu0 %v9233_v12 }
 0x103   : > { %8046 = vmatpush3.bf16.msra.mxu0 %v9233_v12 }
 0x104   : > { %8083 = vmatprep.subr.bf16.mxu0 %v9234_v13 }
 0x106   : > { %8012 = vmatmul.mubr.msk.bf16.gmra.mrb[4].mxu0 %vm251_vm0, %v9588_v36  ;;  %v1640_v36 = vld [vmem:[#allocation2 + $0x63] sm:$0xff] }
 0x107   : > { %8015 = vmatprep.mubr.msk.bf16.mxu0 %vm251_vm0, %v997_v41  ;;  %v1671_v40 = vpack.c.bf16 %v1641_v37, %v1640_v36  ;;  %v1672_v41 = vpack.c.bf16 %v1643_v39, %v1642_v38  ;;  %v1983_v36 = vld [vmem:[#allocation2 + $0x94] sm:$0xff]  ;;  %v1984_v37 = vld [vmem:[#allocation2 + $0x9c] sm:$0xff] }
 0x108   : > { %v2011_v39 = vpack.c.bf16 %v1984_v37, %v1983_v36  ;;  %v3412_v36 = vld [vmem:[%s10496_s5 + $0x90] sm:$0xff] }
 0x10e   : > { %8016 = vmatmul.mubr.msk.bf16.gmra.mrb[8].mxu0 %vm251_vm0, %v998_v43  ;;  %v1644_v43 = vld [vmem:[#allocation2 + $0x83] sm:$0xff] }
 0x10f   : > { %8019 = vmatprep.mubr.msk.bf16.mxu0 %vm251_vm0, %v999_v47  ;;  %v1673_v46 = vpack.c.bf16 %v1645_v42, %v1644_v43  ;;  %v1674_v47 = vpack.c.bf16 %v1647_v45, %v1646_v44  ;;  %v1987_v43 = vld [vmem:[#allocation2 + $0xb4] sm:$0xff]  ;;  %v1988_v42 = vld [vmem:[#allocation2 + $0xbc] sm:$0xff] }
 0x110   : > { %v2013_v45 = vpack.c.bf16 %v1988_v42, %v1987_v43  ;;  %v2647_v43 = vld [vmem:[#allocation2 + $0x55] sm:$0xff]  ;;  %v2648_v42 = vld [vmem:[#allocation2 + $0x5d] sm:$0xff] }
 0x116   : > { %8020 = vmatmul.mubr.msk.bf16.gmra.mrb[12].mxu0 %vm251_vm0, %v1000_v48  ;;  %v1648_v48 = vld [vmem:[#allocation2 + $0xa3] sm:$0xff] }
 0x117   : > { %8023 = vmatprep.mubr.msk.bf16.mxu0 %vm251_vm0, %v1001_v53  ;;  %v1675_v52 = vpack.c.bf16 %v1649_v49, %v1648_v48  ;;  %v1676_v53 = vpack.c.bf16 %v1651_v51, %v1650_v50  ;;  %v1991_v48 = vld [vmem:[#allocation2 + $0xd4] sm:$0xff]  ;;  %v1992_v49 = vld [vmem:[#allocation2 + $0xdc] sm:$0xff] }
 0x118   : > { %v2015_v51 = vpack.c.bf16 %v1992_v49, %v1991_v48  ;;  %v3416_v48 = vld [vmem:[%s10496_s5 + $0xb0] sm:$0xff] }
 0x11e   : > { %8024 = vmatmul.mubr.msk.bf16.gmra.mrb[16].mxu0 %vm251_vm0, %v1002_v54  ;;  %v1652_v54 = vld [vmem:[#allocation2 + $0xc3] sm:$0xff] }
 0x11f   : > { %8027 = vmatprep.mubr.msk.bf16.mxu0 %vm251_vm0, %v1003_v59  ;;  %v1677_v58 = vpack.c.bf16 %v1653_v55, %v1652_v54  ;;  %v1678_v59 = vpack.c.bf16 %v1655_v57, %v1654_v56  ;;  %v1995_v54 = vld [vmem:[#allocation2 + $0xf4] sm:$0xff]  ;;  %v1996_v55 = vld [vmem:[#allocation2 + $0xfc] sm:$0xff] }
 0x120   : > { %v2017_v57 = vpack.c.bf16 %v1996_v55, %v1995_v54  ;;  %v2653_v54 = vld [vmem:[#allocation2 + $0x85] sm:$0xff]  ;;  %v2654_v55 = vld [vmem:[#allocation2 + $0x8d] sm:$0xff] }
 0x126   : > { %8028 = vmatmul.mubr.msk.bf16.gmra.mrb[20].mxu0 %vm251_vm0, %v1004_v60  ;;  %v1656_v60 = vld [vmem:[#allocation2 + $0xe3] sm:$0xff] }
 0x127   : > { %8031 = vmatprep.mubr.msk.bf16.mxu0 %vm251_vm0, %v1005_v1  ;;  %v1679_v0 = vpack.c.bf16 %v1657_v61, %v1656_v60  ;;  %v1680_v1 = vpack.c.bf16 %v1659_v63, %v1658_v62  ;;  %v1999_v60 = vld [vmem:[#allocation2 + $0x114] sm:$0xff]  ;;  %v2000_v61 = vld [vmem:[#allocation2 + $0x11c] sm:$0xff] }
 0x128   : > { %v2019_v63 = vpack.c.bf16 %v2000_v61, %v1999_v60  ;;  %v3421_v60 = vld [vmem:[%s10496_s5 + $0xd8] sm:$0xff]  ;;  %v3422_v61 = vld [vmem:[%s10496_s5 + $0xe0] sm:$0xff] }
 0x12e   : > { %8032 = vmatmul.mubr.msk.bf16.gmra.mrb[24].mxu0 %vm251_vm0, %v1006_v2  ;;  %v1660_v2 = vld [vmem:[#allocation2 + $0x103] sm:$0xff] }
 0x12f   : > { %8035 = vmatprep.mubr.msk.bf16.mxu0 %vm251_vm0, %v1007_v7  ;;  %v1681_v6 = vpack.c.bf16 %v1661_v3, %v1660_v2  ;;  %v1682_v7 = vpack.c.bf16 %v1663_v5, %v1662_v4  ;;  %v9239_v3 = vld [vmem:[%s10492_s1 + $0x78] sm:$0xff]   ;;  %v9705_v4 = vld [vmem:[%s10492_s1 + $0x80] sm:$0xff]  }
 0x130   : > { %v3394_v5 = vld [vmem:[%s10496_s5] sm:$0xff] }
 0x136   : > { %8036 = vmatmul.mubr.msk.bf16.gmra.mrb[28].mxu0 %vm251_vm0, %v1008_v8  ;;  %v1664_v8 = vld [vmem:[#allocation2 + $0x123] sm:$0xff] }
 0x137   : > { %8039 = vmatprep.mubr.msk.bf16.mxu0 %vm251_vm0, %v1345_v15  ;;  %v1683_v12 = vpack.c.bf16 %v1665_v9, %v1664_v8  ;;  %v1970_v15 = vld [vmem:[#allocation2 + $0x2c] sm:$0xff]  ;;  %v3397_v9 = vld [vmem:[%s10496_s5 + $0x18] sm:$0xff] }
 0x138   : > { %v9661_v18 = vpack.c.bf16 %v1970_v15, %v1969_v14  ;;  %v3395_v8 = vld [vmem:[%s10496_s5 + $0x8] sm:$0xff]  ;;  %v3402_v14 = vld [vmem:[%s10496_s5 + $0x40] sm:$0xff] }
 0x139   : > { %v2337_v15 = vld [vmem:[#allocation2 + $0x12c] sm:$0xff] }
 0x13e   : > { %8040 = vmatmul.mubr.msk.bf16.gmra.mrb[32].mxu0 %vm251_vm0, %v1346_v20  ;;  %v9237_v20 = vld [vmem:[%s10492_s1 + $0x68] sm:$0xff]  }
 0x13f   : > { %8047 = vmatprep.mubr.msk.bf16.mxu0 %vm251_vm0, %v1666_v21  ;;  %v1973_v21 = vld [vmem:[#allocation2 + $0x44] sm:$0xff] }
 0x146   : > { %8048 = vmatmul.mubr.msk.bf16.vlgmr.msra.gmra.mrb[0].mxu0 %vm251_vm0, %v1667_v26  ;;  %v2006_v26 = vpack.c.bf16 %v1974_v22, %v1973_v21  ;;  %v2338_v21 = vld [vmem:[#allocation2 + $0x134] sm:$0xff]  ;;  %v2339_v22 = vld [vmem:[#allocation2 + $0x13c] sm:$0x3f] }
 0x147   : > { %8084 = vmatpush3.bf16.msra.mxu0 %v9234_v13  ;;  %8051 = vmatprep.mubr.msk.bf16.mxu0 %vm251_vm0, %v1668_v27  ;;  %v2003_v13 = vpack.c.bf16 %v1968_v11, %v1967_v10  ;;  %v9676_v27 = vpack.c.bf16 %v1976_v24, %v1975_v23  ;;  %v3398_v10 = vld [vmem:[%s10496_s5 + $0x20] sm:$0xff]  ;;  %v3399_v11 = vld [vmem:[%s10496_s5 + $0x28] sm:$0xff] }
 0x148   : > { %8085 = vmatprep.subr.bf16.mxu0 %v9235_v28  ;;  %v2641_v23 = vld [vmem:[#allocation2 + $0x25] sm:$0xff]  ;;  %v2642_v24 = vld [vmem:[#allocation2 + $0x2d] sm:$0xff] }
 0x14b   : > { %8086 = vmatpush3.bf16.msra.mxu0 %v9235_v28  ;;  %v1977_v28 = vld [vmem:[#allocation2 + $0x64] sm:$0xff] }
 0x14c   : > { %8123 = vmatprep.subr.bf16.mxu0 %v9642_v33  ;;  %v2008_v32 = vpack.c.bf16 %v1978_v29, %v1977_v28  ;;  %v2677_v28 = vpack.c.bf16 %v2642_v24, %v2641_v23  ;;  %v3409_v29 = vld [vmem:[%s10496_s5 + $0x78] sm:$0xff] }
 0x14d   : > { %v2667_v23 = vld [vmem:[#allocation2 + $0xf5] sm:$0xff]  ;;  %v2668_v24 = vld [vmem:[#allocation2 + $0xfd] sm:$0xff] }
 0x14e   : > { %8052 = vmatmul.mubr.msk.bf16.gmra.mrb[4].mxu0 %vm251_vm0, %v1669_v34  ;;  %v1981_v34 = vld [vmem:[#allocation2 + $0x84] sm:$0xff] }
 0x14f   : > { %8055 = vmatprep.mubr.msk.bf16.mxu0 %vm251_vm0, %v1670_v35  ;;  %v1982_v35 = vld [vmem:[#allocation2 + $0x8c] sm:$0xff] }
 0x150   : > { %v2010_v38 = vpack.c.bf16 %v1982_v35, %v1981_v34  ;;  %v2646_v34 = vld [vmem:[#allocation2 + $0x4d] sm:$0xff] }
 0x151   : > { %v3411_v35 = vld [vmem:[%s10496_s5 + $0x88] sm:$0xff] }
 0x156   : > { %8056 = vmatmul.mubr.msk.bf16.gmra.mrb[8].mxu0 %vm251_vm0, %v1671_v40  ;;  %v1985_v40 = vld [vmem:[#allocation2 + $0xa4] sm:$0xff] }
 0x157   : > { %8059 = vmatprep.mubr.msk.bf16.mxu0 %vm251_vm0, %v1672_v41  ;;  %v1986_v41 = vld [vmem:[#allocation2 + $0xac] sm:$0xff] }
 0x158   : > { %v2012_v44 = vpack.c.bf16 %v1986_v41, %v1985_v40  ;;  %v3413_v40 = vld [vmem:[%s10496_s5 + $0x98] sm:$0xff]  ;;  %v3414_v41 = vld [vmem:[%s10496_s5 + $0xa0] sm:$0xff] }
 0x15e   : > { %8060 = vmatmul.mubr.msk.bf16.gmra.mrb[12].mxu0 %vm251_vm0, %v1673_v46  ;;  %v1989_v46 = vld [vmem:[#allocation2 + $0xc4] sm:$0xff] }
 0x15f   : > { %8063 = vmatprep.mubr.msk.bf16.mxu0 %vm251_vm0, %v1674_v47  ;;  %v1990_v47 = vld [vmem:[#allocation2 + $0xcc] sm:$0xff] }
 0x160   : > { %v2014_v50 = vpack.c.bf16 %v1990_v47, %v1989_v46  ;;  %v3415_v46 = vld [vmem:[%s10496_s5 + $0xa8] sm:$0xff]  ;;  %v2680_v47 = vpack.c.bf16 %v2648_v42, %v2647_v43  ;;  %v2981_v43 = vld [vmem:[#allocation2 + $0x3e] sm:$0xff] }
 0x161   : > { %v2982_v42 = vld [vmem:[#allocation2 + $0x46] sm:$0xff] }
 0x166   : > { %8064 = vmatmul.mubr.msk.bf16.gmra.mrb[16].mxu0 %vm251_vm0, %v1675_v52  ;;  %v1993_v52 = vld [vmem:[#allocation2 + $0xe4] sm:$0xff] }
 0x167   : > { %8067 = vmatprep.mubr.msk.bf16.mxu0 %vm251_vm0, %v1676_v53  ;;  %v1994_v53 = vld [vmem:[#allocation2 + $0xec] sm:$0xff] }
 0x168   : > { %v2016_v56 = vpack.c.bf16 %v1994_v53, %v1993_v52  ;;  %v2651_v52 = vld [vmem:[#allocation2 + $0x75] sm:$0xff]  ;;  %v2652_v53 = vld [vmem:[#allocation2 + $0x7d] sm:$0xff] }
 0x16e   : > { %8068 = vmatmul.mubr.msk.bf16.gmra.mrb[20].mxu0 %vm251_vm0, %v1677_v58  ;;  %v1997_v58 = vld [vmem:[#allocation2 + $0x104] sm:$0xff] }
 0x16f   : > { %8071 = vmatprep.mubr.msk.bf16.mxu0 %vm251_vm0, %v1678_v59  ;;  %v1998_v59 = vld [vmem:[#allocation2 + $0x10c] sm:$0xff] }
 0x170   : > { %v2018_v62 = vpack.c.bf16 %v1998_v59, %v1997_v58  ;;  %v3420_v58 = vld [vmem:[%s10496_s5 + $0xd0] sm:$0xff]  ;;  %v2683_v59 = vpack.c.bf16 %v2654_v55, %v2653_v54  ;;  %v2989_v54 = vld [vmem:[#allocation2 + $0x7e] sm:$0xff]  ;;  %v2990_v55 = vld [vmem:[#allocation2 + $0x86] sm:$0xff] }
 0x176   : > { %8072 = vmatmul.mubr.msk.bf16.gmra.mrb[24].mxu0 %vm251_vm0, %v1679_v0  ;;  %v2001_v0 = vld [vmem:[#allocation2 + $0x124] sm:$0xff] }
 0x177   : > { %8075 = vmatprep.mubr.msk.bf16.mxu0 %vm251_vm0, %v1680_v1  ;;  %v2002_v1 = vld [vmem:[#allocation2 + $0x12c] sm:$0x3f] }
 0x178   : > { %v2020_v2 = vpack.c.bf16 %v2002_v1, %v2001_v0  ;;  %v2658_v1 = vld [vmem:[#allocation2 + $0xad] sm:$0xff] }
 0x17e   : > { %8076 = vmatmul.mubr.msk.bf16.gmra.mrb[28].mxu0 %vm251_vm0, %v1681_v6  ;;  %v3396_v6 = vld [vmem:[%s10496_s5 + $0x10] sm:$0xff] }
 0x17f   : > { %8079 = vmatprep.mubr.msk.bf16.mxu0 %vm251_vm0, %v1682_v7  ;;  %v9325_v7 = vmov 0  }
 0x180   : > { %9222 = vset.pattern.permute.xlu0 %v9325_v7  ;;  %9223 = vset.pattern.permute.xlu1 %v9325_v7  ;;  %v3426_v7 = vld [vmem:[%s10496_s5 + $0x100] sm:$0xff] }
 0x181   : > { %3432 = vperm.xlu0 %9222, %v3394_v5   ;;  %3442 = vperm.xlu1 %9223, %v3396_v6   ;;  %v3425_v6 = vld [vmem:[%s10496_s5 + $0xf8] sm:$0xff] }
 0x185   : > { %3437 = vperm.xlu0 %9222, %v3395_v8   ;;  %3447 = vperm.xlu1 %9223, %v3397_v9   ;;  %v2659_v8 = vld [vmem:[#allocation2 + $0xb5] sm:$0xff]  ;;  %v2660_v9 = vld [vmem:[#allocation2 + $0xbd] sm:$0xff] }
 0x186   : > { %8080 = vmatmul.mubr.msk.bf16.gmra.mrb[32].mxu0 %vm251_vm0, %v1683_v12  ;;  %v3400_v12 = vld [vmem:[%s10496_s5 + $0x30] sm:$0xff] }
 0x187   : > { %8087 = vmatprep.mubr.msk.bf16.mxu0 %vm251_vm0, %v2003_v13  ;;  %v3401_v13 = vld [vmem:[%s10496_s5 + $0x38] sm:$0xff] }
 0x189   : > { %3452 = vperm.xlu0 %9222, %v3398_v10   ;;  %3457 = vperm.xlu1 %9223, %v3399_v11   ;;  %v2661_v10 = vld [vmem:[#allocation2 + $0xc5] sm:$0xff]  ;;  %v2662_v11 = vld [vmem:[#allocation2 + $0xcd] sm:$0xff] }
 0x18d   : > { %3462 = vperm.xlu0 %9222, %v3400_v12   ;;  %3467 = vperm.xlu1 %9223, %v3401_v13   ;;  %v3427_v12 = vld [vmem:[%s10496_s5 + $0x108] sm:$0xff]  ;;  %v2686_v13 = vpack.c.bf16 %v2660_v9, %v2659_v8  ;;  %v3001_v8 = vld [vmem:[#allocation2 + $0xde] sm:$0xff] }
 0x18e   : > { %8088 = vmatmul.mubr.msk.bf16.vlgmr.msra.gmra.mrb[0].mxu0 %vm251_vm0, %v9661_v18  ;;  %v3002_v9 = vld [vmem:[#allocation2 + $0xe6] sm:$0xff] }
 0x18f   : > { %8124 = vmatpush3.bf16.msra.mxu0 %v9642_v33  ;;  %8091 = vmatprep.mubr.msk.bf16.mxu0 %vm251_vm0, %v9663_v19  ;;  %v2009_v33 = vpack.c.bf16 %v1980_v31, %v1979_v30  ;;  %v3410_v30 = vld [vmem:[%s10496_s5 + $0x80] sm:$0xff]  ;;  %v2643_v31 = vld [vmem:[#allocation2 + $0x35] sm:$0xff] }
 0x190   : > { %8125 = vmatprep.subr.bf16.mxu0 %v9237_v20 }
 0x191   : > { %3472 = vperm.xlu0 %9222, %v3402_v14   ;;  %3477 = vperm.xlu1 %9223, %v3403_v16   ;;  %v3428_v14 = vld [vmem:[%s10496_s5 + $0x110] sm:$0xff]  ;;  %v3429_v16 = vld [vmem:[%s10496_s5 + $0x118] sm:$0x3f] }
 0x193   : > { %8126 = vmatpush3.bf16.msra.mxu0 %v9237_v20  ;;  %v3406_v20 = vld [vmem:[%s10496_s5 + $0x60] sm:$0xff] }
 0x194   : > { %8163 = vmatprep.subr.bf16.mxu0 %v9238_v25 }
 0x195   : > { %3482 = vperm.xlu0 %9222, %v3404_v17   ;;  %v2663_v17 = vld [vmem:[#allocation2 + $0xd5] sm:$0xff] }
 0x196   : > { %8092 = vmatmul.mubr.msk.bf16.gmra.mrb[4].mxu0 %vm251_vm0, %v2006_v26 }
 0x197   : > { %8095 = vmatprep.mubr.msk.bf16.mxu0 %vm251_vm0, %v9676_v27 }
 0x199   : > { %3492 = vperm.xlu0 %9222, %v3406_v20   ;;  %v2666_v20 = vld [vmem:[#allocation2 + $0xed] sm:$0xff] }
 0x19e   : > { %8096 = vmatmul.mubr.msk.bf16.gmra.mrb[8].mxu0 %vm251_vm0, %v2008_v32 }
 0x19f   : > { %8099 = vmatprep.mubr.msk.bf16.mxu0 %vm251_vm0, %v2009_v33 }
 0x1a6   : > { %8100 = vmatmul.mubr.msk.bf16.gmra.mrb[12].mxu0 %vm251_vm0, %v2010_v38 }
 0x1a7   : > { %8103 = vmatprep.mubr.msk.bf16.mxu0 %vm251_vm0, %v2011_v39 }
 0x1ae   : > { %8104 = vmatmul.mubr.msk.bf16.gmra.mrb[16].mxu0 %vm251_vm0, %v2012_v44 }
 0x1af   : > { %8107 = vmatprep.mubr.msk.bf16.mxu0 %vm251_vm0, %v2013_v45 }
 0x1b6   : > { %8108 = vmatmul.mubr.msk.bf16.gmra.mrb[20].mxu0 %vm251_vm0, %v2014_v50 }
 0x1b7   : > { %8111 = vmatprep.mubr.msk.bf16.mxu0 %vm251_vm0, %v2015_v51 }
 0x1be   : > { %8112 = vmatmul.mubr.msk.bf16.gmra.mrb[24].mxu0 %vm251_vm0, %v2016_v56 }
 0x1bf   : > { %8115 = vmatprep.mubr.msk.bf16.mxu0 %vm251_vm0, %v2017_v57 }
 0x1c6   : > { %8116 = vmatmul.mubr.msk.bf16.gmra.mrb[28].mxu0 %vm251_vm0, %v2018_v62 }
 0x1c7   : > { %8119 = vmatprep.mubr.msk.bf16.mxu0 %vm251_vm0, %v2019_v63 }
 0x1ce   : > { %8120 = vmatmul.mubr.msk.bf16.gmra.mrb[32].mxu0 %vm251_vm0, %v2020_v2  ;;  %v3423_v2 = vld [vmem:[%s10496_s5 + $0xe8] sm:$0xff] }
 0x1cf   : > { %8127 = vmatprep.mubr.msk.bf16.mxu0 %vm251_vm0, %v9661_v18  ;;  %v2356_v18 = vpack.c.bf16 %v2337_v15, %v2001_v0  ;;  %v2657_v0 = vld [vmem:[#allocation2 + $0xa5] sm:$0xff]  ;;  %v2687_v15 = vpack.c.bf16 %v2662_v11, %v2661_v10  ;;  %v3003_v10 = vld [vmem:[#allocation2 + $0xee] sm:$0xff] }
 0x1d0   : > { %v2685_v5 = vpack.c.bf16 %v2658_v1, %v2657_v0  ;;  %v2996_v1 = vld [vmem:[#allocation2 + $0xb6] sm:$0xff] }
 0x1d6   : > { %8128 = vmatmul.mubr.msk.bf16.vlgmr.msra.gmra.mrb[0].mxu0 %vm251_vm0, %v9663_v19  ;;  %v3405_v19 = vld [vmem:[%s10496_s5 + $0x58] sm:$0xff] }
 0x1d7   : > { %8164 = vmatpush3.bf16.msra.mxu0 %v9238_v25  ;;  %8131 = vmatprep.mubr.msk.bf16.mxu0 %vm251_vm0, %v2006_v26  ;;  %v3407_v25 = vld [vmem:[%s10496_s5 + $0x68] sm:$0xff]  ;;  %v3408_v26 = vld [vmem:[%s10496_s5 + $0x70] sm:$0xff] }
 0x1d8   : > { %8165 = vmatprep.subr.bf16.mxu0 %v9239_v3  ;;  %3487 = vperm.xlu1 %9223, %v3405_v19   ;;  %v2665_v19 = vld [vmem:[#allocation2 + $0xe5] sm:$0xff] }
 0x1d9   : > { %3502 = vperm.xlu0 %9222, %v3408_v26   ;;  %v2670_v26 = vld [vmem:[#allocation2 + $0x10d] sm:$0xff] }
 0x1db   : > { %8166 = vmatpush3.bf16.msra.mxu0 %v9239_v3 }
 0x1dc   : > { %8203 = vmatprep.subr.bf16.mxu0 %v9705_v4  ;;  %3497 = vperm.xlu1 %9223, %v3407_v25   ;;  %v2669_v25 = vld [vmem:[#allocation2 + $0x105] sm:$0xff] }
 0x1dd   : > { %3512 = vperm.xlu0 %9222, %v3410_v30   ;;  %v2672_v30 = vld [vmem:[#allocation2 + $0x11d] sm:$0xff] }
 0x1de   : > { %8132 = vmatmul.mubr.msk.bf16.gmra.mrb[4].mxu0 %vm251_vm0, %v9676_v27  ;;  %v2357_v27 = vpack.c.bf16 %v2339_v22, %v2338_v21  ;;  %v2689_v22 = vpack.c.bf16 %v2666_v20, %v2665_v19  ;;  %v3008_v19 = vld [vmem:[#allocation2 + $0x116] sm:$0xff]  ;;  %v3009_v20 = vld [vmem:[#allocation2 + $0x11e] sm:$0xff] }
 0x1df   : > { %8135 = vmatprep.mubr.msk.bf16.mxu0 %vm251_vm0, %v2008_v32  ;;  %v2644_v32 = vld [vmem:[#allocation2 + $0x3d] sm:$0xff] }
 0x1e0   : > { %3507 = vperm.xlu1 %9223, %v3409_v29   ;;  %v2678_v37 = vpack.c.bf16 %v2644_v32, %v2643_v31  ;;  %v2671_v29 = vld [vmem:[#allocation2 + $0x115] sm:$0xff]  ;;  %v2673_v31 = vld [vmem:[#allocation2 + $0x125] sm:$0xff]  ;;  %v2674_v32 = vld [vmem:[#allocation2 + $0x12d] sm:$0xff] }
 0x1e1   : > { %3522 = vperm.xlu0 %9222, %v3412_v36   ;;  %v2676_v36 = vld [vmem:[#allocation2 + $0x13d] sm:$0x3f] }
 0x1e4   : > { %3517 = vperm.xlu1 %9223, %v3411_v35   ;;  %v2675_v35 = vld [vmem:[#allocation2 + $0x135] sm:$0xff] }
 0x1e5   : > { %3532 = vperm.xlu0 %9222, %v3414_v41   ;;  %v2980_v41 = vld [vmem:[#allocation2 + $0x36] sm:$0xff] }
 0x1e6   : > { %8136 = vmatmul.mubr.msk.bf16.gmra.mrb[8].mxu0 %vm251_vm0, %v2009_v33  ;;  %v2645_v33 = vld [vmem:[#allocation2 + $0x45] sm:$0xff] }
 0x1e7   : > { %8139 = vmatprep.mubr.msk.bf16.mxu0 %vm251_vm0, %v2010_v38  ;;  %v2679_v38 = vpack.c.bf16 %v2646_v34, %v2645_v33  ;;  %v2692_v33 = vpack.c.bf16 %v2672_v30, %v2671_v29  ;;  %v2693_v34 = vpack.c.bf16 %v2674_v32, %v2673_v31  ;;  %v9243_v29 = vld [vmem:[%s10494_s3 + $0x18] sm:$0xff]   ;;  %v3741_v30 = vld [vmem:[#allocation2 + $0x1] sm:$0xff]  ;;  %v3742_v31 = vld [vmem:[#allocation2 + $0x9] sm:$0xff] }
 0x1e8   : > { %3527 = vperm.xlu1 %9223, %v3413_v40   ;;  %v3777_v32 = vpack.c.bf16 %v3742_v31, %v3741_v30 }
 0x1e9   : > { %3542 = vperm.xlu0 %9222, %v3416_v48   ;;  %v2985_v48 = vld [vmem:[#allocation2 + $0x5e] sm:$0xff] }
 0x1ea   : > { %8247 = vmatprep.mubr.msk.bf16.mxu1 %vm251_vm0, %v3777_v32  ;;  %v9245_v32 = vld [vmem:[%s10494_s3 + $0x8] sm:$0xff]  }
 0x1ec   : > { %3537 = vperm.xlu1 %9223, %v3415_v46  }
 0x1ee   : > { %8140 = vmatmul.mubr.msk.bf16.gmra.mrb[12].mxu0 %vm251_vm0, %v2011_v39  ;;  %v9241_v39 = vld [vmem:[%s10492_s1 + $0x88] sm:$0xff]  }
 0x1ef   : > { %8143 = vmatprep.mubr.msk.bf16.mxu0 %vm251_vm0, %v2012_v44  ;;  %v2649_v44 = vld [vmem:[#allocation2 + $0x65] sm:$0xff] }
 0x1f6   : > { %8144 = vmatmul.mubr.msk.bf16.gmra.mrb[16].mxu0 %vm251_vm0, %v2013_v45  ;;  %v2650_v45 = vld [vmem:[#allocation2 + $0x6d] sm:$0xff] }
 0x1f7   : > { %8147 = vmatprep.mubr.msk.bf16.mxu0 %vm251_vm0, %v2014_v50  ;;  %v2681_v49 = vpack.c.bf16 %v2650_v45, %v2649_v44  ;;  %v3417_v50 = vld [vmem:[%s10496_s5 + $0xb8] sm:$0xff]  ;;  %v2983_v44 = vld [vmem:[#allocation2 + $0x4e] sm:$0xff]  ;;  %v3015_v45 = vpack.c.bf16 %v2981_v43, %v2980_v41 }
 0x1f8   : > { %3547 = vperm.xlu1 %9223, %v3417_v50   ;;  %v3016_v46 = vpack.c.bf16 %v2983_v44, %v2982_v42  ;;  %v2987_v50 = vld [vmem:[#allocation2 + $0x6e] sm:$0xff] }
 0x1fe   : > { %8148 = vmatmul.mubr.msk.bf16.gmra.mrb[20].mxu0 %vm251_vm0, %v2015_v51  ;;  %v3418_v51 = vld [vmem:[%s10496_s5 + $0xc0] sm:$0xff] }
 0x1ff   : > { %8151 = vmatprep.mubr.msk.bf16.mxu0 %vm251_vm0, %v2016_v56  ;;  %3552 = vperm.xlu0 %9222, %v3418_v51   ;;  %v3419_v56 = vld [vmem:[%s10496_s5 + $0xc8] sm:$0xff] }
 0x200   : > { %3557 = vperm.xlu1 %9223, %v3419_v56   ;;  %v2991_v56 = vld [vmem:[#allocation2 + $0x8e] sm:$0xff] }
 0x203   : > { %3562 = vperm.xlu0 %9222, %v3420_v58   ;;  %v3020_v58 = vpack.c.bf16 %v2991_v56, %v2990_v55 }
 0x204   : > { %3567 = vperm.xlu1 %9223, %v3421_v60   ;;  %v2993_v60 = vld [vmem:[#allocation2 + $0x9e] sm:$0xff] }
 0x206   : > { %8152 = vmatmul.mubr.msk.bf16.gmra.mrb[24].mxu0 %vm251_vm0, %v2017_v57  ;;  %v2682_v57 = vpack.c.bf16 %v2652_v53, %v2651_v52  ;;  %v2988_v53 = vld [vmem:[#allocation2 + $0x76] sm:$0xff] }
 0x207   : > { %8155 = vmatprep.mubr.msk.bf16.mxu0 %vm251_vm0, %v2018_v62  ;;  %v2655_v62 = vld [vmem:[#allocation2 + $0x95] sm:$0xff]  ;;  %3572 = vperm.xlu0 %9222, %v3422_v61   ;;  %v2994_v61 = vld [vmem:[#allocation2 + $0xa6] sm:$0xff] }
 0x208   : > { %3577 = vperm.xlu1 %9223, %v3423_v2   ;;  %v2997_v2 = vld [vmem:[#allocation2 + $0xbe] sm:$0xff] }
 0x20c   : > { %3587 = vperm.xlu1 %9223, %v3425_v6  }
 0x20e   : > { %8156 = vmatmul.mubr.msk.bf16.gmra.mrb[28].mxu0 %vm251_vm0, %v2019_v63  ;;  %v2656_v63 = vld [vmem:[#allocation2 + $0x9d] sm:$0xff] }
 0x20f   : > { %8159 = vmatprep.mubr.msk.bf16.mxu0 %vm251_vm0, %v2356_v18  ;;  %v2684_v3 = vpack.c.bf16 %v2656_v63, %v2655_v62  ;;  %v2664_v18 = vld [vmem:[#allocation2 + $0xdd] sm:$0xff]  ;;  %v2995_v62 = vld [vmem:[#allocation2 + $0xae] sm:$0xff] }
 0x210   : > { %3597 = vperm.xlu1 %9223, %v3427_v12   ;;  %v2688_v21 = vpack.c.bf16 %v2664_v18, %v2663_v17  ;;  %v3022_v0 = vpack.c.bf16 %v2995_v62, %v2994_v61  ;;  %v3026_v12 = vpack.c.bf16 %v3003_v10, %v3002_v9 }
 0x214   : > { %3607 = vperm.xlu1 %9223, %v3429_v16   ;;  %v3007_v16 = vld [vmem:[#allocation2 + $0x10e] sm:$0xff] }
 0x216   : > { %8160 = vmatmul.mubr.msk.bf16.gmra.mrb[32].mxu0 %vm251_vm0, %v2357_v27  ;;  %v2690_v27 = vpack.c.bf16 %v2668_v24, %v2667_v23  ;;  %v3029_v23 = vpack.c.bf16 %v3009_v20, %v3008_v19 }
 0x217   : > { %8167 = vmatprep.mubr.msk.bf16.mxu0 %vm251_vm0, %v2677_v28  ;;  %v2691_v28 = vpack.c.bf16 %v2670_v26, %v2669_v25  ;;  %v3012_v25 = vld [vmem:[#allocation2 + $0x136] sm:$0xff]  ;;  %v3013_v26 = vld [vmem:[#allocation2 + $0x13e] sm:$0x3f] }
 0x21e   : > { %8168 = vmatmul.mubr.msk.bf16.vlgmr.msra.gmra.mrb[0].mxu0 %vm251_vm0, %v2678_v37  ;;  %v2978_v37 = vld [vmem:[#allocation2 + $0x26] sm:$0xff] }
 0x21f   : > { %8204 = vmatpush3.bf16.msra.mxu0 %v9705_v4  ;;  %8171 = vmatprep.mubr.msk.bf16.mxu0 %vm251_vm0, %v2679_v38  ;;  %v3424_v4 = vld [vmem:[%s10496_s5 + $0xf0] sm:$0xff] }
 0x220   : > { %8205 = vmatprep.subr.bf16.mxu0 %v9241_v39  ;;  %3582 = vperm.xlu0 %9222, %v3424_v4   ;;  %v2979_v38 = vld [vmem:[#allocation2 + $0x2e] sm:$0xff] }
 0x221   : > { %v3014_v40 = vpack.c.bf16 %v2979_v38, %v2978_v37  ;;  %v2999_v4 = vld [vmem:[#allocation2 + $0xce] sm:$0xff] }
 0x223   : > { %8206 = vmatpush3.bf16.msra.mxu0 %v9241_v39  ;;  %v2694_v39 = vpack.c.bf16 %v2676_v36, %v2675_v35  ;;  %v3443_v35 = vpop.permute.xlu1 %3442 }
 0x224   : > { %3592 = vperm.xlu0 %9222, %v3426_v7   ;;  %v3000_v7 = vld [vmem:[#allocation2 + $0xd6] sm:$0xff] }
 0x225   : > { %v3025_v11 = vpack.c.bf16 %v3001_v8, %v3000_v7 }
 0x226   : > { %8172 = vmatmul.mubr.msk.bf16.gmra.mrb[4].mxu0 %vm251_vm0, %v2680_v47  ;;  %v2984_v47 = vld [vmem:[#allocation2 + $0x56] sm:$0xff] }
 0x227   : > { %8175 = vmatprep.mubr.msk.bf16.mxu0 %vm251_vm0, %v2681_v49  ;;  %v2986_v49 = vld [vmem:[#allocation2 + $0x66] sm:$0xff]  ;;  %v3017_v51 = vpack.c.bf16 %v2985_v48, %v2984_v47  ;;  %v3448_v37 = vpop.permute.xlu1 %3447 }
 0x228   : > { %3602 = vperm.xlu0 %9222, %v3428_v14   ;;  %v3018_v52 = vpack.c.bf16 %v2987_v50, %v2986_v49  ;;  %v3005_v14 = vld [vmem:[#allocation2 + $0xfe] sm:$0xff] }
 0x22e   : > { %8176 = vmatmul.mubr.msk.bf16.gmra.mrb[8].mxu0 %vm251_vm0, %v2682_v57  ;;  %v3019_v57 = vpack.c.bf16 %v2989_v54, %v2988_v53 }
 0x22f   : > { %8179 = vmatprep.mubr.msk.bf16.mxu0 %vm251_vm0, %v2683_v59  ;;  %v2992_v59 = vld [vmem:[#allocation2 + $0x96] sm:$0xff] }
 0x230   : > { %v3021_v63 = vpack.c.bf16 %v2993_v60, %v2992_v59 }
 0x236   : > { %8180 = vmatmul.mubr.msk.bf16.gmra.mrb[12].mxu0 %vm251_vm0, %v2684_v3  ;;  %v2998_v3 = vld [vmem:[#allocation2 + $0xc6] sm:$0xff] }
 0x237   : > { %8183 = vmatprep.mubr.msk.bf16.mxu0 %vm251_vm0, %v2685_v5  ;;  %v3023_v5 = vpack.c.bf16 %v2997_v2, %v2996_v1  ;;  %v3024_v6 = vpack.c.bf16 %v2999_v4, %v2998_v3 }
 0x23e   : > { %8184 = vmatmul.mubr.msk.bf16.gmra.mrb[16].mxu0 %vm251_vm0, %v2686_v13  ;;  %v3004_v13 = vld [vmem:[#allocation2 + $0xf6] sm:$0xff] }
 0x23f   : > { %8187 = vmatprep.mubr.msk.bf16.mxu0 %vm251_vm0, %v2687_v15  ;;  %v3006_v15 = vld [vmem:[#allocation2 + $0x106] sm:$0xff]  ;;  %v3027_v17 = vpack.c.bf16 %v3005_v14, %v3004_v13 }
 0x240   : > { %v3028_v18 = vpack.c.bf16 %v3007_v16, %v3006_v15 }
 0x246   : > { %8188 = vmatmul.mubr.msk.bf16.gmra.mrb[20].mxu0 %vm251_vm0, %v2688_v21  ;;  %v3010_v21 = vld [vmem:[#allocation2 + $0x126] sm:$0xff] }
 0x247   : > { %8191 = vmatprep.mubr.msk.bf16.mxu0 %vm251_vm0, %v2689_v22  ;;  %v3011_v22 = vld [vmem:[#allocation2 + $0x12e] sm:$0xff] }
 0x248   : > { %v3030_v24 = vpack.c.bf16 %v3011_v22, %v3010_v21 }
 0x24e   : > { %8192 = vmatmul.mubr.msk.bf16.gmra.mrb[24].mxu0 %vm251_vm0, %v2690_v27  ;;  %v3031_v27 = vpack.c.bf16 %v3013_v26, %v3012_v25 }
 0x24f   : > { %8195 = vmatprep.mubr.msk.bf16.mxu0 %vm251_vm0, %v2691_v28  ;;  %v9242_v28 = vld [vmem:[%s10494_s3 + $0x10] sm:$0xff]  }
 0x250   : > { %8243 = vmatprep.subr.bf16.mxu1 %v9242_v28 }
 0x251   : > { %8244 = vmatpush3.bf16.msra.mxu1 %v9242_v28 }
 0x252   : > { %8245 = vmatprep.subr.bf16.mxu1 %v9243_v29 }
 0x255   : > { %8246 = vmatpush3.bf16.msra.mxu1 %v9243_v29 }
 0x256   : > { %8196 = vmatmul.mubr.msk.bf16.gmra.mrb[28].mxu0 %vm251_vm0, %v2692_v33  ;;  %v9882_v33 = vld [vmem:[%s10494_s3] sm:$0xff]  }
 0x257   : > { %8199 = vmatprep.mubr.msk.bf16.mxu0 %vm251_vm0, %v2693_v34  ;;  %8283 = vmatprep.subr.bf16.mxu1 %v9882_v33  ;;  %v3433_v34 = vpop.permute.xlu0 %3432 }
 0x25b   : > { %v3438_v36 = vpop.permute.xlu0 %3437 }
 0x25e   : > { %8200 = vmatmul.mubr.msk.bf16.gmra.mrb[32].mxu0 %vm251_vm0, %v2694_v39  ;;  %v3458_v39 = vpop.permute.xlu1 %3457 }
 0x25f   : > { %8207 = vmatprep.mubr.msk.bf16.mxu0 %vm251_vm0, %v3014_v40  ;;  %v3453_v38 = vpop.permute.xlu0 %3452 }
 0x262   : > { %v3468_v41 = vpop.permute.xlu1 %3467 }
 0x263   : > { %v3463_v40 = vpop.permute.xlu0 %3462 }
 0x266   : > { %8208 = vmatmul.mubr.msk.bf16.vlgmr.msra.gmra.mrb[0].mxu0 %vm251_vm0, %v3015_v45  ;;  %v9887_v42 = vpop.permute.xlu1 %3477 }
 0x267   : > { %8211 = vmatprep.mubr.msk.bf16.mxu0 %vm251_vm0, %v3016_v46  ;;  %v9885_v43 = vpop.permute.xlu0 %3472  ;;  %v9896_v46 = vld [vmem:[%s10493_s2] ss:$0 sm:$0xff] }
 0x26a   : > { %v9891_v45 = vpop.permute.xlu1 %3487 }
 0x26b   : > { %v9889_v44 = vpop.permute.xlu0 %3482 }
 0x26e   : > { %8212 = vmatmul.mubr.msk.bf16.gmra.mrb[4].mxu0 %vm251_vm0, %v3017_v51  ;;  %v9903_v56 = vpop.permute.xlu1 %3497 }
 0x26f   : > { %8215 = vmatprep.mubr.msk.bf16.mxu0 %vm251_vm0, %v3018_v52  ;;  %v9899_v50 = vpop.permute.xlu0 %3492 }
 0x276   : > { %8216 = vmatmul.mubr.msk.bf16.gmra.mrb[8].mxu0 %vm251_vm0, %v3019_v57 }
 0x277   : > { %8219 = vmatprep.mubr.msk.bf16.mxu0 %vm251_vm0, %v3020_v58 }
 0x27e   : > { %8220 = vmatmul.mubr.msk.bf16.gmra.mrb[12].mxu0 %vm251_vm0, %v3021_v63 }
 0x27f   : > { %8223 = vmatprep.mubr.msk.bf16.mxu0 %vm251_vm0, %v3022_v0  ;;  %v9907_v0 = vpop.permute.xlu0 %3502 }
 0x283   : > { %v9918_v15 = vpop.permute.xlu0 %3512 }
 0x286   : > { %8224 = vmatmul.mubr.msk.bf16.gmra.mrb[16].mxu0 %vm251_vm0, %v3023_v5  ;;  %v9912_v5 = vpop.permute.xlu1 %3507 }
 0x287   : > { %8227 = vmatprep.mubr.msk.bf16.mxu0 %vm251_vm0, %v3024_v6 }
 0x28a   : > { %v9921_v19 = vpop.permute.xlu1 %3517 }
 0x28e   : > { %8228 = vmatmul.mubr.msk.bf16.gmra.mrb[20].mxu0 %vm251_vm0, %v3025_v11 }
 0x28f   : > { %8231 = vmatprep.mubr.msk.bf16.mxu0 %vm251_vm0, %v3026_v12 }
 0x296   : > { %8232 = vmatmul.mubr.msk.bf16.gmra.mrb[24].mxu0 %vm251_vm0, %v3027_v17 }
 0x297   : > { %8235 = vmatprep.mubr.msk.bf16.mxu0 %vm251_vm0, %v3028_v18 }
 0x29e   : > { %8236 = vmatmul.mubr.msk.bf16.gmra.mrb[28].mxu0 %vm251_vm0, %v3029_v23 }
 0x29f   : > { %8239 = vmatprep.mubr.msk.bf16.mxu0 %vm251_vm0, %v3030_v24 }
 0x2a6   : > { %8240 = vmatmul.mubr.msk.bf16.gmra.mrb[32].mxu0 %vm251_vm0, %v3031_v27 }
 0x339   : > { %v8209_v47 = vpop.f32.mrb[0].mxu0 }
 0x33a   : > { %v3324_v48 = vadd.f32 %v8209_v47, %v9896_v46  ;;  %v3136_v49 = vpop.f32.mrb[1].mxu0  ;;  %v9939_v47 = vpop.permute.xlu1 %3527 }
 0x33b   : > { %v3322_v51 = vadd.f32 %v9896_v46, %v3136_v49  ;;  %v8210_v52 = vpop.f32.mrb[2].mxu0 }
 0x33c   : > { %v3360_v53 = vmax.f32 %v3324_v48, 0.0  ;;  %v3325_v54 = vadd.f32 %v8210_v52, %v9896_v46  ;;  %v3139_v55 = vpop.f32.mrb[3].mxu0 }
 0x33d   : > { %v3358_v57 = vmax.f32 %v3322_v51, 0.0  ;;  %v3323_v58 = vadd.f32 %v9896_v46, %v3139_v55  ;;  %v9945_v51 = vld [vmem:[%s10494_s3 + $0x20] sm:$0xff]  }
 0x33e   : > { %v3612_v59 = vmul.f32 %v3443_v35, %v3360_v53  ;;  %v3361_v60 = vmax.f32 %v3325_v54, 0.0 }
 0x33f   : > { %v3610_v61 = vmul.f32 %v3433_v34, %v3358_v57  ;;  %v3359_v62 = vmax.f32 %v3323_v58, 0.0 }
 0x340   : > { %3648 = vst.msk [vmem:[#allocation2 + $0x23] sm:$0xff] %vm251_vm0, %v3612_v59  ;;  %v3613_v63 = vmul.f32 %v3448_v37, %v3361_v60  ;;  %v9932_v37 = vpop.permute.xlu0 %3522 }
 0x341   : > { %3646 = vst.msk [vmem:[#allocation2 + $0x13] sm:$0xff] %vm251_vm0, %v3610_v61  ;;  %v3611_v1 = vmul.f32 %v3438_v36, %v3359_v62  ;;  %v8213_v2 = vpop.f32.mrb[4].mxu0 }
 0x342   : > { %3649 = vst.msk [vmem:[#allocation2 + $0x2b] sm:$0xff] %vm251_vm0, %v3613_v63  ;;  %v3328_v3 = vadd.f32 %v8213_v2, %v9896_v46  ;;  %v3152_v4 = vpop.f32.mrb[5].mxu0  ;;  %v9959_v2 = vpop.permute.xlu1 %3537 }
 0x343   : > { %3647 = vst.msk [vmem:[#allocation2 + $0x1b] sm:$0xff] %vm251_vm0, %v3611_v1  ;;  %v3326_v6 = vadd.f32 %v9896_v46, %v3152_v4  ;;  %v8214_v7 = vpop.f32.mrb[6].mxu0 }
 0x344   : > { %v3364_v8 = vmax.f32 %v3328_v3, 0.0  ;;  %v3329_v9 = vadd.f32 %v8214_v7, %v9896_v46  ;;  %v3155_v10 = vpop.f32.mrb[7].mxu0  ;;  %v9953_v59 = vpop.permute.xlu0 %3532 }
 0x345   : > { %v3362_v11 = vmax.f32 %v3326_v6, 0.0  ;;  %v3327_v12 = vadd.f32 %v9896_v46, %v3155_v10 }
 0x346   : > { %v3616_v13 = vmul.f32 %v3463_v40, %v3364_v8  ;;  %v3365_v14 = vmax.f32 %v3329_v9, 0.0 }
 0x347   : > { %v3614_v16 = vmul.f32 %v3453_v38, %v3362_v11  ;;  %v3363_v17 = vmax.f32 %v3327_v12, 0.0 }
 0x348   : > { %3652 = vst.msk [vmem:[#allocation2 + $0x43] sm:$0xff] %vm251_vm0, %v3616_v13  ;;  %v3617_v18 = vmul.f32 %v3468_v41, %v3365_v14  ;;  %v3743_v25 = vld [vmem:[#allocation2 + $0x11] sm:$0xff]  ;;  %v3543_v11 = vpop.permute.xlu0 %3542 }
 0x349   : > { %3650 = vst.msk [vmem:[#allocation2 + $0x33] sm:$0xff] %vm251_vm0, %v3614_v16  ;;  %v3615_v20 = vmul.f32 %v3458_v39, %v3363_v17  ;;  %v8217_v21 = vpop.f32.mrb[8].mxu0  ;;  %v3746_v22 = vld [vmem:[#allocation2 + $0x29] sm:$0xff] }
 0x34a   : > { %3653 = vst.msk [vmem:[#allocation2 + $0x4b] sm:$0xff] %vm251_vm0, %v3617_v18  ;;  %v3332_v23 = vadd.f32 %v8217_v21, %v9896_v46  ;;  %v3168_v24 = vpop.f32.mrb[9].mxu0  ;;  %v3744_v26 = vld [vmem:[#allocation2 + $0x19] sm:$0xff]  ;;  %v3745_v27 = vld [vmem:[#allocation2 + $0x21] sm:$0xff] }
 0x34b   : > { %3651 = vst.msk [vmem:[#allocation2 + $0x3b] sm:$0xff] %vm251_vm0, %v3615_v20  ;;  %v3330_v28 = vadd.f32 %v9896_v46, %v3168_v24  ;;  %v8218_v29 = vpop.f32.mrb[10].mxu0  ;;  %v3778_v30 = vpack.c.bf16 %v3744_v26, %v3743_v25  ;;  %v3779_v31 = vpack.c.bf16 %v3746_v22, %v3745_v27  ;;  %v3548_v20 = vpop.permute.xlu1 %3547 }
 0x34c   : > { %v3368_v34 = vmax.f32 %v3332_v23, 0.0  ;;  %v3333_v35 = vadd.f32 %v8218_v29, %v9896_v46  ;;  %v3171_v36 = vpop.f32.mrb[11].mxu0 }
 0x34d   : > { %v3366_v38 = vmax.f32 %v3330_v28, 0.0  ;;  %v3331_v39 = vadd.f32 %v9896_v46, %v3171_v36  ;;  %8248 = vmatmul.mubr.msk.bf16.vlgmr.msra.gmra.mrb[0].mxu1 %vm251_vm0, %v3778_v30  ;;  %v3553_v30 = vpop.permute.xlu0 %3552 }
 0x34e   : > { %v3620_v40 = vmul.f32 %v9889_v44, %v3368_v34  ;;  %v3369_v41 = vmax.f32 %v3333_v35, 0.0  ;;  %8284 = vmatpush3.bf16.msra.mxu1 %v9882_v33  ;;  %8251 = vmatprep.mubr.msk.bf16.mxu1 %vm251_vm0, %v3779_v31 }
 0x34f   : > { %v3618_v48 = vmul.f32 %v9885_v43, %v3366_v38  ;;  %v3367_v49 = vmax.f32 %v3331_v39, 0.0  ;;  %8285 = vmatprep.subr.bf16.mxu1 %v9245_v32  ;;  %v9982_v35 = vpop.permute.xlu1 %3557 }
 0x350   : > { %3656 = vst.msk [vmem:[#allocation2 + $0x63] sm:$0xff] %vm251_vm0, %v3620_v40  ;;  %v3621_v44 = vmul.f32 %v9891_v45, %v3369_v41  ;;  %v3747_v55 = vld [vmem:[#allocation2 + $0x31] sm:$0xff] }
 0x351   : > { %3654 = vst.msk [vmem:[#allocation2 + $0x53] sm:$0xff] %vm251_vm0, %v3618_v48  ;;  %v3619_v33 = vmul.f32 %v9887_v42, %v3367_v49  ;;  %v8221_v52 = vpop.f32.mrb[12].mxu0  ;;  %v3750_v53 = vld [vmem:[#allocation2 + $0x49] sm:$0xff] }
 0x352   : > { %3657 = vst.msk [vmem:[#allocation2 + $0x6b] sm:$0xff] %vm251_vm0, %v3621_v44  ;;  %v3336_v43 = vadd.f32 %v8221_v52, %v9896_v46  ;;  %v3184_v54 = vpop.f32.mrb[13].mxu0  ;;  %v3748_v57 = vld [vmem:[#allocation2 + $0x39] sm:$0xff]  ;;  %v3749_v58 = vld [vmem:[#allocation2 + $0x41] sm:$0xff]  ;;  %8286 = vmatpush3.bf16.msra.mxu1 %v9245_v32 }
 0x353   : > { %3655 = vst.msk [vmem:[#allocation2 + $0x5b] sm:$0xff] %vm251_vm0, %v3619_v33  ;;  %v3334_v45 = vadd.f32 %v9896_v46, %v3184_v54  ;;  %v8222_v60 = vpop.f32.mrb[14].mxu0  ;;  %v3780_v61 = vpack.c.bf16 %v3748_v57, %v3747_v55  ;;  %v3781_v42 = vpack.c.bf16 %v3750_v53, %v3749_v58  ;;  %8323 = vmatprep.subr.bf16.mxu1 %v9945_v51 }
 0x354   : > { %v3372_v62 = vmax.f32 %v3336_v43, 0.0  ;;  %v3337_v63 = vadd.f32 %v8222_v60, %v9896_v46  ;;  %v3187_v1 = vpop.f32.mrb[15].mxu0  ;;  %v3563_v43 = vpop.permute.xlu0 %3562 }
 0x355   : > { %v3370_v3 = vmax.f32 %v3334_v45, 0.0  ;;  %v3335_v4 = vadd.f32 %v9896_v46, %v3187_v1  ;;  %8252 = vmatmul.mubr.msk.bf16.gmra.mrb[4].mxu1 %vm251_vm0, %v3780_v61  ;;  %v3568_v45 = vpop.permute.xlu1 %3567 }
 0x356   : > { %v3624_v6 = vmul.f32 %v9907_v0, %v3372_v62  ;;  %v3373_v7 = vmax.f32 %v3337_v63, 0.0  ;;  %8255 = vmatprep.mubr.msk.bf16.mxu1 %vm251_vm0, %v3781_v42 }
 0x357   : > { %v3622_v8 = vmul.f32 %v9899_v50, %v3370_v3  ;;  %v3371_v9 = vmax.f32 %v3335_v4, 0.0 }
 0x358   : > { %3660 = vst.msk [vmem:[#allocation2 + $0x83] sm:$0xff] %vm251_vm0, %v3624_v6  ;;  %v3625_v10 = vmul.f32 %v9912_v5, %v3373_v7  ;;  %v3751_v17 = vld [vmem:[#allocation2 + $0x51] sm:$0xff] }
 0x359   : > { %3658 = vst.msk [vmem:[#allocation2 + $0x73] sm:$0xff] %vm251_vm0, %v3622_v8  ;;  %v3623_v12 = vmul.f32 %v9903_v56, %v3371_v9  ;;  %v8225_v13 = vpop.f32.mrb[16].mxu0  ;;  %v3754_v14 = vld [vmem:[#allocation2 + $0x69] sm:$0xff]  ;;  %v3573_v9 = vpop.permute.xlu0 %3572 }
 0x35a   : > { %3661 = vst.msk [vmem:[#allocation2 + $0x8b] sm:$0xff] %vm251_vm0, %v3625_v10  ;;  %v3340_v0 = vadd.f32 %v8225_v13, %v9896_v46  ;;  %v3200_v16 = vpop.f32.mrb[17].mxu0  ;;  %v3752_v18 = vld [vmem:[#allocation2 + $0x59] sm:$0xff]  ;;  %v3753_v50 = vld [vmem:[#allocation2 + $0x61] sm:$0xff] }
 0x35b   : > { %3659 = vst.msk [vmem:[#allocation2 + $0x7b] sm:$0xff] %vm251_vm0, %v3623_v12  ;;  %v3338_v5 = vadd.f32 %v9896_v46, %v3200_v16  ;;  %v8226_v21 = vpop.f32.mrb[18].mxu0  ;;  %v3782_v22 = vpack.c.bf16 %v3752_v18, %v3751_v17  ;;  %v3783_v23 = vpack.c.bf16 %v3754_v14, %v3753_v50 }
 0x35c   : > { %v3376_v24 = vmax.f32 %v3340_v0, 0.0  ;;  %v3341_v56 = vadd.f32 %v8226_v21, %v9896_v46  ;;  %v3203_v25 = vpop.f32.mrb[19].mxu0  ;;  %v3578_v0 = vpop.permute.xlu1 %3577 }
 0x35d   : > { %v3374_v26 = vmax.f32 %v3338_v5, 0.0  ;;  %v3339_v27 = vadd.f32 %v9896_v46, %v3203_v25  ;;  %8256 = vmatmul.mubr.msk.bf16.gmra.mrb[8].mxu1 %vm251_vm0, %v3782_v22  ;;  %v3583_v22 = vpop.permute.xlu0 %3582 }
 0x35e   : > { %v3628_v28 = vmul.f32 %v9932_v37, %v3376_v24  ;;  %v3377_v29 = vmax.f32 %v3341_v56, 0.0  ;;  %8259 = vmatprep.mubr.msk.bf16.mxu1 %vm251_vm0, %v3783_v23 }
 0x35f   : > { %v3626_v31 = vmul.f32 %v9918_v15, %v3374_v26  ;;  %v3375_v32 = vmax.f32 %v3339_v27, 0.0 }
 0x360   : > { %3664 = vst.msk [vmem:[#allocation2 + $0xa3] sm:$0xff] %vm251_vm0, %v3628_v28  ;;  %v3629_v34 = vmul.f32 %v9939_v47, %v3377_v29  ;;  %v3755_v41 = vld [vmem:[#allocation2 + $0x71] sm:$0xff] }
 0x361   : > { %3662 = vst.msk [vmem:[#allocation2 + $0x93] sm:$0xff] %vm251_vm0, %v3626_v31  ;;  %v3627_v36 = vmul.f32 %v9921_v19, %v3375_v32  ;;  %v8229_v38 = vpop.f32.mrb[20].mxu0  ;;  %v3758_v39 = vld [vmem:[#allocation2 + $0x89] sm:$0xff] }
 0x362   : > { %3665 = vst.msk [vmem:[#allocation2 + $0xab] sm:$0xff] %vm251_vm0, %v3629_v34  ;;  %v3344_v37 = vadd.f32 %v8229_v38, %v9896_v46  ;;  %v3216_v40 = vpop.f32.mrb[21].mxu0  ;;  %v3756_v15 = vld [vmem:[#allocation2 + $0x79] sm:$0xff]  ;;  %v3757_v48 = vld [vmem:[#allocation2 + $0x81] sm:$0xff] }
 0x363   : > { %3663 = vst.msk [vmem:[#allocation2 + $0x9b] sm:$0xff] %vm251_vm0, %v3627_v36  ;;  %v3342_v47 = vadd.f32 %v9896_v46, %v3216_v40  ;;  %v8230_v49 = vpop.f32.mrb[22].mxu0  ;;  %v3784_v44 = vpack.c.bf16 %v3756_v15, %v3755_v41  ;;  %v3785_v33 = vpack.c.bf16 %v3758_v39, %v3757_v48  ;;  %v3593_v48 = vpop.permute.xlu0 %3592 }
 0x364   : > { %v3380_v52 = vmax.f32 %v3344_v37, 0.0  ;;  %v3345_v19 = vadd.f32 %v8230_v49, %v9896_v46  ;;  %v3219_v53 = vpop.f32.mrb[23].mxu0 }
 0x365   : > { %v3378_v54 = vmax.f32 %v3342_v47, 0.0  ;;  %v3343_v55 = vadd.f32 %v9896_v46, %v3219_v53  ;;  %8260 = vmatmul.mubr.msk.bf16.gmra.mrb[12].mxu1 %vm251_vm0, %v3784_v44 }
 0x366   : > { %v3632_v57 = vmul.f32 %v3543_v11, %v3380_v52  ;;  %v3381_v58 = vmax.f32 %v3345_v19, 0.0  ;;  %8263 = vmatprep.mubr.msk.bf16.mxu1 %vm251_vm0, %v3785_v33 }
 0x367   : > { %v3630_v60 = vmul.f32 %v9953_v59, %v3378_v54  ;;  %v3379_v61 = vmax.f32 %v3343_v55, 0.0 }
 0x368   : > { %3668 = vst.msk [vmem:[#allocation2 + $0xc3] sm:$0xff] %vm251_vm0, %v3632_v57  ;;  %v3633_v42 = vmul.f32 %v3548_v20, %v3381_v58  ;;  %v3759_v6 = vld [vmem:[#allocation2 + $0x91] sm:$0xff] }
 0x369   : > { %3666 = vst.msk [vmem:[#allocation2 + $0xb3] sm:$0xff] %vm251_vm0, %v3630_v60  ;;  %v3631_v62 = vmul.f32 %v9959_v2, %v3379_v61  ;;  %v8233_v63 = vpop.f32.mrb[24].mxu0  ;;  %v3762_v1 = vld [vmem:[#allocation2 + $0xa9] sm:$0xff] }
 0x36a   : > { %3669 = vst.msk [vmem:[#allocation2 + $0xcb] sm:$0xff] %vm251_vm0, %v3633_v42  ;;  %v3348_v3 = vadd.f32 %v8233_v63, %v9896_v46  ;;  %v3232_v4 = vpop.f32.mrb[25].mxu0  ;;  %v3760_v7 = vld [vmem:[#allocation2 + $0x99] sm:$0xff]  ;;  %v3761_v8 = vld [vmem:[#allocation2 + $0xa1] sm:$0xff] }
 0x36b   : > { %3667 = vst.msk [vmem:[#allocation2 + $0xbb] sm:$0xff] %vm251_vm0, %v3631_v62  ;;  %v3346_v59 = vadd.f32 %v9896_v46, %v3232_v4  ;;  %v8234_v10 = vpop.f32.mrb[26].mxu0  ;;  %v3786_v11 = vpack.c.bf16 %v3760_v7, %v3759_v6  ;;  %v3787_v12 = vpack.c.bf16 %v3762_v1, %v3761_v8 }
 0x36c   : > { %v3384_v13 = vmax.f32 %v3348_v3, 0.0  ;;  %v3349_v2 = vadd.f32 %v8234_v10, %v9896_v46  ;;  %v3235_v14 = vpop.f32.mrb[27].mxu0  ;;  %v3603_v3 = vpop.permute.xlu0 %3602 }
 0x36d   : > { %v3382_v16 = vmax.f32 %v3346_v59, 0.0  ;;  %v3347_v17 = vadd.f32 %v9896_v46, %v3235_v14  ;;  %8264 = vmatmul.mubr.msk.bf16.gmra.mrb[16].mxu1 %vm251_vm0, %v3786_v11 }
 0x36e   : > { %v3636_v18 = vmul.f32 %v3563_v43, %v3384_v13  ;;  %v3385_v50 = vmax.f32 %v3349_v2, 0.0  ;;  %8267 = vmatprep.mubr.msk.bf16.mxu1 %vm251_vm0, %v3787_v12 }
 0x36f   : > { %v3634_v20 = vmul.f32 %v3553_v30, %v3382_v16  ;;  %v3383_v5 = vmax.f32 %v3347_v17, 0.0  ;;  %v3588_v30 = vpop.permute.xlu1 %3587  ;;  %v3683_v17 = vld [vmem:[#allocation2] sm:$0xff] }
 0x370   : > { %3672 = vst.msk [vmem:[#allocation2 + $0xe3] sm:$0xff] %vm251_vm0, %v3636_v18  ;;  %v3637_v21 = vmul.f32 %v3568_v45, %v3385_v50  ;;  %v3763_v27 = vld [vmem:[#allocation2 + $0xb1] sm:$0xff]  ;;  %v3684_v18 = vld [vmem:[#allocation2 + $0x8] sm:$0xff] }
 0x371   : > { %3670 = vst.msk [vmem:[#allocation2 + $0xd3] sm:$0xff] %vm251_vm0, %v3634_v20  ;;  %v3635_v23 = vmul.f32 %v9982_v35, %v3383_v5  ;;  %v8237_v24 = vpop.f32.mrb[28].mxu0  ;;  %v3766_v56 = vld [vmem:[#allocation2 + $0xc9] sm:$0xff]  ;;  %v3719_v5 = vpack.c.bf16 %v3684_v18, %v3683_v17  ;;  %v4287_v18 = vld [vmem:[#allocation2 + $0x12] sm:$0xff] }
 0x372   : > { %3673 = vst.msk [vmem:[#allocation2 + $0xeb] sm:$0xff] %vm251_vm0, %v3637_v21  ;;  %v3352_v25 = vadd.f32 %v8237_v24, %v9896_v46  ;;  %v3248_v26 = vpop.f32.mrb[29].mxu0  ;;  %v3764_v28 = vld [vmem:[#allocation2 + $0xb9] sm:$0xff]  ;;  %v3765_v29 = vld [vmem:[#allocation2 + $0xc1] sm:$0xff]  ;;  %v4290_v17 = vld [vmem:[#allocation2 + $0x2a] sm:$0xff] }
 0x373   : > { %3671 = vst.msk [vmem:[#allocation2 + $0xdb] sm:$0xff] %vm251_vm0, %v3635_v23  ;;  %v3350_v31 = vadd.f32 %v9896_v46, %v3248_v26  ;;  %v8238_v32 = vpop.f32.mrb[30].mxu0  ;;  %v3788_v34 = vpack.c.bf16 %v3764_v28, %v3763_v27  ;;  %v3789_v36 = vpack.c.bf16 %v3766_v56, %v3765_v29  ;;  %v3598_v33 = vpop.permute.xlu1 %3597  ;;  %v3687_v23 = vld [vmem:[#allocation2 + $0x20] sm:$0xff]  ;;  %v3688_v24 = vld [vmem:[#allocation2 + $0x28] sm:$0xff]  ;;  %v3685_v56 = vld [vmem:[#allocation2 + $0x10] sm:$0xff] }
 0x374   : > { %v3388_v38 = vmax.f32 %v3352_v25, 0.0  ;;  %v3353_v35 = vadd.f32 %v8238_v32, %v9896_v46  ;;  %v3251_v39 = vpop.f32.mrb[31].mxu0  ;;  %v9247_v26 = vld [vmem:[%s10494_s3 + $0x28] sm:$0xff]   ;;  %v3721_v27 = vpack.c.bf16 %v3688_v24, %v3687_v23  ;;  %v10044_v28 = vld [vmem:[%s10494_s3 + $0x30] sm:$0xff]   ;;  %v3690_v29 = vld [vmem:[#allocation2 + $0x38] sm:$0xff] }
 0x375   : > { %v3386_v37 = vmax.f32 %v3350_v31, 0.0  ;;  %v3351_v40 = vadd.f32 %v9896_v46, %v3251_v39  ;;  %8268 = vmatmul.mubr.msk.bf16.gmra.mrb[20].mxu1 %vm251_vm0, %v3788_v34  ;;  %v3692_v31 = vld [vmem:[#allocation2 + $0x48] sm:$0xff]  ;;  %v3689_v32 = vld [vmem:[#allocation2 + $0x30] sm:$0xff] }
 0x376   : > { %v3640_v41 = vmul.f32 %v3583_v22, %v3388_v38  ;;  %v3389_v15 = vmax.f32 %v3353_v35, 0.0  ;;  %8271 = vmatprep.mubr.msk.bf16.mxu1 %vm251_vm0, %v3789_v36  ;;  %v3686_v22 = vld [vmem:[#allocation2 + $0x18] sm:$0xff]  ;;  %v3722_v34 = vpack.c.bf16 %v3690_v29, %v3689_v32  ;;  %v3695_v38 = vld [vmem:[#allocation2 + $0x60] sm:$0xff]  ;;  %v3696_v35 = vld [vmem:[#allocation2 + $0x68] sm:$0xff] }
 0x377   : > { %v3638_v47 = vmul.f32 %v3573_v9, %v3386_v37  ;;  %v3387_v49 = vmax.f32 %v3351_v40, 0.0  ;;  %v3608_v9 = vpop.permute.xlu1 %3607  ;;  %v3720_v25 = vpack.c.bf16 %v3686_v22, %v3685_v56  ;;  %v3693_v39 = vld [vmem:[#allocation2 + $0x50] sm:$0xff]  ;;  %v3725_v40 = vpack.c.bf16 %v3696_v35, %v3695_v38  ;;  %v4292_v22 = vld [vmem:[#allocation2 + $0x3a] sm:$0xff]  ;;  %v4293_v23 = vld [vmem:[#allocation2 + $0x42] sm:$0xff] }
 0x378   : > { %3676 = vst.msk [vmem:[#allocation2 + $0x103] sm:$0xff] %vm251_vm0, %v3640_v41  ;;  %v3641_v44 = vmul.f32 %v3588_v30, %v3389_v15  ;;  %v3767_v55 = vld [vmem:[#allocation2 + $0xd1] sm:$0xff]  ;;  %v3691_v30 = vld [vmem:[#allocation2 + $0x40] sm:$0xff] }
 0x379   : > { %3674 = vst.msk [vmem:[#allocation2 + $0xf3] sm:$0xff] %vm251_vm0, %v3638_v47  ;;  %v3639_v52 = vmul.f32 %v3578_v0, %v3387_v49  ;;  %v8241_v19 = vpop.f32.mrb[32].mxu0  ;;  %v3770_v53 = vld [vmem:[#allocation2 + $0xe9] sm:$0xff]  ;;  %v3723_v36 = vpack.c.bf16 %v3692_v31, %v3691_v30  ;;  %v3698_v41 = vld [vmem:[#allocation2 + $0x78] sm:$0xff]  ;;  %v3699_v15 = vld [vmem:[#allocation2 + $0x80] sm:$0xff] }
 0x37a   : > { %3677 = vst.msk [vmem:[#allocation2 + $0x10b] sm:$0xff] %vm251_vm0, %v3641_v44  ;;  %v3356_v43 = vadd.f32 %v8241_v19, %v9896_v46  ;;  %v3264_v54 = vpop.f32.mrb[33].mxu0  ;;  %v3768_v57 = vld [vmem:[#allocation2 + $0xd9] sm:$0xff]  ;;  %v3769_v58 = vld [vmem:[#allocation2 + $0xe1] sm:$0xff]  ;;  %v3697_v47 = vld [vmem:[#allocation2 + $0x70] sm:$0xff] }
 0x37b   : > { %3675 = vst.msk [vmem:[#allocation2 + $0xfb] sm:$0xff] %vm251_vm0, %v3639_v52  ;;  %v3354_v45 = vadd.f32 %v9896_v46, %v3264_v54  ;;  %v8242_v60 = vpop.f32.mrb[34].mxu0  ;;  %v3790_v61 = vpack.c.bf16 %v3768_v57, %v3767_v55  ;;  %v3791_v42 = vpack.c.bf16 %v3770_v53, %v3769_v58  ;;  %v3726_v49 = vpack.c.bf16 %v3698_v41, %v3697_v47  ;;  %v3703_v52 = vld [vmem:[#allocation2 + $0xa0] sm:$0xff]  ;;  %v3704_v19 = vld [vmem:[#allocation2 + $0xa8] sm:$0xff]  ;;  %v3701_v53 = vld [vmem:[#allocation2 + $0x90] sm:$0xff] }
 0x37c   : > { %v3392_v62 = vmax.f32 %v3356_v43, 0.0  ;;  %v3357_v63 = vadd.f32 %v8242_v60, %v9896_v46  ;;  %v3267_v1 = vpop.f32.mrb[35].mxu0  ;;  %v3729_v54 = vpack.c.bf16 %v3704_v19, %v3703_v52  ;;  %v3706_v55 = vld [vmem:[#allocation2 + $0xb8] sm:$0xff]  ;;  %v3707_v57 = vld [vmem:[#allocation2 + $0xc0] sm:$0xff]  ;;  %v3708_v58 = vld [vmem:[#allocation2 + $0xc8] sm:$0xff] }
 0x37d   : > { %v3390_v4 = vmax.f32 %v3354_v45, 0.0  ;;  %v3355_v6 = vadd.f32 %v9896_v46, %v3267_v1  ;;  %8272 = vmatmul.mubr.msk.bf16.gmra.mrb[24].mxu1 %vm251_vm0, %v3790_v61  ;;  %v3705_v45 = vld [vmem:[#allocation2 + $0xb0] sm:$0xff]  ;;  %v3731_v61 = vpack.c.bf16 %v3708_v58, %v3707_v57 }
 0x37e   : > { %v3644_v7 = vmul.f32 %v3603_v3, %v3392_v62  ;;  %v3393_v8 = vmax.f32 %v3357_v63, 0.0  ;;  %8275 = vmatprep.mubr.msk.bf16.mxu1 %vm251_vm0, %v3791_v42  ;;  %v3730_v60 = vpack.c.bf16 %v3706_v55, %v3705_v45  ;;  %v3710_v42 = vld [vmem:[#allocation2 + $0xd8] sm:$0xff]  ;;  %v3711_v62 = vld [vmem:[#allocation2 + $0xe0] sm:$0xff]  ;;  %v3712_v63 = vld [vmem:[#allocation2 + $0xe8] sm:$0xff] }
 0x37f   : > { %v3642_v59 = vmul.f32 %v3593_v48, %v3390_v4  ;;  %v3391_v10 = vmax.f32 %v3355_v6, 0.0  ;;  %v3700_v48 = vld [vmem:[#allocation2 + $0x88] sm:$0xff]  ;;  %v3709_v1 = vld [vmem:[#allocation2 + $0xd0] sm:$0xff]  ;;  %v3733_v4 = vpack.c.bf16 %v3712_v63, %v3711_v62 }
 0x380   : > { %3680 = vst.msk [vmem:[#allocation2 + $0x123] sm:$0xff] %vm251_vm0, %v3644_v7  ;;  %v3645_v11 = vmul.f32 %v3608_v9, %v3393_v8  ;;  %v3771_v2 = vld [vmem:[#allocation2 + $0xf1] sm:$0xff]  ;;  %v3727_v44 = vpack.c.bf16 %v3700_v48, %v3699_v15  ;;  %v3732_v3 = vpack.c.bf16 %v3710_v42, %v3709_v1 }
 0x381   : > { %3678 = vst.msk [vmem:[#allocation2 + $0x113] sm:$0xff] %vm251_vm0, %v3642_v59  ;;  %v3643_v12 = vmul.f32 %v3598_v33, %v3391_v10  ;;  %v3774_v13 = vld [vmem:[#allocation2 + $0x109] sm:$0xff]  ;;  %v3702_v33 = vld [vmem:[#allocation2 + $0x98] sm:$0xff] }
 0x382   : > { %v3772_v14 = vld [vmem:[#allocation2 + $0xf9] sm:$0xff]  ;;  %v3773_v46 = vld [vmem:[#allocation2 + $0x101] sm:$0xff]  ;;  %3682 = vst.msk [vmem:[#allocation2 + $0x12b] sm:$0x3f] %vm3681_vm3, %v3645_v11  ;;  %v3728_v43 = vpack.c.bf16 %v3702_v33, %v3701_v53  ;;  %v3713_v9 = vld [vmem:[#allocation2 + $0xf0] sm:$0xff] }
 0x383   : > { %3679 = vst.msk [vmem:[#allocation2 + $0x11b] sm:$0xff] %vm251_vm0, %v3643_v12  ;;  %v3792_v0 = vpack.c.bf16 %v3772_v14, %v3771_v2  ;;  %v3793_v16 = vpack.c.bf16 %v3774_v13, %v3773_v46  ;;  %v3714_v6 = vld [vmem:[#allocation2 + $0xf8] sm:$0xff]  ;;  %v3715_v7 = vld [vmem:[#allocation2 + $0x100] sm:$0xff]  ;;  %v3716_v8 = vld [vmem:[#allocation2 + $0x108] sm:$0xff] }
 0x384   : > { %v3734_v59 = vpack.c.bf16 %v3714_v6, %v3713_v9  ;;  %v3735_v10 = vpack.c.bf16 %v3716_v8, %v3715_v7  ;;  %v4285_v11 = vld [vmem:[#allocation2 + $0x2] sm:$0xff]  ;;  %v4286_v12 = vld [vmem:[#allocation2 + $0xa] sm:$0xff]  ;;  %v4291_v56 = vld [vmem:[#allocation2 + $0x32] sm:$0xff] }
 0x385   : > { %8276 = vmatmul.mubr.msk.bf16.gmra.mrb[28].mxu1 %vm251_vm0, %v3792_v0  ;;  %v4321_v14 = vpack.c.bf16 %v4286_v12, %v4285_v11  ;;  %v4288_v0 = vld [vmem:[#allocation2 + $0x1a] sm:$0xff]  ;;  %v4294_v24 = vld [vmem:[#allocation2 + $0x4a] sm:$0xff]  ;;  %v4295_v30 = vld [vmem:[#allocation2 + $0x52] sm:$0xff] }
 0x386   : > { %8279 = vmatprep.mubr.msk.bf16.mxu1 %vm251_vm0, %v3793_v16  ;;  %v4289_v16 = vld [vmem:[#allocation2 + $0x22] sm:$0xff]  ;;  %v4298_v29 = vld [vmem:[#allocation2 + $0x6a] sm:$0xff]  ;;  %v4299_v38 = vld [vmem:[#allocation2 + $0x72] sm:$0xff] }
 0x387   : > { %v4306_v41 = vld [vmem:[#allocation2 + $0xaa] sm:$0xff]  ;;  %v4303_v15 = vld [vmem:[#allocation2 + $0x92] sm:$0xff]  ;;  %v4960_v12 = vld [vmem:[#allocation2 + $0x1b] sm:$0xff] }
 0x388   : > { %v3775_v50 = vld [vmem:[#allocation2 + $0x111] sm:$0xff]  ;;  %v9251_v7 = vld [vmem:[%s10494_s3 + $0x48] sm:$0xff]  }
 0x389   : > { %v3717_v2 = vld [vmem:[#allocation2 + $0x110] sm:$0xff]  ;;  %v4657_v11 = vld [vmem:[#allocation2 + $0x12a] sm:$0x3f] }
 0x38a   : > { %v3776_v20 = vld [vmem:[#allocation2 + $0x119] sm:$0x3f]  ;;  %v4310_v33 = vld [vmem:[#allocation2 + $0xca] sm:$0xff] }
 0x38b   : > { %v3794_v21 = vpack.c.bf16 %v3776_v20, %v3775_v50  ;;  %v3718_v13 = vld [vmem:[#allocation2 + $0x118] sm:$0x3f]  ;;  %v10063_v50 = vpack.c.bf16 %v4288_v0, %v4287_v18  ;;  %v4314_v55 = vld [vmem:[#allocation2 + $0xea] sm:$0xff] }
 0x38c   : > { %v3736_v46 = vpack.c.bf16 %v3718_v13, %v3717_v2  ;;  %v9249_v20 = vld [vmem:[%s10494_s3 + $0x38] sm:$0xff]   ;;  %v4318_v42 = vld [vmem:[#allocation2 + $0x10a] sm:$0xff] }
 0x38d   : > { %8280 = vmatmul.mubr.msk.bf16.gmra.mrb[32].mxu1 %vm251_vm0, %v3794_v21  ;;  %v10078_v21 = vld [vmem:[%s10494_s3 + $0x40] sm:$0xff]   ;;  %v4307_v52 = vld [vmem:[#allocation2 + $0xb2] sm:$0xff] }
 0x38e   : > { %8287 = vmatprep.mubr.msk.bf16.mxu1 %vm251_vm0, %v3719_v5  ;;  %v10068_v5 = vpack.c.bf16 %v4290_v17, %v4289_v16  ;;  %v4311_v57 = vld [vmem:[#allocation2 + $0xd2] sm:$0xff]  ;;  %v4655_v9 = vld [vmem:[#allocation2 + $0x11a] sm:$0xff]  ;;  %v4961_v16 = vld [vmem:[#allocation2 + $0x23] sm:$0xff] }
 0x38f   : > { %v4315_v62 = vld [vmem:[#allocation2 + $0xf2] sm:$0xff]  ;;  %v4964_v0 = vld [vmem:[#allocation2 + $0x3b] sm:$0xff] }
 0x390   : > { %v9252_v8 = vld [vmem:[%s10494_s3 + $0x50] sm:$0xff]  }
 0x391   : > { %v4959_v2 = vld [vmem:[#allocation2 + $0x13] sm:$0xff] }
 0x392   : > { %v4963_v18 = vld [vmem:[#allocation2 + $0x33] sm:$0xff] }
 0x395   : > { %8288 = vmatmul.mubr.msk.bf16.vlgmr.msra.gmra.mrb[0].mxu1 %vm251_vm0, %v3720_v25  ;;  %v4324_v25 = vpack.c.bf16 %v4292_v22, %v4291_v56  ;;  %v4968_v22 = vld [vmem:[#allocation2 + $0x5b] sm:$0xff]  ;;  %v4967_v56 = vld [vmem:[#allocation2 + $0x53] sm:$0xff] }
 0x396   : > { %8324 = vmatpush3.bf16.msra.mxu1 %v9945_v51  ;;  %8291 = vmatprep.mubr.msk.bf16.mxu1 %vm251_vm0, %v3721_v27  ;;  %v3694_v51 = vld [vmem:[#allocation2 + $0x58] sm:$0xff] }
 0x397   : > { %8325 = vmatprep.subr.bf16.mxu1 %v9247_v26  ;;  %v3724_v37 = vpack.c.bf16 %v3694_v51, %v3693_v39  ;;  %v4296_v27 = vld [vmem:[#allocation2 + $0x5a] sm:$0xff]  ;;  %v4302_v51 = vld [vmem:[#allocation2 + $0x8a] sm:$0xff] }
 0x398   : > { %v4326_v31 = vpack.c.bf16 %v4296_v27, %v4295_v30  ;;  %v4972_v27 = vld [vmem:[#allocation2 + $0x7b] sm:$0xff]  ;;  %v4971_v30 = vld [vmem:[#allocation2 + $0x73] sm:$0xff] }
 0x39a   : > { %8326 = vmatpush3.bf16.msra.mxu1 %v9247_v26  ;;  %v10081_v26 = vpack.c.bf16 %v4294_v24, %v4293_v23  ;;  %v4965_v23 = vld [vmem:[#allocation2 + $0x43] sm:$0xff] }
 0x39b   : > { %8363 = vmatprep.subr.bf16.mxu1 %v10044_v28 }
 0x39d   : > { %8292 = vmatmul.mubr.msk.bf16.gmra.mrb[4].mxu1 %vm251_vm0, %v3722_v34  ;;  %v4300_v34 = vld [vmem:[#allocation2 + $0x7a] sm:$0xff] }
 0x39e   : > { %8295 = vmatprep.mubr.msk.bf16.mxu1 %vm251_vm0, %v3723_v36  ;;  %v4301_v36 = vld [vmem:[#allocation2 + $0x82] sm:$0xff]  ;;  %v4328_v35 = vpack.c.bf16 %v4300_v34, %v4299_v38  ;;  %v4975_v38 = vld [vmem:[#allocation2 + $0x93] sm:$0xff] }
 0x39f   : > { %v4329_v39 = vpack.c.bf16 %v4302_v51, %v4301_v36  ;;  %v4976_v34 = vld [vmem:[#allocation2 + $0x9b] sm:$0xff]  ;;  %v4973_v36 = vld [vmem:[#allocation2 + $0x83] sm:$0xff] }
 0x3a5   : > { %8296 = vmatmul.mubr.msk.bf16.gmra.mrb[8].mxu1 %vm251_vm0, %v3724_v37  ;;  %v4304_v37 = vld [vmem:[#allocation2 + $0x9a] sm:$0xff] }
 0x3a6   : > { %8299 = vmatprep.mubr.msk.bf16.mxu1 %vm251_vm0, %v3725_v40  ;;  %v4305_v40 = vld [vmem:[#allocation2 + $0xa2] sm:$0xff]  ;;  %v4330_v48 = vpack.c.bf16 %v4304_v37, %v4303_v15  ;;  %v4979_v15 = vld [vmem:[#allocation2 + $0xb3] sm:$0xff] }
 0x3a7   : > { %v4331_v47 = vpack.c.bf16 %v4306_v41, %v4305_v40  ;;  %v4980_v37 = vld [vmem:[#allocation2 + $0xbb] sm:$0xff]  ;;  %v4977_v40 = vld [vmem:[#allocation2 + $0xa3] sm:$0xff] }
 0x3ad   : > { %8300 = vmatmul.mubr.msk.bf16.gmra.mrb[12].mxu1 %vm251_vm0, %v3726_v49  ;;  %v4308_v49 = vld [vmem:[#allocation2 + $0xba] sm:$0xff] }
 0x3ae   : > { %8303 = vmatprep.mubr.msk.bf16.mxu1 %vm251_vm0, %v3727_v44  ;;  %v4309_v44 = vld [vmem:[#allocation2 + $0xc2] sm:$0xff]  ;;  %v4332_v19 = vpack.c.bf16 %v4308_v49, %v4307_v52  ;;  %v4983_v52 = vld [vmem:[#allocation2 + $0xd3] sm:$0xff] }
 0x3af   : > { %v4333_v53 = vpack.c.bf16 %v4310_v33, %v4309_v44  ;;  %v4984_v49 = vld [vmem:[#allocation2 + $0xdb] sm:$0xff]  ;;  %v4981_v44 = vld [vmem:[#allocation2 + $0xc3] sm:$0xff] }
 0x3b5   : > { %8304 = vmatmul.mubr.msk.bf16.gmra.mrb[16].mxu1 %vm251_vm0, %v3728_v43  ;;  %v4312_v43 = vld [vmem:[#allocation2 + $0xda] sm:$0xff] }
 0x3b6   : > { %8307 = vmatprep.mubr.msk.bf16.mxu1 %vm251_vm0, %v3729_v54  ;;  %v4313_v54 = vld [vmem:[#allocation2 + $0xe2] sm:$0xff]  ;;  %v4334_v58 = vpack.c.bf16 %v4312_v43, %v4311_v57  ;;  %v4987_v57 = vld [vmem:[#allocation2 + $0xf3] sm:$0xff] }
 0x3b7   : > { %v4335_v45 = vpack.c.bf16 %v4314_v55, %v4313_v54  ;;  %v4988_v43 = vld [vmem:[#allocation2 + $0xfb] sm:$0xff]  ;;  %v4985_v54 = vld [vmem:[#allocation2 + $0xe3] sm:$0xff] }
 0x3bd   : > { %8308 = vmatmul.mubr.msk.bf16.gmra.mrb[20].mxu1 %vm251_vm0, %v3730_v60  ;;  %v4316_v60 = vld [vmem:[#allocation2 + $0xfa] sm:$0xff] }
 0x3be   : > { %8311 = vmatprep.mubr.msk.bf16.mxu1 %vm251_vm0, %v3731_v61  ;;  %v4317_v61 = vld [vmem:[#allocation2 + $0x102] sm:$0xff]  ;;  %v4336_v63 = vpack.c.bf16 %v4316_v60, %v4315_v62  ;;  %v4991_v62 = vld [vmem:[#allocation2 + $0x113] sm:$0xff] }
 0x3bf   : > { %v4337_v1 = vpack.c.bf16 %v4318_v42, %v4317_v61  ;;  %v4992_v60 = vld [vmem:[#allocation2 + $0x11b] sm:$0xff]  ;;  %v4989_v61 = vld [vmem:[#allocation2 + $0x103] sm:$0xff] }
 0x3c5   : > { %8312 = vmatmul.mubr.msk.bf16.gmra.mrb[24].mxu1 %vm251_vm0, %v3732_v3  ;;  %v4320_v3 = vld [vmem:[#allocation2 + $0x11a] sm:$0x3f] }
 0x3c6   : > { %8315 = vmatprep.mubr.msk.bf16.mxu1 %vm251_vm0, %v3733_v4  ;;  %v4319_v4 = vld [vmem:[#allocation2 + $0x112] sm:$0xff] }
 0x3c7   : > { %v4338_v6 = vpack.c.bf16 %v4320_v3, %v4319_v4  ;;  %v5296_v3 = vld [vmem:[#allocation2 + $0x14] sm:$0xff] }
 0x3cd   : > { %8316 = vmatmul.mubr.msk.bf16.gmra.mrb[28].mxu1 %vm251_vm0, %v3734_v59  ;;  %v4674_v59 = vpack.c.bf16 %v4655_v9, %v4319_v4  ;;  %v5297_v4 = vld [vmem:[#allocation2 + $0x1c] sm:$0xff]  ;;  %v5299_v9 = vld [vmem:[#allocation2 + $0x2c] sm:$0xff] }
 0x3ce   : > { %8319 = vmatprep.mubr.msk.bf16.mxu1 %vm251_vm0, %v3735_v10  ;;  %v4656_v10 = vld [vmem:[#allocation2 + $0x122] sm:$0xff] }
 0x3cf   : > { %v4675_v13 = vpack.c.bf16 %v4657_v11, %v4656_v10  ;;  %v5301_v10 = vld [vmem:[#allocation2 + $0x3c] sm:$0xff]  ;;  %v5298_v11 = vld [vmem:[#allocation2 + $0x24] sm:$0xff] }
 0x3d5   : > { %8320 = vmatmul.mubr.msk.bf16.gmra.mrb[32].mxu1 %vm251_vm0, %v3736_v46  ;;  %v4962_v46 = vld [vmem:[#allocation2 + $0x2b] sm:$0xff] }
 0x3d6   : > { %8327 = vmatprep.mubr.msk.bf16.mxu1 %vm251_vm0, %v4321_v14  ;;  %v4995_v14 = vpack.c.bf16 %v4960_v12, %v4959_v2  ;;  %v4996_v17 = vpack.c.bf16 %v4962_v46, %v4961_v16  ;;  %v10155_v12 = vpack.c.bf16 %v5299_v9, %v5298_v11  ;;  %v5303_v46 = vld [vmem:[#allocation2 + $0x4c] sm:$0xff]  ;;  %v5305_v16 = vld [vmem:[#allocation2 + $0x5c] sm:$0xff] }
 0x3d7   : > { %v5973_v9 = vld [vmem:[#allocation2 + $0x3d] sm:$0xff]  ;;  %v5974_v11 = vld [vmem:[#allocation2 + $0x45] sm:$0xff] }
 0x3dd   : > { %8328 = vmatmul.mubr.msk.bf16.vlgmr.msra.gmra.mrb[0].mxu1 %vm251_vm0, %v10063_v50 }
 0x3de   : > { %8364 = vmatpush3.bf16.msra.mxu1 %v10044_v28  ;;  %8331 = vmatprep.mubr.msk.bf16.mxu1 %vm251_vm0, %v10068_v5  ;;  %v4297_v28 = vld [vmem:[#allocation2 + $0x62] sm:$0xff] }
 0x3df   : > { %8365 = vmatprep.subr.bf16.mxu1 %v9249_v20  ;;  %v4327_v32 = vpack.c.bf16 %v4298_v29, %v4297_v28  ;;  %v4969_v28 = vld [vmem:[#allocation2 + $0x63] sm:$0xff] }
 0x3e2   : > { %8366 = vmatpush3.bf16.msra.mxu1 %v9249_v20  ;;  %v4997_v20 = vpack.c.bf16 %v4964_v0, %v4963_v18  ;;  %v5304_v0 = vld [vmem:[#allocation2 + $0x54] sm:$0xff] }
 0x3e3   : > { %8403 = vmatprep.subr.bf16.mxu1 %v10078_v21 }
 0x3e5   : > { %8332 = vmatmul.mubr.msk.bf16.gmra.mrb[4].mxu1 %vm251_vm0, %v4324_v25 }
 0x3e6   : > { %8335 = vmatprep.mubr.msk.bf16.mxu1 %vm251_vm0, %v10081_v26 }
 0x3ed   : > { %8336 = vmatmul.mubr.msk.bf16.gmra.mrb[8].mxu1 %vm251_vm0, %v4326_v31 }
 0x3ee   : > { %8339 = vmatprep.mubr.msk.bf16.mxu1 %vm251_vm0, %v4327_v32 }
 0x3f5   : > { %8340 = vmatmul.mubr.msk.bf16.gmra.mrb[12].mxu1 %vm251_vm0, %v4328_v35 }
 0x3f6   : > { %8343 = vmatprep.mubr.msk.bf16.mxu1 %vm251_vm0, %v4329_v39 }
 0x3fd   : > { %8344 = vmatmul.mubr.msk.bf16.gmra.mrb[16].mxu1 %vm251_vm0, %v4330_v48 }
 0x3fe   : > { %8347 = vmatprep.mubr.msk.bf16.mxu1 %vm251_vm0, %v4331_v47 }
 0x405   : > { %8348 = vmatmul.mubr.msk.bf16.gmra.mrb[20].mxu1 %vm251_vm0, %v4332_v19 }
 0x406   : > { %8351 = vmatprep.mubr.msk.bf16.mxu1 %vm251_vm0, %v4333_v53 }
 0x40d   : > { %8352 = vmatmul.mubr.msk.bf16.gmra.mrb[24].mxu1 %vm251_vm0, %v4334_v58 }
 0x40e   : > { %8355 = vmatprep.mubr.msk.bf16.mxu1 %vm251_vm0, %v4335_v45 }
 0x415   : > { %8356 = vmatmul.mubr.msk.bf16.gmra.mrb[28].mxu1 %vm251_vm0, %v4336_v63 }
 0x416   : > { %8359 = vmatprep.mubr.msk.bf16.mxu1 %vm251_vm0, %v4337_v1 }
 0x41d   : > { %8360 = vmatmul.mubr.msk.bf16.gmra.mrb[32].mxu1 %vm251_vm0, %v4338_v6  ;;  %v4993_v6 = vld [vmem:[#allocation2 + $0x123] sm:$0xff] }
 0x41e   : > { %8367 = vmatprep.mubr.msk.bf16.mxu1 %vm251_vm0, %v10063_v50  ;;  %v9253_v50 = vld [vmem:[%s10494_s3 + $0x58] sm:$0xff]  }
 0x425   : > { %8368 = vmatmul.mubr.msk.bf16.vlgmr.msra.gmra.mrb[0].mxu1 %vm251_vm0, %v10068_v5  ;;  %v10136_v5 = vld [vmem:[%s10494_s3 + $0x60] sm:$0xff]  }
 0x426   : > { %8404 = vmatpush3.bf16.msra.mxu1 %v10078_v21  ;;  %8371 = vmatprep.mubr.msk.bf16.mxu1 %vm251_vm0, %v4324_v25  ;;  %v4966_v21 = vld [vmem:[#allocation2 + $0x4b] sm:$0xff]  ;;  %v4999_v25 = vpack.c.bf16 %v4968_v22, %v4967_v56 }
 0x427   : > { %8405 = vmatprep.subr.bf16.mxu1 %v9251_v7  ;;  %v4998_v24 = vpack.c.bf16 %v4966_v21, %v4965_v23  ;;  %v5309_v21 = vld [vmem:[#allocation2 + $0x7c] sm:$0xff]  ;;  %v5306_v22 = vld [vmem:[#allocation2 + $0x64] sm:$0xff]  ;;  %v5311_v56 = vld [vmem:[#allocation2 + $0x8c] sm:$0xff] }
 0x42a   : > { %8406 = vmatpush3.bf16.msra.mxu1 %v9251_v7 }
 0x42b   : > { %8443 = vmatprep.subr.bf16.mxu1 %v9252_v8 }
 0x42d   : > { %8372 = vmatmul.mubr.msk.bf16.gmra.mrb[4].mxu1 %vm251_vm0, %v10081_v26  ;;  %v4970_v26 = vld [vmem:[#allocation2 + $0x6b] sm:$0xff] }
 0x42e   : > { %8375 = vmatprep.mubr.msk.bf16.mxu1 %vm251_vm0, %v4326_v31  ;;  %v5000_v29 = vpack.c.bf16 %v4970_v26, %v4969_v28  ;;  %v5001_v31 = vpack.c.bf16 %v4972_v27, %v4971_v30  ;;  %v5313_v26 = vld [vmem:[#allocation2 + $0x9c] sm:$0xff]  ;;  %v5310_v27 = vld [vmem:[#allocation2 + $0x84] sm:$0xff]  ;;  %v5315_v30 = vld [vmem:[#allocation2 + $0xac] sm:$0xff] }
 0x42f   : > { %v5339_v28 = vpack.c.bf16 %v5311_v56, %v5310_v27  ;;  %v5987_v56 = vld [vmem:[#allocation2 + $0xad] sm:$0xff] }
 0x435   : > { %8376 = vmatmul.mubr.msk.bf16.gmra.mrb[8].mxu1 %vm251_vm0, %v4327_v32  ;;  %v4974_v32 = vld [vmem:[#allocation2 + $0x8b] sm:$0xff] }
 0x436   : > { %8379 = vmatprep.mubr.msk.bf16.mxu1 %vm251_vm0, %v4328_v35  ;;  %v5002_v51 = vpack.c.bf16 %v4974_v32, %v4973_v36  ;;  %v5003_v35 = vpack.c.bf16 %v4976_v34, %v4975_v38  ;;  %v5317_v32 = vld [vmem:[#allocation2 + $0xbc] sm:$0xff]  ;;  %v5314_v34 = vld [vmem:[#allocation2 + $0xa4] sm:$0xff]  ;;  %v5319_v38 = vld [vmem:[#allocation2 + $0xcc] sm:$0xff] }
 0x437   : > { %v5341_v36 = vpack.c.bf16 %v5315_v30, %v5314_v34  ;;  %v5991_v30 = vld [vmem:[#allocation2 + $0xcd] sm:$0xff] }
 0x43d   : > { %8380 = vmatmul.mubr.msk.bf16.gmra.mrb[12].mxu1 %vm251_vm0, %v4329_v39  ;;  %v4978_v39 = vld [vmem:[#allocation2 + $0xab] sm:$0xff] }
 0x43e   : > { %8383 = vmatprep.mubr.msk.bf16.mxu1 %vm251_vm0, %v4330_v48  ;;  %v5004_v41 = vpack.c.bf16 %v4978_v39, %v4977_v40  ;;  %v5005_v48 = vpack.c.bf16 %v4980_v37, %v4979_v15  ;;  %v5321_v39 = vld [vmem:[#allocation2 + $0xdc] sm:$0xff]  ;;  %v5318_v37 = vld [vmem:[#allocation2 + $0xc4] sm:$0xff]  ;;  %v5323_v15 = vld [vmem:[#allocation2 + $0xec] sm:$0xff] }
 0x43f   : > { %v5343_v40 = vpack.c.bf16 %v5319_v38, %v5318_v37  ;;  %v5995_v38 = vld [vmem:[#allocation2 + $0xed] sm:$0xff] }
 0x445   : > { %8384 = vmatmul.mubr.msk.bf16.gmra.mrb[16].mxu1 %vm251_vm0, %v4331_v47  ;;  %v4982_v47 = vld [vmem:[#allocation2 + $0xcb] sm:$0xff] }
 0x446   : > { %8387 = vmatprep.mubr.msk.bf16.mxu1 %vm251_vm0, %v4332_v19  ;;  %v5006_v33 = vpack.c.bf16 %v4982_v47, %v4981_v44  ;;  %v5007_v19 = vpack.c.bf16 %v4984_v49, %v4983_v52  ;;  %v5325_v47 = vld [vmem:[#allocation2 + $0xfc] sm:$0xff]  ;;  %v5322_v49 = vld [vmem:[#allocation2 + $0xe4] sm:$0xff]  ;;  %v5327_v52 = vld [vmem:[#allocation2 + $0x10c] sm:$0xff] }
 0x447   : > { %v5345_v44 = vpack.c.bf16 %v5323_v15, %v5322_v49  ;;  %v5999_v15 = vld [vmem:[#allocation2 + $0x10d] sm:$0xff] }
 0x44d   : > { %8388 = vmatmul.mubr.msk.bf16.gmra.mrb[20].mxu1 %vm251_vm0, %v4333_v53  ;;  %v4986_v53 = vld [vmem:[#allocation2 + $0xeb] sm:$0xff] }
 0x44e   : > { %8391 = vmatprep.mubr.msk.bf16.mxu1 %vm251_vm0, %v4334_v58  ;;  %v5008_v55 = vpack.c.bf16 %v4986_v53, %v4985_v54  ;;  %v5009_v58 = vpack.c.bf16 %v4988_v43, %v4987_v57  ;;  %v5329_v53 = vld [vmem:[#allocation2 + $0x11c] sm:$0xff]  ;;  %v5326_v43 = vld [vmem:[#allocation2 + $0x104] sm:$0xff] }
 0x44f   : > { %v5347_v54 = vpack.c.bf16 %v5327_v52, %v5326_v43  ;;  %v5330_v57 = vld [vmem:[#allocation2 + $0x124] sm:$0xff] }
 0x450   : > { %v6002_v52 = vld [vmem:[#allocation2 + $0x125] sm:$0xff] }
 0x455   : > { %8392 = vmatmul.mubr.msk.bf16.gmra.mrb[24].mxu1 %vm251_vm0, %v4335_v45  ;;  %v4990_v45 = vld [vmem:[#allocation2 + $0x10b] sm:$0xff] }
 0x456   : > { %8395 = vmatprep.mubr.msk.bf16.mxu1 %vm251_vm0, %v4336_v63  ;;  %v5010_v42 = vpack.c.bf16 %v4990_v45, %v4989_v61  ;;  %v5011_v63 = vpack.c.bf16 %v4992_v60, %v4991_v62  ;;  %v9257_v60 = vld [vmem:[%s10494_s3 + $0x78] sm:$0xff]   ;;  %v9258_v61 = vld [vmem:[%s10494_s3 + $0x80] sm:$0xff]  }
 0x45d   : > { %8396 = vmatmul.mubr.msk.bf16.gmra.mrb[28].mxu1 %vm251_vm0, %v4337_v1  ;;  %v4994_v1 = vld [vmem:[#allocation2 + $0x12b] sm:$0x3f] }
 0x45e   : > { %8399 = vmatprep.mubr.msk.bf16.mxu1 %vm251_vm0, %v4674_v59  ;;  %v5012_v7 = vpack.c.bf16 %v4994_v1, %v4993_v6  ;;  %v5300_v59 = vld [vmem:[#allocation2 + $0x34] sm:$0xff]  ;;  %v5668_v1 = vld [vmem:[#allocation2 + $0x13c] sm:$0x3f]  ;;  %v5970_v6 = vld [vmem:[#allocation2 + $0x25] sm:$0xff] }
 0x45f   : > { %v10160_v2 = vpack.c.bf16 %v5301_v10, %v5300_v59  ;;  %v5975_v59 = vld [vmem:[#allocation2 + $0x4d] sm:$0xff] }
 0x465   : > { %8400 = vmatmul.mubr.msk.bf16.gmra.mrb[32].mxu1 %vm251_vm0, %v4675_v13  ;;  %v9255_v13 = vld [vmem:[%s10494_s3 + $0x68] sm:$0xff]  }
 0x466   : > { %8407 = vmatprep.mubr.msk.bf16.mxu1 %vm251_vm0, %v4995_v14  ;;  %v10170_v14 = vld [vmem:[%s10494_s3 + $0x70] sm:$0xff]  }
 0x46d   : > { %8408 = vmatmul.mubr.msk.bf16.vlgmr.msra.gmra.mrb[0].mxu1 %vm251_vm0, %v4996_v17  ;;  %v5302_v17 = vld [vmem:[#allocation2 + $0x44] sm:$0xff] }
 0x46e   : > { %8444 = vmatpush3.bf16.msra.mxu1 %v9252_v8  ;;  %8411 = vmatprep.mubr.msk.bf16.mxu1 %vm251_vm0, %v4997_v20  ;;  %v5332_v8 = vpack.c.bf16 %v5297_v4, %v5296_v3  ;;  %v5335_v18 = vpack.c.bf16 %v5303_v46, %v5302_v17  ;;  %v5307_v20 = vld [vmem:[#allocation2 + $0x6c] sm:$0xff] }
 0x46f   : > { %8445 = vmatprep.subr.bf16.mxu1 %v9253_v50  ;;  %v5337_v23 = vpack.c.bf16 %v5307_v20, %v5306_v22  ;;  %v5971_v4 = vld [vmem:[#allocation2 + $0x2d] sm:$0xff] }
 0x470   : > { %v5979_v46 = vld [vmem:[#allocation2 + $0x6d] sm:$0xff] }
 0x471   : > { %v5983_v20 = vld [vmem:[#allocation2 + $0x8d] sm:$0xff] }
 0x472   : > { %8446 = vmatpush3.bf16.msra.mxu1 %v9253_v50  ;;  %v10173_v50 = vpack.c.bf16 %v5305_v16, %v5304_v0  ;;  %v5978_v16 = vld [vmem:[#allocation2 + $0x65] sm:$0xff] }
 0x473   : > { %8483 = vmatprep.subr.bf16.mxu1 %v10136_v5  ;;  %v6010_v17 = vpack.c.bf16 %v5979_v46, %v5978_v16  ;;  %v6321_v46 = vld [vmem:[#allocation2 + $0x96] sm:$0xff]  ;;  %v6324_v16 = vld [vmem:[#allocation2 + $0xae] sm:$0xff] }
 0x475   : > { %8412 = vmatmul.mubr.msk.bf16.gmra.mrb[4].mxu1 %vm251_vm0, %v4998_v24 }
 0x476   : > { %8415 = vmatprep.mubr.msk.bf16.mxu1 %vm251_vm0, %v4999_v25  ;;  %v5312_v25 = vld [vmem:[#allocation2 + $0x94] sm:$0xff] }
 0x47d   : > { %8416 = vmatmul.mubr.msk.bf16.gmra.mrb[8].mxu1 %vm251_vm0, %v5000_v29  ;;  %v5340_v29 = vpack.c.bf16 %v5313_v26, %v5312_v25  ;;  %v5986_v26 = vld [vmem:[#allocation2 + $0xa5] sm:$0xff] }
 0x47e   : > { %8419 = vmatprep.mubr.msk.bf16.mxu1 %vm251_vm0, %v5001_v31  ;;  %v5316_v31 = vld [vmem:[#allocation2 + $0xb4] sm:$0xff]  ;;  %v6014_v27 = vpack.c.bf16 %v5987_v56, %v5986_v26 }
 0x47f   : > { %v6329_v56 = vld [vmem:[#allocation2 + $0xd6] sm:$0xff]  ;;  %v6332_v26 = vld [vmem:[#allocation2 + $0xee] sm:$0xff] }
 0x485   : > { %8420 = vmatmul.mubr.msk.bf16.gmra.mrb[12].mxu1 %vm251_vm0, %v5002_v51  ;;  %v5342_v51 = vpack.c.bf16 %v5317_v32, %v5316_v31  ;;  %v5990_v32 = vld [vmem:[#allocation2 + $0xc5] sm:$0xff] }
 0x486   : > { %8423 = vmatprep.mubr.msk.bf16.mxu1 %vm251_vm0, %v5003_v35  ;;  %v5320_v35 = vld [vmem:[#allocation2 + $0xd4] sm:$0xff]  ;;  %v6016_v34 = vpack.c.bf16 %v5991_v30, %v5990_v32 }
 0x487   : > { %v6333_v30 = vld [vmem:[#allocation2 + $0xf6] sm:$0xff]  ;;  %v6336_v32 = vld [vmem:[#allocation2 + $0x10e] sm:$0xff] }
 0x48d   : > { %8424 = vmatmul.mubr.msk.bf16.gmra.mrb[16].mxu1 %vm251_vm0, %v5004_v41  ;;  %v5344_v41 = vpack.c.bf16 %v5321_v39, %v5320_v35  ;;  %v5994_v39 = vld [vmem:[#allocation2 + $0xe5] sm:$0xff] }
 0x48e   : > { %8427 = vmatprep.mubr.msk.bf16.mxu1 %vm251_vm0, %v5005_v48  ;;  %v5324_v48 = vld [vmem:[#allocation2 + $0xf4] sm:$0xff]  ;;  %v6018_v37 = vpack.c.bf16 %v5995_v38, %v5994_v39  ;;  %v6339_v39 = vld [vmem:[#allocation2 + $0x126] sm:$0xff] }
 0x48f   : > { %v6337_v38 = vld [vmem:[#allocation2 + $0x116] sm:$0xff] }
 0x495   : > { %8428 = vmatmul.mubr.msk.bf16.gmra.mrb[20].mxu1 %vm251_vm0, %v5006_v33  ;;  %v5346_v33 = vpack.c.bf16 %v5325_v47, %v5324_v48  ;;  %v5998_v47 = vld [vmem:[#allocation2 + $0x105] sm:$0xff] }
 0x496   : > { %8431 = vmatprep.mubr.msk.bf16.mxu1 %vm251_vm0, %v5007_v19  ;;  %v5328_v19 = vld [vmem:[#allocation2 + $0x114] sm:$0xff]  ;;  %v6020_v49 = vpack.c.bf16 %v5999_v15, %v5998_v47 }
 0x497   : > { %v6341_v15 = vld [vmem:[#allocation2 + $0x136] sm:$0xff] }
 0x49d   : > { %8432 = vmatmul.mubr.msk.bf16.gmra.mrb[24].mxu1 %vm251_vm0, %v5008_v55  ;;  %v5348_v55 = vpack.c.bf16 %v5329_v53, %v5328_v19  ;;  %v6003_v19 = vld [vmem:[#allocation2 + $0x12d] sm:$0xff] }
 0x49e   : > { %8435 = vmatprep.mubr.msk.bf16.mxu1 %vm251_vm0, %v5009_v58  ;;  %v5331_v58 = vld [vmem:[#allocation2 + $0x12c] sm:$0x3f]  ;;  %v6022_v43 = vpack.c.bf16 %v6003_v19, %v6002_v52 }
 0x49f   : > { %v5349_v45 = vpack.c.bf16 %v5331_v58, %v5330_v57  ;;  %v6308_v58 = vld [vmem:[#allocation2 + $0x2e] sm:$0xff] }
 0x4a5   : > { %8436 = vmatmul.mubr.msk.bf16.gmra.mrb[28].mxu1 %vm251_vm0, %v5010_v42  ;;  %v5666_v42 = vld [vmem:[#allocation2 + $0x12c] sm:$0xff] }
 0x4a6   : > { %8439 = vmatprep.mubr.msk.bf16.mxu1 %vm251_vm0, %v5011_v63  ;;  %v5685_v62 = vpack.c.bf16 %v5666_v42, %v5330_v57  ;;  %v5667_v63 = vld [vmem:[#allocation2 + $0x134] sm:$0xff]  ;;  %v6310_v42 = vld [vmem:[#allocation2 + $0x3e] sm:$0xff] }
 0x4a7   : > { %v5686_v3 = vpack.c.bf16 %v5668_v1, %v5667_v63  ;;  %v6311_v1 = vld [vmem:[#allocation2 + $0x46] sm:$0xff] }
 0x4ad   : > { %8440 = vmatmul.mubr.msk.bf16.gmra.mrb[32].mxu1 %vm251_vm0, %v5012_v7  ;;  %v6006_v7 = vpack.c.bf16 %v5971_v4, %v5970_v6  ;;  %v6313_v4 = vld [vmem:[#allocation2 + $0x56] sm:$0xff]  ;;  %v6314_v6 = vld [vmem:[#allocation2 + $0x5e] sm:$0xff] }
 0x4ae   : > { %8447 = vmatprep.mubr.msk.bf16.mxu1 %vm251_vm0, %v5332_v8  ;;  %v5972_v8 = vld [vmem:[#allocation2 + $0x35] sm:$0xff] }
 0x4af   : > { %v6007_v10 = vpack.c.bf16 %v5973_v9, %v5972_v8  ;;  %v6346_v8 = vpack.c.bf16 %v6314_v6, %v6313_v4  ;;  %v6315_v9 = vld [vmem:[#allocation2 + $0x66] sm:$0xff] }
 0x4b0   : > { %v7450_v6 = vld [vmem:[%s9450_s19 + $0x28] sm:$0xff] }
 0x4b5   : > { %8448 = vmatmul.mubr.msk.bf16.vlgmr.msra.gmra.mrb[0].mxu1 %vm251_vm0, %v10155_v12 }
 0x4b6   : > { %8484 = vmatpush3.bf16.msra.mxu1 %v10136_v5  ;;  %8451 = vmatprep.mubr.msk.bf16.mxu1 %vm251_vm0, %v10160_v2  ;;  %v5308_v5 = vld [vmem:[#allocation2 + $0x74] sm:$0xff] }
 0x4b7   : > { %8485 = vmatprep.subr.bf16.mxu1 %v9255_v13  ;;  %v5338_v24 = vpack.c.bf16 %v5309_v21, %v5308_v5  ;;  %v5982_v21 = vld [vmem:[#allocation2 + $0x85] sm:$0xff] }
 0x4b8   : > { %v6012_v22 = vpack.c.bf16 %v5983_v20, %v5982_v21  ;;  %v6325_v20 = vld [vmem:[#allocation2 + $0xb6] sm:$0xff]  ;;  %v6328_v21 = vld [vmem:[#allocation2 + $0xce] sm:$0xff] }
 0x4ba   : > { %8486 = vmatpush3.bf16.msra.mxu1 %v9255_v13  ;;  %v6008_v13 = vpack.c.bf16 %v5975_v59, %v5974_v11  ;;  %v6318_v11 = vld [vmem:[#allocation2 + $0x7e] sm:$0xff] }
 0x4bb   : > { %8523 = vmatprep.subr.bf16.mxu1 %v10170_v14 }
 0x4bd   : > { %8452 = vmatmul.mubr.msk.bf16.gmra.mrb[4].mxu1 %vm251_vm0, %v5335_v18 }
 0x4be   : > { %8455 = vmatprep.mubr.msk.bf16.mxu1 %vm251_vm0, %v10173_v50 }
 0x4c5   : > { %8456 = vmatmul.mubr.msk.bf16.gmra.mrb[8].mxu1 %vm251_vm0, %v5337_v23 }
 0x4c6   : > { %8459 = vmatprep.mubr.msk.bf16.mxu1 %vm251_vm0, %v5338_v24 }
 0x4cd   : > { %8460 = vmatmul.mubr.msk.bf16.gmra.mrb[12].mxu1 %vm251_vm0, %v5339_v28 }
 0x4ce   : > { %8463 = vmatprep.mubr.msk.bf16.mxu1 %vm251_vm0, %v5340_v29 }
 0x4d5   : > { %8464 = vmatmul.mubr.msk.bf16.gmra.mrb[16].mxu1 %vm251_vm0, %v5341_v36 }
 0x4d6   : > { %8467 = vmatprep.mubr.msk.bf16.mxu1 %vm251_vm0, %v5342_v51 }
 0x4dd   : > { %8468 = vmatmul.mubr.msk.bf16.gmra.mrb[20].mxu1 %vm251_vm0, %v5343_v40 }
 0x4de   : > { %8471 = vmatprep.mubr.msk.bf16.mxu1 %vm251_vm0, %v5344_v41 }
 0x4e5   : > { %8472 = vmatmul.mubr.msk.bf16.gmra.mrb[24].mxu1 %vm251_vm0, %v5345_v44 }
 0x4e6   : > { %8475 = vmatprep.mubr.msk.bf16.mxu1 %vm251_vm0, %v5346_v33 }
 0x4ed   : > { %8476 = vmatmul.mubr.msk.bf16.gmra.mrb[28].mxu1 %vm251_vm0, %v5347_v54 }
 0x4ee   : > { %8479 = vmatprep.mubr.msk.bf16.mxu1 %vm251_vm0, %v5348_v55 }
 0x4f5   : > { %8480 = vmatmul.mubr.msk.bf16.gmra.mrb[32].mxu1 %vm251_vm0, %v5349_v45  ;;  %v6307_v45 = vld [vmem:[#allocation2 + $0x26] sm:$0xff] }
 0x4f6   : > { %8487 = vmatprep.mubr.msk.bf16.mxu1 %vm251_vm0, %v10155_v12  ;;  %v9259_v12 = vld [vmem:[%s10494_s3 + $0x88] sm:$0xff]  }
 0x4fd   : > { %8488 = vmatmul.mubr.msk.bf16.vlgmr.msra.gmra.mrb[0].mxu1 %vm251_vm0, %v10160_v2  ;;  %v5976_v2 = vld [vmem:[#allocation2 + $0x55] sm:$0xff] }
 0x4fe   : > { %8524 = vmatpush3.bf16.msra.mxu1 %v10170_v14  ;;  %8491 = vmatprep.mubr.msk.bf16.mxu1 %vm251_vm0, %v5335_v18  ;;  %v5977_v14 = vld [vmem:[#allocation2 + $0x5d] sm:$0xff]  ;;  %v5980_v18 = vld [vmem:[#allocation2 + $0x75] sm:$0xff] }
 0x4ff   : > { %8525 = vmatprep.subr.bf16.mxu1 %v9257_v60  ;;  %v6009_v0 = vpack.c.bf16 %v5977_v14, %v5976_v2  ;;  %v6319_v2 = vld [vmem:[#allocation2 + $0x86] sm:$0xff] }
 0x502   : > { %8526 = vmatpush3.bf16.msra.mxu1 %v9257_v60  ;;  %v6343_v60 = vpack.c.bf16 %v6308_v58, %v6307_v45 }
 0x503   : > { %8563 = vmatprep.subr.bf16.mxu1 %v9258_v61 }
 0x505   : > { %8492 = vmatmul.mubr.msk.bf16.gmra.mrb[4].mxu1 %vm251_vm0, %v10173_v50  ;;  %v5981_v50 = vld [vmem:[#allocation2 + $0x7d] sm:$0xff] }
 0x506   : > { %8495 = vmatprep.mubr.msk.bf16.mxu1 %vm251_vm0, %v5337_v23  ;;  %v6011_v5 = vpack.c.bf16 %v5981_v50, %v5980_v18  ;;  %v5984_v23 = vld [vmem:[#allocation2 + $0x95] sm:$0xff]  ;;  %v6323_v18 = vld [vmem:[#allocation2 + $0xa6] sm:$0xff] }
 0x507   : > { %v6351_v50 = vpack.c.bf16 %v6324_v16, %v6323_v18 }
 0x50d   : > { %8496 = vmatmul.mubr.msk.bf16.gmra.mrb[8].mxu1 %vm251_vm0, %v5338_v24  ;;  %v5985_v24 = vld [vmem:[#allocation2 + $0x9d] sm:$0xff] }
 0x50e   : > { %8499 = vmatprep.mubr.msk.bf16.mxu1 %vm251_vm0, %v5339_v28  ;;  %v6013_v25 = vpack.c.bf16 %v5985_v24, %v5984_v23  ;;  %v5988_v28 = vld [vmem:[#allocation2 + $0xb5] sm:$0xff]  ;;  %v6327_v23 = vld [vmem:[#allocation2 + $0xc6] sm:$0xff] }
 0x50f   : > { %v6353_v24 = vpack.c.bf16 %v6328_v21, %v6327_v23 }
 0x515   : > { %8500 = vmatmul.mubr.msk.bf16.gmra.mrb[12].mxu1 %vm251_vm0, %v5340_v29  ;;  %v5989_v29 = vld [vmem:[#allocation2 + $0xbd] sm:$0xff] }
 0x516   : > { %8503 = vmatprep.mubr.msk.bf16.mxu1 %vm251_vm0, %v5341_v36  ;;  %v6015_v31 = vpack.c.bf16 %v5989_v29, %v5988_v28  ;;  %v5992_v36 = vld [vmem:[#allocation2 + $0xd5] sm:$0xff]  ;;  %v6331_v28 = vld [vmem:[#allocation2 + $0xe6] sm:$0xff] }
 0x517   : > { %v6355_v29 = vpack.c.bf16 %v6332_v26, %v6331_v28 }
 0x51d   : > { %8504 = vmatmul.mubr.msk.bf16.gmra.mrb[16].mxu1 %vm251_vm0, %v5342_v51  ;;  %v5993_v51 = vld [vmem:[#allocation2 + $0xdd] sm:$0xff] }
 0x51e   : > { %8507 = vmatprep.mubr.msk.bf16.mxu1 %vm251_vm0, %v5343_v40  ;;  %v6017_v35 = vpack.c.bf16 %v5993_v51, %v5992_v36  ;;  %v5996_v40 = vld [vmem:[#allocation2 + $0xf5] sm:$0xff]  ;;  %v6335_v36 = vld [vmem:[#allocation2 + $0x106] sm:$0xff] }
 0x51f   : > { %v6357_v51 = vpack.c.bf16 %v6336_v32, %v6335_v36 }
 0x525   : > { %8508 = vmatmul.mubr.msk.bf16.gmra.mrb[20].mxu1 %vm251_vm0, %v5344_v41  ;;  %v5997_v41 = vld [vmem:[#allocation2 + $0xfd] sm:$0xff] }
 0x526   : > { %8511 = vmatprep.mubr.msk.bf16.mxu1 %vm251_vm0, %v5345_v44  ;;  %v6019_v48 = vpack.c.bf16 %v5997_v41, %v5996_v40  ;;  %v6000_v44 = vld [vmem:[#allocation2 + $0x115] sm:$0xff] }
 0x52d   : > { %8512 = vmatmul.mubr.msk.bf16.gmra.mrb[24].mxu1 %vm251_vm0, %v5346_v33  ;;  %v6001_v33 = vld [vmem:[#allocation2 + $0x11d] sm:$0xff] }
 0x52e   : > { %8515 = vmatprep.mubr.msk.bf16.mxu1 %vm251_vm0, %v5347_v54  ;;  %v6021_v53 = vpack.c.bf16 %v6001_v33, %v6000_v44  ;;  %v6004_v54 = vld [vmem:[#allocation2 + $0x135] sm:$0xff]  ;;  %v10264_v33 = vld [vmem:[%s10495_s4] ss:$0 sm:$0xff] }
 0x52f   : > { %v7445_v44 = vld [vmem:[%s9450_s19 + $0x18] sm:$0xff] }
 0x530   : > { %v6701_v19 = vrot.slane %v7445_v44, 6 }
 0x535   : > { %8516 = vmatmul.mubr.msk.bf16.gmra.mrb[28].mxu1 %vm251_vm0, %v5348_v55  ;;  %v6005_v55 = vld [vmem:[#allocation2 + $0x13d] sm:$0x3f] }
 0x536   : > { %8519 = vmatprep.mubr.msk.bf16.mxu1 %vm251_vm0, %v5685_v62  ;;  %v6023_v57 = vpack.c.bf16 %v6005_v55, %v6004_v54  ;;  %v6312_v62 = vld [vmem:[#allocation2 + $0x4e] sm:$0xff]  ;;  %v6687_v55 = vld [vmem:[%s9450_s19] sm:$0xff] }
 0x53d   : > { %8520 = vmatmul.mubr.msk.bf16.gmra.mrb[32].mxu1 %vm251_vm0, %v5686_v3  ;;  %v6345_v3 = vpack.c.bf16 %v6312_v62, %v6311_v1  ;;  %v6688_v62 = vld [vmem:[%s9450_s19 + $0x8] sm:$0xff]  ;;  %v10276_v1 = vld [vmem:[%s9450_s19 + $0x38] sm:$0xff] }
 0x53e   : > { %8527 = vmatprep.mubr.msk.bf16.mxu1 %vm251_vm0, %v6006_v7  ;;  %v6316_v7 = vld [vmem:[#allocation2 + $0x6e] sm:$0xff] }
 0x53f   : > { %v6347_v59 = vpack.c.bf16 %v6316_v7, %v6315_v9  ;;  %v7449_v7 = vld [vmem:[%s9450_s19 + $0x20] sm:$0xff] }
 0x545   : > { %8528 = vmatmul.mubr.msk.bf16.vlgmr.msra.gmra.mrb[0].mxu1 %vm251_vm0, %v6007_v10  ;;  %v6317_v10 = vld [vmem:[#allocation2 + $0x76] sm:$0xff] }
 0x546   : > { %8564 = vmatpush3.bf16.msra.mxu1 %v9258_v61  ;;  %8531 = vmatprep.mubr.msk.bf16.mxu1 %vm251_vm0, %v6008_v13  ;;  %v6309_v61 = vld [vmem:[#allocation2 + $0x36] sm:$0xff]  ;;  %v6348_v13 = vpack.c.bf16 %v6318_v11, %v6317_v10 }
 0x547   : > { %8565 = vmatprep.subr.bf16.mxu1 %v9259_v12  ;;  %v6344_v63 = vpack.c.bf16 %v6310_v42, %v6309_v61 }
 0x54a   : > { %8566 = vmatpush3.bf16.msra.mxu1 %v9259_v12  ;;  %v6320_v12 = vld [vmem:[#allocation2 + $0x8e] sm:$0xff] }
 0x54b   : > { %v6349_v14 = vpack.c.bf16 %v6320_v12, %v6319_v2  ;;  %v6746_v12 = vrot.slane %v10276_v1, 2  ;;  %v6723_v2 = vrot.slane %v7450_v6, 4 }
 0x54d   : > { %8532 = vmatmul.mubr.msk.bf16.gmra.mrb[4].mxu1 %vm251_vm0, %v6009_v0  ;;  %v6322_v0 = vld [vmem:[#allocation2 + $0x9e] sm:$0xff] }
 0x54e   : > { %8535 = vmatprep.mubr.msk.bf16.mxu1 %vm251_vm0, %v6010_v17  ;;  %v6350_v17 = vpack.c.bf16 %v6322_v0, %v6321_v46 }
 0x555   : > { %8536 = vmatmul.mubr.msk.bf16.gmra.mrb[8].mxu1 %vm251_vm0, %v6011_v5  ;;  %v6326_v5 = vld [vmem:[#allocation2 + $0xbe] sm:$0xff] }
 0x556   : > { %8539 = vmatprep.mubr.msk.bf16.mxu1 %vm251_vm0, %v6012_v22  ;;  %v6352_v22 = vpack.c.bf16 %v6326_v5, %v6325_v20 }
 0x55d   : > { %8540 = vmatmul.mubr.msk.bf16.gmra.mrb[12].mxu1 %vm251_vm0, %v6013_v25  ;;  %v6330_v25 = vld [vmem:[#allocation2 + $0xde] sm:$0xff] }
 0x55e   : > { %8543 = vmatprep.mubr.msk.bf16.mxu1 %vm251_vm0, %v6014_v27  ;;  %v6354_v27 = vpack.c.bf16 %v6330_v25, %v6329_v56 }
 0x565   : > { %8544 = vmatmul.mubr.msk.bf16.gmra.mrb[16].mxu1 %vm251_vm0, %v6015_v31  ;;  %v6334_v31 = vld [vmem:[#allocation2 + $0xfe] sm:$0xff] }
 0x566   : > { %8547 = vmatprep.mubr.msk.bf16.mxu1 %vm251_vm0, %v6016_v34  ;;  %v6356_v34 = vpack.c.bf16 %v6334_v31, %v6333_v30 }
 0x56d   : > { %8548 = vmatmul.mubr.msk.bf16.gmra.mrb[20].mxu1 %vm251_vm0, %v6017_v35  ;;  %v6338_v35 = vld [vmem:[#allocation2 + $0x11e] sm:$0xff] }
 0x56e   : > { %8551 = vmatprep.mubr.msk.bf16.mxu1 %vm251_vm0, %v6018_v37  ;;  %v6340_v37 = vld [vmem:[#allocation2 + $0x12e] sm:$0xff]  ;;  %v6358_v40 = vpack.c.bf16 %v6338_v35, %v6337_v38 }
 0x56f   : > { %v6359_v41 = vpack.c.bf16 %v6340_v37, %v6339_v39  ;;  %v7460_v35 = vld [vmem:[%s9450_s19 + $0x48] sm:$0xff] }
 0x575   : > { %8552 = vmatmul.mubr.msk.bf16.gmra.mrb[24].mxu1 %vm251_vm0, %v6019_v48  ;;  %v6342_v48 = vld [vmem:[#allocation2 + $0x13e] sm:$0x3f] }
 0x576   : > { %8555 = vmatprep.mubr.msk.bf16.mxu1 %vm251_vm0, %v6020_v49  ;;  %v6360_v47 = vpack.c.bf16 %v6342_v48, %v6341_v15  ;;  %v7444_v49 = vld [vmem:[%s9450_s19 + $0x10] sm:$0xff]  ;;  %v7469_v15 = vld [vmem:[%s9450_s19 + $0x68] sm:$0xff] }
 0x577   : > { %v6700_v52 = vrot.slane %v7444_v49, 6  ;;  %v7464_v49 = vld [vmem:[%s9450_s19 + $0x58] sm:$0xff] }
 0x579   : > { %v6702_v45 = vsel %vm6699_vm4, %v6700_v52, %v6701_v19 }
 0x57d   : > { %8556 = vmatmul.mubr.msk.bf16.gmra.mrb[28].mxu1 %vm251_vm0, %v6021_v53 }
 0x57e   : > { %8559 = vmatprep.mubr.msk.bf16.mxu1 %vm251_vm0, %v6022_v43 }
 0x585   : > { %8560 = vmatmul.mubr.msk.bf16.gmra.mrb[32].mxu1 %vm251_vm0, %v6023_v57 }
 0x586   : > { %8567 = vmatprep.mubr.msk.bf16.mxu1 %vm251_vm0, %v6343_v60 }
 0x58d   : > { %8568 = vmatmul.mubr.msk.bf16.vlgmr.msra.gmra.mrb[0].mxu1 %vm251_vm0, %v6344_v63  ;;  %v7454_v63 = vld [vmem:[%s9450_s19 + $0x30] sm:$0xff] }
 0x58e   : > { %8571 = vmatprep.mubr.msk.bf16.mxu1 %vm251_vm0, %v6345_v3  ;;  %v6745_v11 = vrot.slane %v7454_v63, 2 }
 0x590   : > { %v6747_v20 = vsel %vm6744_vm6, %v6745_v11, %v6746_v12 }
 0x595   : > { %8572 = vmatmul.mubr.msk.bf16.gmra.mrb[4].mxu1 %vm251_vm0, %v6346_v8 }
 0x596   : > { %8575 = vmatprep.mubr.msk.bf16.mxu1 %vm251_vm0, %v6347_v59 }
 0x59d   : > { %8576 = vmatmul.mubr.msk.bf16.gmra.mrb[8].mxu1 %vm251_vm0, %v6348_v13 }
 0x59e   : > { %8579 = vmatprep.mubr.msk.bf16.mxu1 %vm251_vm0, %v6349_v14  ;;  %v6722_v14 = vrot.slane %v7449_v7, 4 }
 0x5a5   : > { %8580 = vmatmul.mubr.msk.bf16.gmra.mrb[12].mxu1 %vm251_vm0, %v6350_v17 }
 0x5a6   : > { %8583 = vmatprep.mubr.msk.bf16.mxu1 %vm251_vm0, %v6351_v50 }
 0x5ad   : > { %8584 = vmatmul.mubr.msk.bf16.gmra.mrb[16].mxu1 %vm251_vm0, %v6352_v22 }
 0x5ae   : > { %8587 = vmatprep.mubr.msk.bf16.mxu1 %vm251_vm0, %v6353_v24  ;;  %v6724_v24 = vsel %vm6721_vm7, %v6722_v14, %v6723_v2 }
 0x5b5   : > { %8588 = vmatmul.mubr.msk.bf16.gmra.mrb[20].mxu1 %vm251_vm0, %v6354_v27 }
 0x5b6   : > { %8591 = vmatprep.mubr.msk.bf16.mxu1 %vm251_vm0, %v6355_v29 }
 0x5bd   : > { %8592 = vmatmul.mubr.msk.bf16.gmra.mrb[24].mxu1 %vm251_vm0, %v6356_v34  ;;  %v7463_v34 = vld [vmem:[%s9450_s19 + $0x50] sm:$0xff] }
 0x5be   : > { %8595 = vmatprep.mubr.msk.bf16.mxu1 %vm251_vm0, %v6357_v51 }
 0x5c5   : > { %8596 = vmatmul.mubr.msk.bf16.gmra.mrb[28].mxu1 %vm251_vm0, %v6358_v40  ;;  %v6775_v40 = vrot.slane %v7463_v34, 6 }
 0x5c6   : > { %8599 = vmatprep.mubr.msk.bf16.mxu1 %vm251_vm0, %v6359_v41  ;;  %v7468_v41 = vld [vmem:[%s9450_s19 + $0x60] sm:$0xff] }
 0x5cd   : > { %8600 = vmatmul.mubr.msk.bf16.gmra.mrb[32].mxu1 %vm251_vm0, %v6360_v47 }
 0x660   : > { %v8569_v53 = vpop.f32.mrb[0].mxu1 }
 0x661   : > { %v6653_v43 = vadd.f32 %v8569_v53, %v10264_v33  ;;  %v6465_v54 = vpop.f32.mrb[1].mxu1  ;;  %v7459_v53 = vld [vmem:[%s9450_s19 + $0x40] sm:$0xff] }
 0x662   : > { %v6651_v57 = vadd.f32 %v10264_v33, %v6465_v54  ;;  %v8570_v58 = vpop.f32.mrb[2].mxu1 }
 0x663   : > { %v6706_v60 = vadd.f32 %v6700_v52, %v6653_v43  ;;  %v6654_v61 = vadd.f32 %v8570_v58, %v10264_v33  ;;  %v6468_v42 = vpop.f32.mrb[3].mxu1 }
 0x664   : > { %v6689_v3 = vadd.f32 %v6687_v55, %v6651_v57  ;;  %v6652_v4 = vadd.f32 %v10264_v33, %v6468_v42  ;;  %v6795_v55 = vrot.slane %v7468_v41, 4  ;;  %v6796_v57 = vrot.slane %v7469_v15, 4 }
 0x665   : > { %v6709_v8 = vmax.f32 %v6706_v60, 0.0  ;;  %v6707_v9 = vadd.f32 %v6702_v45, %v6654_v61  ;;  %v6776_v60 = vrot.slane %v7464_v49, 6 }
 0x666   : > { %v6691_v59 = vmax.f32 %v6689_v3, 0.0  ;;  %v6690_v10 = vadd.f32 %v6688_v62, %v6652_v4  ;;  %v7473_v62 = vld [vmem:[%s9450_s19 + $0x70] sm:$0xff]  ;;  %v6797_v4 = vsel %vm6721_vm7, %v6795_v55, %v6796_v57 }
 0x667   : > { %7446 = vst.msk [vmem:[%s10282_s9 + $0xe] sm:$0xfc] %vm6713_vm5, %v6709_v8  ;;  %v6710_v13 = vmax.f32 %v6707_v9, 0.0  ;;  %v6777_v8 = vsel %vm6699_vm4, %v6775_v40, %v6776_v60  ;;  %v6815_v9 = vrot.slane %v7473_v62, 2 }
 0x668   : > { %6693 = vst.msk [vmem:[%s10282_s9] sm:$0xff] %vm251_vm0, %v6691_v59  ;;  %v6692_v46 = vmax.f32 %v6690_v10, 0.0  ;;  %v8573_v0 = vpop.f32.mrb[4].mxu1 }
 0x669   : > { %7447 = vst.msk [vmem:[%s10282_s9 + $0x16] sm:$0xff] %vm251_vm0, %v6710_v13  ;;  %v6657_v16 = vadd.f32 %v8573_v0, %v10264_v33  ;;  %v6481_v17 = vpop.f32.mrb[5].mxu1 }
 0x66a   : > { %6694 = vst.msk [vmem:[%s10282_s9 + $0x8] sm:$0xff] %vm251_vm0, %v6692_v46  ;;  %v6655_v18 = vadd.f32 %v10264_v33, %v6481_v17  ;;  %v8574_v50 = vpop.f32.mrb[6].mxu1 }
 0x66b   : > { %v6730_v5 = vadd.f32 %v6723_v2, %v6657_v16  ;;  %v6751_v21 = vadd.f32 %v6745_v11, %v6657_v16  ;;  %v6658_v22 = vadd.f32 %v8574_v50, %v10264_v33  ;;  %v6484_v23 = vpop.f32.mrb[7].mxu1  ;;  %v7474_v11 = vld [vmem:[%s9450_s19 + $0x78] sm:$0xff] }
 0x66c   : > { %v6708_v56 = vadd.f32 %v6701_v19, %v6655_v18  ;;  %v6728_v25 = vadd.f32 %v6722_v14, %v6655_v18  ;;  %v6656_v26 = vadd.f32 %v10264_v33, %v6484_v23  ;;  %v6816_v18 = vrot.slane %v7474_v11, 2 }
 0x66d   : > { %v6733_v27 = vmax.f32 %v6730_v5, 0.0  ;;  %v6754_v28 = vmax.f32 %v6751_v21, 0.0  ;;  %v6752_v29 = vadd.f32 %v6747_v20, %v6658_v22 }
 0x66e   : > { %v6711_v30 = vmax.f32 %v6708_v56, 0.0  ;;  %v6731_v31 = vmax.f32 %v6728_v25, 0.0  ;;  %v6729_v32 = vadd.f32 %v6724_v24, %v6656_v26  ;;  %v7478_v25 = vld [vmem:[%s9450_s19 + $0x80] sm:$0xff] }
 0x66f   : > { %7453 = vst.msk [vmem:[%s10282_s9 + $0x2c] sm:$0xf] %vm6738_vm8, %v6733_v27  ;;  %v6755_v36 = vmax.f32 %v6752_v29, 0.0 }
 0x670   : > { %7456 = vst.msk [vmem:[%s10282_s9 + $0x2a] sm:$0xc0] %vm6758_vm9, %v6754_v28  ;;  %v6732_v51 = vmax.f32 %v6729_v32, 0.0  ;;  %v8577_v38 = vpop.f32.mrb[8].mxu1  ;;  %v6817_v28 = vsel %vm6744_vm6, %v6815_v9, %v6816_v18 }
 0x671   : > { %7448 = vst.msk [vmem:[%s10282_s9 + $0x1e] sm:$0x3] %vm256_vm2, %v6711_v30  ;;  %v6661_v39 = vadd.f32 %v8577_v38, %v10264_v33  ;;  %v6497_v37 = vpop.f32.mrb[9].mxu1  ;;  %v7488_v38 = vld [vmem:[%s9450_s19 + $0xa8] sm:$0xff] }
 0x672   : > { %7451 = vst.msk [vmem:[%s10282_s9 + $0x1c] sm:$0xf0] %vm6735_vm10, %v6731_v31  ;;  %v6659_v48 = vadd.f32 %v10264_v33, %v6497_v37  ;;  %v8578_v47 = vpop.f32.mrb[10].mxu1  ;;  %v7479_v31 = vld [vmem:[%s9450_s19 + $0x88] sm:$0xff]  ;;  %v7483_v37 = vld [vmem:[%s9450_s19 + $0x98] sm:$0xff] }
 0x673   : > { %7457 = vst.msk [vmem:[%s10282_s9 + $0x32] sm:$0xff] %vm251_vm0, %v6755_v36  ;;  %7452 = vst.msk [vmem:[%s10282_s9 + $0x24] sm:$0xff] %vm251_vm0, %v6732_v51  ;;  %v6765_v44 = vadd.f32 %v7460_v35, %v6661_v39  ;;  %v6662_v52 = vadd.f32 %v8578_v47, %v10264_v33  ;;  %v6500_v19 = vpop.f32.mrb[11].mxu1  ;;  %v7487_v51 = vld [vmem:[%s9450_s19 + $0xa0] sm:$0xff] }
 0x674   : > { %v6753_v43 = vadd.f32 %v6746_v12, %v6659_v48  ;;  %v6660_v54 = vadd.f32 %v10264_v33, %v6500_v19  ;;  %v6864_v49 = vrot.slane %v7487_v51, 4  ;;  %v6845_v19 = vrot.slane %v7483_v37, 6 }
 0x675   : > { %v6767_v58 = vmax.f32 %v6765_v44, 0.0  ;;  %v6781_v45 = vadd.f32 %v6775_v40, %v6662_v52  ;;  %v7482_v40 = vld [vmem:[%s9450_s19 + $0x90] sm:$0xff]  ;;  %v6865_v44 = vrot.slane %v7488_v38, 4 }
 0x676   : > { %v6756_v61 = vmax.f32 %v6753_v43, 0.0  ;;  %v6764_v42 = vadd.f32 %v7459_v53, %v6660_v54  ;;  %v6844_v53 = vrot.slane %v7482_v40, 6 }
 0x677   : > { %7462 = vst.msk [vmem:[%s10282_s9 + $0x48] sm:$0xff] %vm251_vm0, %v6767_v58  ;;  %v6784_v63 = vmax.f32 %v6781_v45, 0.0 }
 0x678   : > { %7458 = vst.msk [vmem:[%s10282_s9 + $0x3a] sm:$0x3f] %vm3681_vm3, %v6756_v61  ;;  %v6766_v1 = vmax.f32 %v6764_v42, 0.0  ;;  %v8581_v3 = vpop.f32.mrb[12].mxu1 }
 0x679   : > { %7465 = vst.msk [vmem:[%s10282_s9 + $0x4e] sm:$0xfc] %vm6713_vm5, %v6784_v63  ;;  %v6665_v6 = vadd.f32 %v8581_v3, %v10264_v33  ;;  %v6513_v7 = vpop.f32.mrb[13].mxu1 }
 0x67a   : > { %7461 = vst.msk [vmem:[%s10282_s9 + $0x40] sm:$0xff] %vm251_vm0, %v6766_v1  ;;  %v6663_v59 = vadd.f32 %v10264_v33, %v6513_v7  ;;  %v8582_v10 = vpop.f32.mrb[14].mxu1  ;;  %v6846_v1 = vsel %vm6699_vm4, %v6844_v53, %v6845_v19  ;;  %v7492_v7 = vld [vmem:[%s9450_s19 + $0xb0] sm:$0xff] }
 0x67b   : > { %v6802_v12 = vadd.f32 %v6797_v4, %v6665_v6  ;;  %v6666_v13 = vadd.f32 %v8582_v10, %v10264_v33  ;;  %v6516_v2 = vpop.f32.mrb[15].mxu1  ;;  %v7493_v6 = vld [vmem:[%s9450_s19 + $0xb8] sm:$0xff] }
 0x67c   : > { %v6782_v14 = vadd.f32 %v6777_v8, %v6663_v59  ;;  %v6664_v46 = vadd.f32 %v10264_v33, %v6516_v2  ;;  %v6884_v2 = vrot.slane %v7492_v7, 2 }
 0x67d   : > { %v6805_v0 = vmax.f32 %v6802_v12, 0.0  ;;  %v6803_v16 = vadd.f32 %v6796_v57, %v6666_v13  ;;  %v6821_v17 = vadd.f32 %v6815_v9, %v6666_v13  ;;  %v6885_v13 = vrot.slane %v7493_v6, 2 }
 0x67e   : > { %v6785_v50 = vmax.f32 %v6782_v14, 0.0  ;;  %v6783_v20 = vadd.f32 %v6776_v60, %v6664_v46  ;;  %v6801_v5 = vadd.f32 %v6795_v55, %v6664_v46  ;;  %v6866_v60 = vsel %vm6721_vm7, %v6864_v49, %v6865_v44 }
 0x67f   : > { %7471 = vst.msk [vmem:[%s10282_s9 + $0x64] sm:$0xff] %vm251_vm0, %v6805_v0  ;;  %v6806_v21 = vmax.f32 %v6803_v16, 0.0  ;;  %v6824_v22 = vmax.f32 %v6821_v17, 0.0  ;;  %v7501_v0 = vld [vmem:[%s9450_s19 + $0xd0] sm:$0xff] }
 0x680   : > { %7466 = vst.msk [vmem:[%s10282_s9 + $0x56] sm:$0xff] %vm251_vm0, %v6785_v50  ;;  %v6786_v23 = vmax.f32 %v6783_v20, 0.0  ;;  %v6804_v24 = vmax.f32 %v6801_v5, 0.0  ;;  %v8585_v56 = vpop.f32.mrb[16].mxu1  ;;  %v7497_v5 = vld [vmem:[%s9450_s19 + $0xc0] sm:$0xff] }
 0x681   : > { %7472 = vst.msk [vmem:[%s10282_s9 + $0x6c] sm:$0xf] %vm6738_vm8, %v6806_v21  ;;  %v6669_v26 = vadd.f32 %v8585_v56, %v10264_v33  ;;  %v6529_v27 = vpop.f32.mrb[17].mxu1  ;;  %v6913_v56 = vrot.slane %v7501_v0, 6 }
 0x682   : > { %7475 = vst.msk [vmem:[%s10282_s9 + $0x6a] sm:$0xc0] %vm6758_vm9, %v6824_v22  ;;  %v6667_v29 = vadd.f32 %v10264_v33, %v6529_v27  ;;  %v8586_v30 = vpop.f32.mrb[18].mxu1 }
 0x683   : > { %7467 = vst.msk [vmem:[%s10282_s9 + $0x5e] sm:$0x3] %vm256_vm2, %v6786_v23  ;;  %v6833_v32 = vadd.f32 %v7478_v25, %v6669_v26  ;;  %v6670_v34 = vadd.f32 %v8586_v30, %v10264_v33  ;;  %v6532_v36 = vpop.f32.mrb[19].mxu1 }
 0x684   : > { %7470 = vst.msk [vmem:[%s10282_s9 + $0x5c] sm:$0xf0] %vm6735_vm10, %v6804_v24  ;;  %v6822_v35 = vadd.f32 %v6817_v28, %v6667_v29  ;;  %v6668_v39 = vadd.f32 %v10264_v33, %v6532_v36  ;;  %v6886_v24 = vsel %vm6744_vm6, %v6884_v2, %v6885_v13  ;;  %v7506_v36 = vld [vmem:[%s9450_s19 + $0xe0] sm:$0xff] }
 0x685   : > { %v6835_v41 = vmax.f32 %v6833_v32, 0.0  ;;  %v6834_v15 = vadd.f32 %v7479_v31, %v6670_v34 }
 0x686   : > { %v6825_v48 = vmax.f32 %v6822_v35, 0.0  ;;  %v6823_v47 = vadd.f32 %v6816_v18, %v6668_v39  ;;  %v7502_v18 = vld [vmem:[%s9450_s19 + $0xd8] sm:$0xff] }
 0x687   : > { %7480 = vst.msk [vmem:[%s10282_s9 + $0x80] sm:$0xff] %vm251_vm0, %v6835_v41  ;;  %v6836_v52 = vmax.f32 %v6834_v15, 0.0  ;;  %v6914_v28 = vrot.slane %v7502_v18, 6  ;;  %v7498_v41 = vld [vmem:[%s9450_s19 + $0xc8] sm:$0xff]  ;;  %v6933_v15 = vrot.slane %v7506_v36, 4 }
 0x688   : > { %7476 = vst.msk [vmem:[%s10282_s9 + $0x72] sm:$0xff] %vm251_vm0, %v6825_v48  ;;  %v6826_v43 = vmax.f32 %v6823_v47, 0.0  ;;  %v8589_v54 = vpop.f32.mrb[20].mxu1  ;;  %v7511_v48 = vld [vmem:[%s9450_s19 + $0xf0] sm:$0xff]  ;;  %v7512_v47 = vld [vmem:[%s9450_s19 + $0xf8] sm:$0xff] }
 0x689   : > { %7481 = vst.msk [vmem:[%s10282_s9 + $0x88] sm:$0xff] %vm251_vm0, %v6836_v52  ;;  %v6673_v55 = vadd.f32 %v8589_v54, %v10264_v33  ;;  %v6545_v57 = vpop.f32.mrb[21].mxu1  ;;  %v6915_v39 = vsel %vm6699_vm4, %v6913_v56, %v6914_v28  ;;  %v7507_v52 = vld [vmem:[%s9450_s19 + $0xe8] sm:$0xff]  ;;  %s7522_s19 = sshll.u32 %s9385_s25, 12  ;;  %s10450_s25 = scalar_lea.sflag [#allocation4], %s242_s20 }
 0x68a   : > { %7477 = vst.msk [vmem:[%s10282_s9 + $0x7a] sm:$0x3f] %vm3681_vm3, %v6826_v43  ;;  %v6671_v58 = vadd.f32 %v10264_v33, %v6545_v57  ;;  %v8590_v45 = vpop.f32.mrb[22].mxu1  ;;  %v6953_v57 = vrot.slane %v7511_v48, 2  ;;  %s10436_s13 = scalar_lea.hbm %s10497_s6, %s7522_s19 }
 0x68b   : > { %v6852_v61 = vadd.f32 %v6845_v19, %v6673_v55  ;;  %v6870_v42 = vadd.f32 %v6864_v49, %v6673_v55  ;;  %v6674_v62 = vadd.f32 %v8590_v45, %v10264_v33  ;;  %v6548_v63 = vpop.f32.mrb[23].mxu1 }
 0x68c   : > { %v6850_v3 = vadd.f32 %v6844_v53, %v6671_v58  ;;  %v6672_v4 = vadd.f32 %v10264_v33, %v6548_v63  ;;  %v6954_v58 = vrot.slane %v7512_v47, 2 }
 0x68d   : > { %v6855_v8 = vmax.f32 %v6852_v61, 0.0  ;;  %v6873_v9 = vmax.f32 %v6870_v42, 0.0  ;;  %v6871_v59 = vadd.f32 %v6866_v60, %v6674_v62  ;;  %v6934_v42 = vrot.slane %v7507_v52, 4 }
 0x68e   : > { %v6853_v10 = vmax.f32 %v6850_v3, 0.0  ;;  %v6851_v11 = vadd.f32 %v6846_v1, %v6672_v4  ;;  %v6955_v7 = vsel %vm6744_vm6, %v6953_v57, %v6954_v58 }
 0x68f   : > { %7486 = vst.msk [vmem:[%s10282_s9 + $0x9e] sm:$0x3] %vm256_vm2, %v6855_v8  ;;  %v6874_v12 = vmax.f32 %v6871_v59, 0.0  ;;  %v6935_v59 = vsel %vm6721_vm7, %v6933_v15, %v6934_v42 }
 0x690   : > { %7489 = vst.msk [vmem:[%s10282_s9 + $0x9c] sm:$0xf0] %vm6735_vm10, %v6873_v9  ;;  %v6854_v14 = vmax.f32 %v6851_v11, 0.0  ;;  %v8593_v46 = vpop.f32.mrb[24].mxu1 }
 0x691   : > { %7484 = vst.msk [vmem:[%s10282_s9 + $0x8e] sm:$0xfc] %vm6713_vm5, %v6853_v10  ;;  %v6677_v16 = vadd.f32 %v8593_v46, %v10264_v33  ;;  %v6561_v17 = vpop.f32.mrb[25].mxu1 }
 0x692   : > { %7490 = vst.msk [vmem:[%s10282_s9 + $0xa4] sm:$0xff] %vm251_vm0, %v6874_v12  ;;  %7485 = vst.msk [vmem:[%s10282_s9 + $0x96] sm:$0xff] %vm251_vm0, %v6854_v14  ;;  %v6675_v50 = vadd.f32 %v10264_v33, %v6561_v17  ;;  %v8594_v20 = vpop.f32.mrb[26].mxu1 }
 0x693   : > { %v6892_v21 = vadd.f32 %v6885_v13, %v6677_v16  ;;  %v6678_v22 = vadd.f32 %v8594_v20, %v10264_v33  ;;  %v6564_v23 = vpop.f32.mrb[27].mxu1 }
 0x694   : > { %v6872_v25 = vadd.f32 %v6865_v44, %v6675_v50  ;;  %v6890_v26 = vadd.f32 %v6884_v2, %v6675_v50  ;;  %v6676_v27 = vadd.f32 %v10264_v33, %v6564_v23 }
 0x695   : > { %v6895_v29 = vmax.f32 %v6892_v21, 0.0  ;;  %v6902_v30 = vadd.f32 %v7497_v5, %v6678_v22 }
 0x696   : > { %v6875_v31 = vmax.f32 %v6872_v25, 0.0  ;;  %v6893_v32 = vmax.f32 %v6890_v26, 0.0  ;;  %v6891_v34 = vadd.f32 %v6886_v24, %v6676_v27 }
 0x697   : > { %7496 = vst.msk [vmem:[%s10282_s9 + $0xba] sm:$0x3f] %vm3681_vm3, %v6895_v29  ;;  %v6904_v51 = vmax.f32 %v6902_v30, 0.0 }
 0x698   : > { %7491 = vst.msk [vmem:[%s10282_s9 + $0xac] sm:$0xf] %vm6738_vm8, %v6875_v31  ;;  %v6894_v38 = vmax.f32 %v6891_v34, 0.0  ;;  %v8597_v35 = vpop.f32.mrb[28].mxu1 }
 0x699   : > { %7494 = vst.msk [vmem:[%s10282_s9 + $0xaa] sm:$0xc0] %vm6758_vm9, %v6893_v32  ;;  %v6681_v37 = vadd.f32 %v8597_v35, %v10264_v33  ;;  %v6577_v40 = vpop.f32.mrb[29].mxu1 }
 0x69a   : > { %7499 = vst.msk [vmem:[%s10282_s9 + $0xc0] sm:$0xff] %vm251_vm0, %v6904_v51  ;;  %7495 = vst.msk [vmem:[%s10282_s9 + $0xb2] sm:$0xff] %vm251_vm0, %v6894_v38  ;;  %v6679_v49 = vadd.f32 %v10264_v33, %v6577_v40  ;;  %v8598_v44 = vpop.f32.mrb[30].mxu1 }
 0x69b   : > { %v6920_v19 = vadd.f32 %v6915_v39, %v6681_v37  ;;  %v6682_v53 = vadd.f32 %v8598_v44, %v10264_v33  ;;  %v6580_v43 = vpop.f32.mrb[31].mxu1 }
 0x69c   : > { %v6903_v54 = vadd.f32 %v7498_v41, %v6679_v49  ;;  %v6680_v55 = vadd.f32 %v10264_v33, %v6580_v43 }
 0x69d   : > { %v6923_v45 = vmax.f32 %v6920_v19, 0.0  ;;  %v6921_v60 = vadd.f32 %v6914_v28, %v6682_v53  ;;  %v6939_v61 = vadd.f32 %v6933_v15, %v6682_v53 }
 0x69e   : > { %v6905_v62 = vmax.f32 %v6903_v54, 0.0  ;;  %v6919_v63 = vadd.f32 %v6913_v56, %v6680_v55 }
 0x69f   : > { %7504 = vst.msk [vmem:[%s10282_s9 + $0xd6] sm:$0xff] %vm251_vm0, %v6923_v45  ;;  %v6924_v1 = vmax.f32 %v6921_v60, 0.0  ;;  %v6942_v3 = vmax.f32 %v6939_v61, 0.0 }
 0x6a0   : > { %7500 = vst.msk [vmem:[%s10282_s9 + $0xc8] sm:$0xff] %vm251_vm0, %v6905_v62  ;;  %v6922_v4 = vmax.f32 %v6919_v63, 0.0  ;;  %v8601_v6 = vpop.f32.mrb[32].mxu1 }
 0x6a1   : > { %7505 = vst.msk [vmem:[%s10282_s9 + $0xde] sm:$0x3] %vm256_vm2, %v6924_v1  ;;  %v6685_v8 = vadd.f32 %v8601_v6, %v10264_v33  ;;  %v6593_v9 = vpop.f32.mrb[33].mxu1 }
 0x6a2   : > { %7508 = vst.msk [vmem:[%s10282_s9 + $0xdc] sm:$0xf0] %vm6735_vm10, %v6942_v3  ;;  %v6683_v10 = vadd.f32 %v10264_v33, %v6593_v9  ;;  %v8602_v11 = vpop.f32.mrb[34].mxu1 }
 0x6a3   : > { %7503 = vst.msk [vmem:[%s10282_s9 + $0xce] sm:$0xfc] %vm6713_vm5, %v6922_v4  ;;  %v6960_v12 = vadd.f32 %v6955_v7, %v6685_v8  ;;  %v6686_v13 = vadd.f32 %v8602_v11, %v10264_v33  ;;  %v6596_v2 = vpop.f32.mrb[35].mxu1 }
 0x6a4   : > { %v6940_v14 = vadd.f32 %v6935_v59, %v6683_v10  ;;  %v6684_v46 = vadd.f32 %v10264_v33, %v6596_v2 }
 0x6a5   : > { %v6963_v0 = vmax.f32 %v6960_v12, 0.0  ;;  %v6961_v16 = vadd.f32 %v6954_v58, %v6686_v13 }
 0x6a6   : > { %v6943_v17 = vmax.f32 %v6940_v14, 0.0  ;;  %v6941_v18 = vadd.f32 %v6934_v42, %v6684_v46  ;;  %v6959_v50 = vadd.f32 %v6953_v57, %v6684_v46 }
 0x6a7   : > { %7514 = vst.msk [vmem:[%s10282_s9 + $0xf2] sm:$0xff] %vm251_vm0, %v6963_v0  ;;  %v6964_v20 = vmax.f32 %v6961_v16, 0.0 }
 0x6a8   : > { %7509 = vst.msk [vmem:[%s10282_s9 + $0xe4] sm:$0xff] %vm251_vm0, %v6943_v17  ;;  %v6944_v33 = vmax.f32 %v6941_v18, 0.0  ;;  %v6962_v5 = vmax.f32 %v6959_v50, 0.0 }
 0x6a9   : > { %7515 = vst.msk [vmem:[%s10282_s9 + $0xfa] sm:$0x3f] %vm3681_vm3, %v6964_v20 }
 0x6aa   : > { %7510 = vst.msk [vmem:[%s10282_s9 + $0xec] sm:$0xf] %vm6738_vm8, %v6944_v33 }
 0x6ab   : > { %7513 = vst.msk [vmem:[%s10282_s9 + $0xea] sm:$0xc0] %vm6758_vm9, %v6962_v5 }
 0x6ac   : > { %9273 = shalt.err (!%p9270_p3)
}
 0x6ad   : > { %s9274_s18 = scalar_lea.hbm %s10436_s13, 4096  ;;  %s9278_s28 = scalar_lea.hbm %s10497_s6, 8192 }
 0x6ae   : > { %p9275_p4 = scmp.ne.s32.totalorder %s10436_s13, %s9274_s18  ;;  %p9279_p9 = scmp.lt.u32.totalorder %s10436_s13, %s10497_s6 }
 0x6af   : > { %p9280_p10 = scmp.lt.u32.totalorder %s9278_s28, %s9274_s18  ;;  %p9282_p12 = scmp.lt.u32.totalorder %s9274_s18, %s10436_s13 }
 0x6b0   : > { %p9276_p7 = pnand %p9275_p4, %p9402_p5 }
 0x6b1   : > { %p9281_p11 = por %p9280_p10, %p9279_p9 }
 0x6b2   : > { %p9277_p8 = pneg %p9276_p7 }
 0x6b3   : > { %p9283_p13 = por %p9282_p12, %p9281_p11 }
 0x6b5   : > { %p9284_p0 = pnand %p9283_p13, %p9277_p8 }
 0x6b7   : > { %9287 = shalt.err (!%p9284_p0)
}
 0x6b8   : > { %s9327_s19 = smov 128   ;;  %s9328_s11 = smov 8  }
 0x6b9   : > { %9179 = dma.vmem_to_hbm [thread:$0]  (%p9402_p5), %s10438_s10, 4096, %s10436_s13, %s10450_s25, %s9327_s19, %s9327_s19, %s9328_s11  }
 0x6ba PF: > { %p9185_p1 = scmp.ge.s32.totalorder %s9322_s24, 2  ;;  %s6998_s12 = sand.u32 1, %s9310_s21  }
 0x6bb   : > { %s6999_s14 = scalar_lea.sflag [#allocation4], %s6998_s12 }
 0x6bc   : > { %p9182_p2 = pnand %p9185_p1, %p9406_p6 }
 0x6be   : > { %9305 = dma.done.wait (!%p9182_p2), %s6999_s14, 4096  }
 0x6bf   : > { %9307 = vsyncadd (!%p9182_p2), %s6999_s14, 4294963200  ;;  %p16_p3 = scmp.ge.s32.totalorder %s9389_s27, 4   ;;  %s10500_s21 = smov %s9314_s22 }
 0x6c0   : > { %s10501_s22 = smov %s9318_s23  ;;  %s10502_s23 = smov %s9400_s30 }
 0x6c1   : > { %s10503_s24 = smov %s9389_s27  ;;  %18 = sbr.rel (!%p16_p3) target bundleno = 3 (0x3), region = 109 }
 0x6c8   :  { %7004 = vsyncpa [#allocation4], 1 }
 0x6c9   :  { %7006 = vsyncpa [#allocation4 + $0x1], 1 }

</bundles_post_ra>
